<compile_context>
chip_gen: v5e
topology: v5e:2x2
jax: 0.10.0
libtpu: 0.0.40
codegen_flags: <defaults>
</compile_context>

<pallas_src>
import collections

import jax
import jax.numpy as jnp
import numpy as np
from jax.experimental import pallas as pl
from jax.experimental.pallas import tpu as pltpu

Genotype = collections.namedtuple("Genotype", ["normal"])


# ------------------------------ Pallas kernel ------------------------------ #

def make_chain_kernel(ops, col_off, C_pad, Wp, Npp_pad, frame_off, W_state):
    """Build the fused chain kernel.

    ops:       static list of (kernel, dilation), preprocess (1, 1) first.
    col_off:   per-op 128-aligned start column into the packed weight matrix.
    Wp:        padded image width; Npp_pad = lane-padded Hp*Wp.
    frame_off: lane offset of the padded frame inside the state scratch; the
               slack on both sides stays zero so every statically shifted tap
               read is in-bounds and reads zeros outside the frame.
    W_state:   total lane width of the bf16 state scratch.
    """
    n_ops = len(ops)

    def kernel(x_ref, w_ref, scale_ref, shift_ref, mask_ref, o_ref,
               st_ref, col_ref):
        # --- init: zero only the two slack strips, then drop this batch
        # element's (already zero-padded) frame in, ReLU'd + bf16 once. ---
        if frame_off > 0:
            st_ref[:, 0:frame_off] = jnp.zeros((C_pad, frame_off), jnp.bfloat16)
            tail = W_state - frame_off - Npp_pad
            st_ref[:, frame_off + Npp_pad:W_state] = jnp.zeros(
                (C_pad, tail), jnp.bfloat16)
        st_ref[:, frame_off:frame_off + Npp_pad] = jnp.maximum(
            x_ref[0], 0.0).astype(jnp.bfloat16)
        mask = mask_ref[...]                                    # (1, Npp_pad) f32

        for i, (k, d) in enumerate(ops):                        # static unroll
            p = d * (k - 1) // 2
            kkC = k * k * C_pad
            if k == 1:
                # 1x1 conv: the single tap is the frame itself (lane-aligned).
                stack = st_ref[:, frame_off:frame_off + Npp_pad]
            else:
                # In-VMEM "im2col": k*k statically shifted bf16 copies into a
                # pre-allocated scratch (aligned 8-row block stores).  State is
                # already ReLU'd, so taps are plain copies (no VPU work here).
                for ky in range(k):
                    for kx in range(k):
                        t = ky * k + kx
                        s0 = frame_off + (ky * d - p) * Wp + (kx * d - p)
                        col_ref[t * C_pad:(t + 1) * C_pad, :] = (
                            st_ref[:, s0:s0 + Npp_pad])
                stack = col_ref[0:kkC, :]                       # (kkC, Npp_pad) bf16
            wk = w_ref[:, col_off[i]:col_off[i] + kkC]          # (C_pad, kkC) bf16
            # Conv = one MXU matmul per op, f32 accumulate.
            acc = jnp.dot(wk, stack, preferred_element_type=jnp.float32)
            # Folded BatchNorm (f32 epilogue).
            y = acc * scale_ref[i] + shift_ref[i]               # (C_pad, Npp_pad)
            if i + 1 < n_ops:
                # Fuse the *next* op's ReLU + re-zero the border (it keeps
                # acting as the next conv's zero padding), store bf16.
                st_ref[:, frame_off:frame_off + Npp_pad] = (
                    jnp.maximum(y, 0.0) * mask).astype(jnp.bfloat16)
            else:
                # Final op: module ends with BN (no ReLU); wrapper slices the
                # interior so the border needs no masking.  Lane-dense store.
                o_ref[0] = y

    return kernel


def cell_chain2_forward(params, config, x_nchw):
    """Fused forward: preprocess1 + sequential MixedOp chain, one pallas_call."""
    B, C, H, W = x_nchw.shape
    ops = [(1, 1)] + [(int(k), int(d)) for (k, d) in config]   # preprocess first
    all_p = [params["pre"]] + list(params["ops"])
    n_ops = len(ops)

    C_pad = max(8, -(-C // 8) * 8)                   # sublane-group aligned channels
    P = max(d * (k - 1) // 2 for k, d in ops)        # max padding in the chain
    Hp, Wp = H + 2 * P, W + 2 * P
    Npp = Hp * Wp
    Npp_pad = -(-Npp // 128) * 128                   # lane-dense flat spatial dim
    S = P * Wp + P                                   # max flat tap shift
    frame_off = (-(-S // 128) * 128) if S > 0 else 0  # aligned frame start / slack
    W_state = 2 * frame_off + Npp_pad                # frame + zero slack both sides

    # Activations: NCHW -> zero-padded (channels to C_pad, spatial by P),
    # channel-major, flat-spatial, lane-padded.
    xpad = jnp.pad(x_nchw, ((0, 0), (0, C_pad - C), (P, P), (P, P)))
    xpad = xpad.reshape(B, C_pad, Npp)
    xpad = jnp.pad(xpad, ((0, 0), (0, 0), (0, Npp_pad - Npp))).astype(jnp.float32)

    # Pack all conv weights / folded-BN params once (stay VMEM-resident).
    # Each op's column block is zero-padded to a 128 multiple => every per-op
    # weight slice starts on a lane boundary.
    w_blocks, scales, shifts, col_off = [], [], [], []
    off = 0
    for p, (k, d) in zip(all_p, ops):
        kkC = k * k * C_pad
        # (C, C, k, k) -> zero-pad channels -> (C_pad, k, k, C_pad) -> (C_pad, kkC)
        w_p = jnp.zeros((C_pad, C_pad, k, k), jnp.float32).at[:C, :C].set(p["w"])
        wm = jnp.transpose(w_p, (0, 2, 3, 1)).reshape(C_pad, kkC)
        block_w = -(-kkC // 128) * 128
        w_blocks.append(jnp.pad(wm, ((0, 0), (0, block_w - kkC))))
        s, sh = fold_bn(p)
        scales.append(jnp.pad(s, (0, C_pad - C)))
        shifts.append(jnp.pad(sh, (0, C_pad - C)))   # shift=0 keeps pad chans zero
        col_off.append(off)
        off += block_w
    K_total = off
    w_all = jnp.concatenate(w_blocks, axis=1).astype(jnp.bfloat16)  # (C_pad, K_total)
    scale_all = jnp.stack(scales).reshape(n_ops, C_pad, 1).astype(jnp.float32)
    shift_all = jnp.stack(shifts).reshape(n_ops, C_pad, 1).astype(jnp.float32)

    # Interior mask: 1 inside the original HxW image, 0 on the padding border
    # and on the lane-padding tail.
    mask = jnp.zeros((Hp, Wp), jnp.float32).at[P:P + H, P:P + W].set(1.0)
    mask = jnp.pad(mask.reshape(1, Npp), ((0, 0), (0, Npp_pad - Npp)))

    kernel = make_chain_kernel(tuple(ops), tuple(col_off), C_pad, Wp, Npp_pad,
                               frame_off, W_state)

    kk_max = max(k * k for k, _ in ops)
    flops = int(sum(2 * B * Npp_pad * C_pad * (k * k * C_pad) for k, d in ops))
    bytes_accessed = int(xpad.size * 4 + w_all.size * 2 + scale_all.size * 4
                         + shift_all.size * 4 + mask.size * 4
                         + B * C_pad * Npp_pad * 4)

    out = pl.pallas_call(
        kernel,
        out_shape=jax.ShapeDtypeStruct((B, C_pad, Npp_pad), jnp.float32),
        grid_spec=pltpu.PrefetchScalarGridSpec(
            num_scalar_prefetch=0,
            grid=(B,),
            in_specs=[
                pl.BlockSpec((1, C_pad, Npp_pad), lambda b: (b, 0, 0)),   # acts
                pl.BlockSpec((C_pad, K_total), lambda b: (0, 0)),         # weights
                pl.BlockSpec((n_ops, C_pad, 1), lambda b: (0, 0, 0)),     # BN scale
                pl.BlockSpec((n_ops, C_pad, 1), lambda b: (0, 0, 0)),     # BN shift
                pl.BlockSpec((1, Npp_pad), lambda b: (0, 0)),             # mask
            ],
            out_specs=pl.BlockSpec((1, C_pad, Npp_pad), lambda b: (b, 0, 0)),
            scratch_shapes=[
                pltpu.VMEM((C_pad, W_state), jnp.bfloat16),          # ReLU'd state
                pltpu.VMEM((kk_max * C_pad, Npp_pad), jnp.bfloat16),  # im2col stack
            ]),
        compiler_params=pltpu.CompilerParams(
            dimension_semantics=("parallel",),
            vmem_limit_bytes=32 * 1024 * 1024),
        cost_estimate=pl.CostEstimate(flops=flops, transcendentals=0,
                                      bytes_accessed=bytes_accessed),
    )(xpad, w_all, scale_all, shift_all, mask)

    # Drop channel / lane padding and the spatial border; NCHW like PyTorch.
    out = out[:, :C, :Npp].reshape(B, C, Hp, Wp)
    return out[:, :, P:P + H, P:P + W]


# --------------------------- parameters / config --------------------------- #

def parse_primitive(primitive):
    parts = primitive.split("_")
    if "attention" in primitive:
        # TODO(synk): attention primitive body not defined in provided source.
        return parts[0], int(parts[1]), 1
    return parts[0], int(parts[1]), int(parts[2])


def init_relu_conv_bn(key, C, k, affine):
    kw, kg, kb, km, kv = jax.random.split(key, 5)
    fan_in = C * k * k
    w = jax.random.normal(kw, (C, C, k, k), jnp.float32) / jnp.sqrt(fan_in)
    if affine:
        gamma = 1.0 + 0.1 * jax.random.normal(kg, (C,), jnp.float32)
        beta = 0.1 * jax.random.normal(kb, (C,), jnp.float32)
    else:
        gamma = jnp.ones((C,), jnp.float32)
        beta = jnp.zeros((C,), jnp.float32)
    mean = 0.1 * jax.random.normal(km, (C,), jnp.float32)
    var = jax.random.uniform(kv, (C,), jnp.float32, minval=0.5, maxval=1.5)
    return {"w": w, "gamma": gamma, "beta": beta, "mean": mean, "var": var}


def fold_bn(p, eps=1e-5):
    scale = p["gamma"] / jnp.sqrt(p["var"] + eps)
    shift = p["beta"] - p["mean"] * scale
    return scale, shift


def build_cell_chain2(key, C, genotype):
    op_names, indices = zip(*genotype.normal)
    keys = jax.random.split(key, len(op_names) + 1)
    params = {"pre": init_relu_conv_bn(keys[0], C, 1, affine=True), "ops": []}
    config = []
    for i, name in enumerate(op_names):
        _, k, d = parse_primitive(name)
        params["ops"].append(init_relu_conv_bn(keys[i + 1], C, k, affine=False))
        config.append((k, d))
    return params, config, indices


# ------------------------------ pure-JAX ref ------------------------------- #

def _ref_relu_conv_bn(x_nhwc, w_oihw, scale, shift, k, d):
    xr = jnp.maximum(x_nhwc, 0.0)
    pad = d * (k - 1) // 2
    w_hwio = jnp.transpose(w_oihw, (2, 3, 1, 0))
    y = jax.lax.conv_general_dilated(
        xr, w_hwio, window_strides=(1, 1),
        padding=[(pad, pad), (pad, pad)], rhs_dilation=(d, d),
        dimension_numbers=("NHWC", "HWIO", "NHWC"),
        precision=jax.lax.Precision.HIGHEST)
    return y * scale.reshape(1, 1, 1, -1) + shift.reshape(1, 1, 1, -1)


def cell_chain2_ref(params, config, x_nchw):
    x = jnp.transpose(x_nchw, (0, 2, 3, 1))
    s, sh = fold_bn(params["pre"])
    x = _ref_relu_conv_bn(x, params["pre"]["w"], s, sh, 1, 1)
    for p, (k, d) in zip(params["ops"], config):
        s, sh = fold_bn(p)
        x = _ref_relu_conv_bn(x, p["w"], s, sh, k, d)
    return jnp.transpose(x, (0, 3, 1, 2))


# ----------------------------------- main ---------------------------------- #

if __name__ == "__main__":
    B, C, H, W = 2, 4, 16, 16
    genotype = Genotype(normal=[("conv_3_1", 0), ("conv_5_2", 0), ("conv_3_2", 0)])

    key = jax.random.PRNGKey(0)
    kx, kp = jax.random.split(key)
    x = jax.random.normal(kx, (B, C, H, W), jnp.float32)

    params, config, _indices = build_cell_chain2(kp, C, genotype)

    fwd = jax.jit(lambda xx: cell_chain2_forward(params, config, xx))
    out = jax.block_until_ready(fwd(x))

    ref = jax.block_until_ready(cell_chain2_ref(params, config, x))
    # Tolerance pinned deliberately: kernel uses bf16 MXU operands with f32
    # accumulation across a 4-op chain; the reference is f32 Precision.HIGHEST.
    np.testing.assert_allclose(np.asarray(out), np.asarray(ref),
                               rtol=5e-2, atol=5e-2)

    print("KERNEL_OK")
</pallas_src>

<mosaic_0001>
module attributes {stable_mosaic.version = 11 : i64} {
  func.func @kernel(%arg0: i32, %arg1: memref<1x8x640xf32, #tpu.memory_space<vmem>>, %arg2: memref<8x640xbf16, #tpu.memory_space<vmem>>, %arg3: memref<4x8x1xf32, #tpu.memory_space<vmem>>, %arg4: memref<4x8x1xf32, #tpu.memory_space<vmem>>, %arg5: memref<1x640xf32, #tpu.memory_space<vmem>>, %arg6: memref<1x8x640xf32, #tpu.memory_space<vmem>>, %arg7: memref<8x896xbf16, #tpu.memory_space<vmem>>, %arg8: memref<200x640xbf16, #tpu.memory_space<vmem>>) attributes {dimension_semantics = [#tpu.dimension_semantics<parallel>], iteration_bounds = array<i64: 2>, scalar_prefetch = 0 : i64, scratch_operands = 2 : i64, tpu.core_type = #tpu.core_type<tc>, window_params = [{transform_indices = @transform_0, window_bounds = array<i64: 1, 8, 640>}, {pipeline_mode = #tpu.pipeline_mode<synchronous>, transform_indices = @transform_1, window_bounds = array<i64: 8, 640>}, {pipeline_mode = #tpu.pipeline_mode<synchronous>, transform_indices = @transform_2, window_bounds = array<i64: 4, 8, 1>}, {pipeline_mode = #tpu.pipeline_mode<synchronous>, transform_indices = @transform_3, window_bounds = array<i64: 4, 8, 1>}, {pipeline_mode = #tpu.pipeline_mode<synchronous>, transform_indices = @transform_4, window_bounds = array<i64: 1, 640>}, {transform_indices = @transform_5, window_bounds = array<i64: 1, 8, 640>}]} {
    %cst = arith.constant 0.000000e+00 : bf16
    %0 = vector.broadcast %cst : bf16 to vector<8x128xbf16>
    %c0 = arith.constant 0 : index
    %c0_0 = arith.constant 0 : index
    %1 = vector.load %arg7[%c0, %c0_0] : memref<8x896xbf16, #tpu.memory_space<vmem>>, vector<8x128xbf16>
    tpu.vector_store %arg7[%c0, %c0_0], %0 {strides = array<i32>} : memref<8x896xbf16, #tpu.memory_space<vmem>>, vector<8x128xbf16>,
    %cst_1 = arith.constant 0.000000e+00 : bf16
    %2 = vector.broadcast %cst_1 : bf16 to vector<8x128xbf16>
    %c0_2 = arith.constant 0 : index
    %c768 = arith.constant 768 : index
    %3 = vector.load %arg7[%c0_2, %c768] : memref<8x896xbf16, #tpu.memory_space<vmem>>, vector<8x128xbf16>
    tpu.vector_store %arg7[%c0_2, %c768], %2 {strides = array<i32>} : memref<8x896xbf16, #tpu.memory_space<vmem>>, vector<8x128xbf16>,
    %c0_3 = arith.constant 0 : index
    %c0_4 = arith.constant 0 : index
    %c0_5 = arith.constant 0 : index
    %4 = vector.load %arg1[%c0_3, %c0_4, %c0_5] : memref<1x8x640xf32, #tpu.memory_space<vmem>>, vector<1x8x640xf32>
    %5 = vector.shape_cast %4 : vector<1x8x640xf32> to vector<8x640xf32>
    %cst_6 = arith.constant 0.000000e+00 : f32
    %6 = vector.broadcast %cst_6 : f32 to vector<8x640xf32>
    %7 = arith.maximumf %5, %6 : vector<8x640xf32>
    %8 = arith.truncf %7 : vector<8x640xf32> to vector<8x640xbf16>
    %c0_7 = arith.constant 0 : index
    %c128 = arith.constant 128 : index
    %9 = vector.load %arg7[%c0_7, %c128] : memref<8x896xbf16, #tpu.memory_space<vmem>>, vector<8x640xbf16>
    tpu.vector_store %arg7[%c0_7, %c128], %8 {strides = array<i32>} : memref<8x896xbf16, #tpu.memory_space<vmem>>, vector<8x640xbf16>,
    %c0_8 = arith.constant 0 : index
    %c0_9 = arith.constant 0 : index
    %10 = vector.load %arg5[%c0_8, %c0_9] : memref<1x640xf32, #tpu.memory_space<vmem>>, vector<1x640xf32>
    %c0_10 = arith.constant 0 : index
    %c128_11 = arith.constant 128 : index
    %11 = vector.load %arg7[%c0_10, %c128_11] : memref<8x896xbf16, #tpu.memory_space<vmem>>, vector<8x640xbf16>
    %c0_12 = arith.constant 0 : index
    %c0_13 = arith.constant 0 : index
    %12 = vector.load %arg2[%c0_12, %c0_13] : memref<8x640xbf16, #tpu.memory_space<vmem>>, vector<8x8xbf16>
    %cst_14 = arith.constant dense<0.000000e+00> : vector<8x640xf32>
    %13 = tpu.matmul %12, %11, %cst_14 {dimension_numbers = #tpu.dot_dimension_numbers<[1], [0], [0], [1], [0, 0, 1, 1], [], []>} : vector<8x8xbf16>, vector<8x640xbf16>, vector<8x640xf32> -> vector<8x640xf32>
    %c0_15 = arith.constant 0 : index
    %c0_16 = arith.constant 0 : index
    %c0_17 = arith.constant 0 : index
    %14 = vector.load %arg3[%c0_15, %c0_16, %c0_17] : memref<4x8x1xf32, #tpu.memory_space<vmem>>, vector<1x8x1xf32>
    %15 = vector.shape_cast %14 : vector<1x8x1xf32> to vector<8x1xf32>
    %16 = vector.broadcast %15 : vector<8x1xf32> to vector<8x640xf32>
    %17 = arith.mulf %13, %16 : vector<8x640xf32>
    %c0_18 = arith.constant 0 : index
    %c0_19 = arith.constant 0 : index
    %c0_20 = arith.constant 0 : index
    %18 = vector.load %arg4[%c0_18, %c0_19, %c0_20] : memref<4x8x1xf32, #tpu.memory_space<vmem>>, vector<1x8x1xf32>
    %19 = vector.shape_cast %18 : vector<1x8x1xf32> to vector<8x1xf32>
    %20 = vector.broadcast %19 : vector<8x1xf32> to vector<8x640xf32>
    %21 = arith.addf %17, %20 : vector<8x640xf32>
    %cst_21 = arith.constant 0.000000e+00 : f32
    %22 = vector.broadcast %cst_21 : f32 to vector<8x640xf32>
    %23 = arith.maximumf %21, %22 : vector<8x640xf32>
    %24 = vector.broadcast %10 : vector<1x640xf32> to vector<8x640xf32>
    %25 = arith.mulf %23, %24 : vector<8x640xf32>
    %26 = arith.truncf %25 : vector<8x640xf32> to vector<8x640xbf16>
    %c0_22 = arith.constant 0 : index
    %c128_23 = arith.constant 128 : index
    %27 = vector.load %arg7[%c0_22, %c128_23] : memref<8x896xbf16, #tpu.memory_space<vmem>>, vector<8x640xbf16>
    tpu.vector_store %arg7[%c0_22, %c128_23], %26 {strides = array<i32>} : memref<8x896xbf16, #tpu.memory_space<vmem>>, vector<8x640xbf16>,
    %c0_24 = arith.constant 0 : index
    %c103 = arith.constant 103 : index
    %28 = vector.load %arg7[%c0_24, %c103] : memref<8x896xbf16, #tpu.memory_space<vmem>>, vector<8x640xbf16>
    %c0_25 = arith.constant 0 : index
    %c0_26 = arith.constant 0 : index
    %29 = vector.load %arg8[%c0_25, %c0_26] : memref<200x640xbf16, #tpu.memory_space<vmem>>, vector<8x640xbf16>
    tpu.vector_store %arg8[%c0_25, %c0_26], %28 {strides = array<i32>} : memref<200x640xbf16, #tpu.memory_space<vmem>>, vector<8x640xbf16>,
    %c0_27 = arith.constant 0 : index
    %c104 = arith.constant 104 : index
    %30 = vector.load %arg7[%c0_27, %c104] : memref<8x896xbf16, #tpu.memory_space<vmem>>, vector<8x640xbf16>
    %c8 = arith.constant 8 : index
    %c0_28 = arith.constant 0 : index
    %31 = vector.load %arg8[%c8, %c0_28] : memref<200x640xbf16, #tpu.memory_space<vmem>>, vector<8x640xbf16>
    tpu.vector_store %arg8[%c8, %c0_28], %30 {strides = array<i32>} : memref<200x640xbf16, #tpu.memory_space<vmem>>, vector<8x640xbf16>,
    %c0_29 = arith.constant 0 : index
    %c105 = arith.constant 105 : index
    %32 = vector.load %arg7[%c0_29, %c105] : memref<8x896xbf16, #tpu.memory_space<vmem>>, vector<8x640xbf16>
    %c16 = arith.constant 16 : index
    %c0_30 = arith.constant 0 : index
    %33 = vector.load %arg8[%c16, %c0_30] : memref<200x640xbf16, #tpu.memory_space<vmem>>, vector<8x640xbf16>
    tpu.vector_store %arg8[%c16, %c0_30], %32 {strides = array<i32>} : memref<200x640xbf16, #tpu.memory_space<vmem>>, vector<8x640xbf16>,
    %c0_31 = arith.constant 0 : index
    %c127 = arith.constant 127 : index
    %34 = vector.load %arg7[%c0_31, %c127] : memref<8x896xbf16, #tpu.memory_space<vmem>>, vector<8x640xbf16>
    %c24 = arith.constant 24 : index
    %c0_32 = arith.constant 0 : index
    %35 = vector.load %arg8[%c24, %c0_32] : memref<200x640xbf16, #tpu.memory_space<vmem>>, vector<8x640xbf16>
    tpu.vector_store %arg8[%c24, %c0_32], %34 {strides = array<i32>} : memref<200x640xbf16, #tpu.memory_space<vmem>>, vector<8x640xbf16>,
    %c0_33 = arith.constant 0 : index
    %c128_34 = arith.constant 128 : index
    %36 = vector.load %arg7[%c0_33, %c128_34] : memref<8x896xbf16, #tpu.memory_space<vmem>>, vector<8x640xbf16>
    %c32 = arith.constant 32 : index
    %c0_35 = arith.constant 0 : index
    %37 = vector.load %arg8[%c32, %c0_35] : memref<200x640xbf16, #tpu.memory_space<vmem>>, vector<8x640xbf16>
    tpu.vector_store %arg8[%c32, %c0_35], %36 {strides = array<i32>} : memref<200x640xbf16, #tpu.memory_space<vmem>>, vector<8x640xbf16>,
    %c0_36 = arith.constant 0 : index
    %c129 = arith.constant 129 : index
    %38 = vector.load %arg7[%c0_36, %c129] : memref<8x896xbf16, #tpu.memory_space<vmem>>, vector<8x640xbf16>
    %c40 = arith.constant 40 : index
    %c0_37 = arith.constant 0 : index
    %39 = vector.load %arg8[%c40, %c0_37] : memref<200x640xbf16, #tpu.memory_space<vmem>>, vector<8x640xbf16>
    tpu.vector_store %arg8[%c40, %c0_37], %38 {strides = array<i32>} : memref<200x640xbf16, #tpu.memory_space<vmem>>, vector<8x640xbf16>,
    %c0_38 = arith.constant 0 : index
    %c151 = arith.constant 151 : index
    %40 = vector.load %arg7[%c0_38, %c151] : memref<8x896xbf16, #tpu.memory_space<vmem>>, vector<8x640xbf16>
    %c48 = arith.constant 48 : index
    %c0_39 = arith.constant 0 : index
    %41 = vector.load %arg8[%c48, %c0_39] : memref<200x640xbf16, #tpu.memory_space<vmem>>, vector<8x640xbf16>
    tpu.vector_store %arg8[%c48, %c0_39], %40 {strides = array<i32>} : memref<200x640xbf16, #tpu.memory_space<vmem>>, vector<8x640xbf16>,
    %c0_40 = arith.constant 0 : index
    %c152 = arith.constant 152 : index
    %42 = vector.load %arg7[%c0_40, %c152] : memref<8x896xbf16, #tpu.memory_space<vmem>>, vector<8x640xbf16>
    %c56 = arith.constant 56 : index
    %c0_41 = arith.constant 0 : index
    %43 = vector.load %arg8[%c56, %c0_41] : memref<200x640xbf16, #tpu.memory_space<vmem>>, vector<8x640xbf16>
    tpu.vector_store %arg8[%c56, %c0_41], %42 {strides = array<i32>} : memref<200x640xbf16, #tpu.memory_space<vmem>>, vector<8x640xbf16>,
    %c0_42 = arith.constant 0 : index
    %c153 = arith.constant 153 : index
    %44 = vector.load %arg7[%c0_42, %c153] : memref<8x896xbf16, #tpu.memory_space<vmem>>, vector<8x640xbf16>
    %c64 = arith.constant 64 : index
    %c0_43 = arith.constant 0 : index
    %45 = vector.load %arg8[%c64, %c0_43] : memref<200x640xbf16, #tpu.memory_space<vmem>>, vector<8x640xbf16>
    tpu.vector_store %arg8[%c64, %c0_43], %44 {strides = array<i32>} : memref<200x640xbf16, #tpu.memory_space<vmem>>, vector<8x640xbf16>,
    %c0_44 = arith.constant 0 : index
    %c0_45 = arith.constant 0 : index
    %46 = vector.load %arg8[%c0_44, %c0_45] : memref<200x640xbf16, #tpu.memory_space<vmem>>, vector<72x640xbf16>
    %c0_46 = arith.constant 0 : index
    %c128_47 = arith.constant 128 : index
    %47 = vector.load %arg2[%c0_46, %c128_47] : memref<8x640xbf16, #tpu.memory_space<vmem>>, vector<8x72xbf16>
    %cst_48 = arith.constant dense<0.000000e+00> : vector<8x640xf32>
    %48 = tpu.matmul %47, %46, %cst_48 {dimension_numbers = #tpu.dot_dimension_numbers<[1], [0], [0], [1], [0, 0, 1, 1], [], []>} : vector<8x72xbf16>, vector<72x640xbf16>, vector<8x640xf32> -> vector<8x640xf32>
    %c1 = arith.constant 1 : index
    %c0_49 = arith.constant 0 : index
    %c0_50 = arith.constant 0 : index
    %49 = vector.load %arg3[%c1, %c0_49, %c0_50] : memref<4x8x1xf32, #tpu.memory_space<vmem>>, vector<1x8x1xf32>
    %50 = vector.shape_cast %49 : vector<1x8x1xf32> to vector<8x1xf32>
    %51 = vector.broadcast %50 : vector<8x1xf32> to vector<8x640xf32>
    %52 = arith.mulf %48, %51 : vector<8x640xf32>
    %c1_51 = arith.constant 1 : index
    %c0_52 = arith.constant 0 : index
    %c0_53 = arith.constant 0 : index
    %53 = vector.load %arg4[%c1_51, %c0_52, %c0_53] : memref<4x8x1xf32, #tpu.memory_space<vmem>>, vector<1x8x1xf32>
    %54 = vector.shape_cast %53 : vector<1x8x1xf32> to vector<8x1xf32>
    %55 = vector.broadcast %54 : vector<8x1xf32> to vector<8x640xf32>
    %56 = arith.addf %52, %55 : vector<8x640xf32>
    %cst_54 = arith.constant 0.000000e+00 : f32
    %57 = vector.broadcast %cst_54 : f32 to vector<8x640xf32>
    %58 = arith.maximumf %56, %57 : vector<8x640xf32>
    %59 = vector.broadcast %10 : vector<1x640xf32> to vector<8x640xf32>
    %60 = arith.mulf %58, %59 : vector<8x640xf32>
    %61 = arith.truncf %60 : vector<8x640xf32> to vector<8x640xbf16>
    %c0_55 = arith.constant 0 : index
    %c128_56 = arith.constant 128 : index
    %62 = vector.load %arg7[%c0_55, %c128_56] : memref<8x896xbf16, #tpu.memory_space<vmem>>, vector<8x640xbf16>
    tpu.vector_store %arg7[%c0_55, %c128_56], %61 {strides = array<i32>} : memref<8x896xbf16, #tpu.memory_space<vmem>>, vector<8x640xbf16>,
    %c0_57 = arith.constant 0 : index
    %c28 = arith.constant 28 : index
    %63 = vector.load %arg7[%c0_57, %c28] : memref<8x896xbf16, #tpu.memory_space<vmem>>, vector<8x640xbf16>
    %c0_58 = arith.constant 0 : index
    %c0_59 = arith.constant 0 : index
    %64 = vector.load %arg8[%c0_58, %c0_59] : memref<200x640xbf16, #tpu.memory_space<vmem>>, vector<8x640xbf16>
    tpu.vector_store %arg8[%c0_58, %c0_59], %63 {strides = array<i32>} : memref<200x640xbf16, #tpu.memory_space<vmem>>, vector<8x640xbf16>,
    %c0_60 = arith.constant 0 : index
    %c30 = arith.constant 30 : index
    %65 = vector.load %arg7[%c0_60, %c30] : memref<8x896xbf16, #tpu.memory_space<vmem>>, vector<8x640xbf16>
    %c8_61 = arith.constant 8 : index
    %c0_62 = arith.constant 0 : index
    %66 = vector.load %arg8[%c8_61, %c0_62] : memref<200x640xbf16, #tpu.memory_space<vmem>>, vector<8x640xbf16>
    tpu.vector_store %arg8[%c8_61, %c0_62], %65 {strides = array<i32>} : memref<200x640xbf16, #tpu.memory_space<vmem>>, vector<8x640xbf16>,
    %c0_63 = arith.constant 0 : index
    %c32_64 = arith.constant 32 : index
    %67 = vector.load %arg7[%c0_63, %c32_64] : memref<8x896xbf16, #tpu.memory_space<vmem>>, vector<8x640xbf16>
    %c16_65 = arith.constant 16 : index
    %c0_66 = arith.constant 0 : index
    %68 = vector.load %arg8[%c16_65, %c0_66] : memref<200x640xbf16, #tpu.memory_space<vmem>>, vector<8x640xbf16>
    tpu.vector_store %arg8[%c16_65, %c0_66], %67 {strides = array<i32>} : memref<200x640xbf16, #tpu.memory_space<vmem>>, vector<8x640xbf16>,
    %c0_67 = arith.constant 0 : index
    %c34 = arith.constant 34 : index
    %69 = vector.load %arg7[%c0_67, %c34] : memref<8x896xbf16, #tpu.memory_space<vmem>>, vector<8x640xbf16>
    %c24_68 = arith.constant 24 : index
    %c0_69 = arith.constant 0 : index
    %70 = vector.load %arg8[%c24_68, %c0_69] : memref<200x640xbf16, #tpu.memory_space<vmem>>, vector<8x640xbf16>
    tpu.vector_store %arg8[%c24_68, %c0_69], %69 {strides = array<i32>} : memref<200x640xbf16, #tpu.memory_space<vmem>>, vector<8x640xbf16>,
    %c0_70 = arith.constant 0 : index
    %c36 = arith.constant 36 : index
    %71 = vector.load %arg7[%c0_70, %c36] : memref<8x896xbf16, #tpu.memory_space<vmem>>, vector<8x640xbf16>
    %c32_71 = arith.constant 32 : index
    %c0_72 = arith.constant 0 : index
    %72 = vector.load %arg8[%c32_71, %c0_72] : memref<200x640xbf16, #tpu.memory_space<vmem>>, vector<8x640xbf16>
    tpu.vector_store %arg8[%c32_71, %c0_72], %71 {strides = array<i32>} : memref<200x640xbf16, #tpu.memory_space<vmem>>, vector<8x640xbf16>,
    %c0_73 = arith.constant 0 : index
    %c76 = arith.constant 76 : index
    %73 = vector.load %arg7[%c0_73, %c76] : memref<8x896xbf16, #tpu.memory_space<vmem>>, vector<8x640xbf16>
    %c40_74 = arith.constant 40 : index
    %c0_75 = arith.constant 0 : index
    %74 = vector.load %arg8[%c40_74, %c0_75] : memref<200x640xbf16, #tpu.memory_space<vmem>>, vector<8x640xbf16>
    tpu.vector_store %arg8[%c40_74, %c0_75], %73 {strides = array<i32>} : memref<200x640xbf16, #tpu.memory_space<vmem>>, vector<8x640xbf16>,
    %c0_76 = arith.constant 0 : index
    %c78 = arith.constant 78 : index
    %75 = vector.load %arg7[%c0_76, %c78] : memref<8x896xbf16, #tpu.memory_space<vmem>>, vector<8x640xbf16>
    %c48_77 = arith.constant 48 : index
    %c0_78 = arith.constant 0 : index
    %76 = vector.load %arg8[%c48_77, %c0_78] : memref<200x640xbf16, #tpu.memory_space<vmem>>, vector<8x640xbf16>
    tpu.vector_store %arg8[%c48_77, %c0_78], %75 {strides = array<i32>} : memref<200x640xbf16, #tpu.memory_space<vmem>>, vector<8x640xbf16>,
    %c0_79 = arith.constant 0 : index
    %c80 = arith.constant 80 : index
    %77 = vector.load %arg7[%c0_79, %c80] : memref<8x896xbf16, #tpu.memory_space<vmem>>, vector<8x640xbf16>
    %c56_80 = arith.constant 56 : index
    %c0_81 = arith.constant 0 : index
    %78 = vector.load %arg8[%c56_80, %c0_81] : memref<200x640xbf16, #tpu.memory_space<vmem>>, vector<8x640xbf16>
    tpu.vector_store %arg8[%c56_80, %c0_81], %77 {strides = array<i32>} : memref<200x640xbf16, #tpu.memory_space<vmem>>, vector<8x640xbf16>,
    %c0_82 = arith.constant 0 : index
    %c82 = arith.constant 82 : index
    %79 = vector.load %arg7[%c0_82, %c82] : memref<8x896xbf16, #tpu.memory_space<vmem>>, vector<8x640xbf16>
    %c64_83 = arith.constant 64 : index
    %c0_84 = arith.constant 0 : index
    %80 = vector.load %arg8[%c64_83, %c0_84] : memref<200x640xbf16, #tpu.memory_space<vmem>>, vector<8x640xbf16>
    tpu.vector_store %arg8[%c64_83, %c0_84], %79 {strides = array<i32>} : memref<200x640xbf16, #tpu.memory_space<vmem>>, vector<8x640xbf16>,
    %c0_85 = arith.constant 0 : index
    %c84 = arith.constant 84 : index
    %81 = vector.load %arg7[%c0_85, %c84] : memref<8x896xbf16, #tpu.memory_space<vmem>>, vector<8x640xbf16>
    %c72 = arith.constant 72 : index
    %c0_86 = arith.constant 0 : index
    %82 = vector.load %arg8[%c72, %c0_86] : memref<200x640xbf16, #tpu.memory_space<vmem>>, vector<8x640xbf16>
    tpu.vector_store %arg8[%c72, %c0_86], %81 {strides = array<i32>} : memref<200x640xbf16, #tpu.memory_space<vmem>>, vector<8x640xbf16>,
    %c0_87 = arith.constant 0 : index
    %c124 = arith.constant 124 : index
    %83 = vector.load %arg7[%c0_87, %c124] : memref<8x896xbf16, #tpu.memory_space<vmem>>, vector<8x640xbf16>
    %c80_88 = arith.constant 80 : index
    %c0_89 = arith.constant 0 : index
    %84 = vector.load %arg8[%c80_88, %c0_89] : memref<200x640xbf16, #tpu.memory_space<vmem>>, vector<8x640xbf16>
    tpu.vector_store %arg8[%c80_88, %c0_89], %83 {strides = array<i32>} : memref<200x640xbf16, #tpu.memory_space<vmem>>, vector<8x640xbf16>,
    %c0_90 = arith.constant 0 : index
    %c126 = arith.constant 126 : index
    %85 = vector.load %arg7[%c0_90, %c126] : memref<8x896xbf16, #tpu.memory_space<vmem>>, vector<8x640xbf16>
    %c88 = arith.constant 88 : index
    %c0_91 = arith.constant 0 : index
    %86 = vector.load %arg8[%c88, %c0_91] : memref<200x640xbf16, #tpu.memory_space<vmem>>, vector<8x640xbf16>
    tpu.vector_store %arg8[%c88, %c0_91], %85 {strides = array<i32>} : memref<200x640xbf16, #tpu.memory_space<vmem>>, vector<8x640xbf16>,
    %c0_92 = arith.constant 0 : index
    %c128_93 = arith.constant 128 : index
    %87 = vector.load %arg7[%c0_92, %c128_93] : memref<8x896xbf16, #tpu.memory_space<vmem>>, vector<8x640xbf16>
    %c96 = arith.constant 96 : index
    %c0_94 = arith.constant 0 : index
    %88 = vector.load %arg8[%c96, %c0_94] : memref<200x640xbf16, #tpu.memory_space<vmem>>, vector<8x640xbf16>
    tpu.vector_store %arg8[%c96, %c0_94], %87 {strides = array<i32>} : memref<200x640xbf16, #tpu.memory_space<vmem>>, vector<8x640xbf16>,
    %c0_95 = arith.constant 0 : index
    %c130 = arith.constant 130 : index
    %89 = vector.load %arg7[%c0_95, %c130] : memref<8x896xbf16, #tpu.memory_space<vmem>>, vector<8x640xbf16>
    %c104_96 = arith.constant 104 : index
    %c0_97 = arith.constant 0 : index
    %90 = vector.load %arg8[%c104_96, %c0_97] : memref<200x640xbf16, #tpu.memory_space<vmem>>, vector<8x640xbf16>
    tpu.vector_store %arg8[%c104_96, %c0_97], %89 {strides = array<i32>} : memref<200x640xbf16, #tpu.memory_space<vmem>>, vector<8x640xbf16>,
    %c0_98 = arith.constant 0 : index
    %c132 = arith.constant 132 : index
    %91 = vector.load %arg7[%c0_98, %c132] : memref<8x896xbf16, #tpu.memory_space<vmem>>, vector<8x640xbf16>
    %c112 = arith.constant 112 : index
    %c0_99 = arith.constant 0 : index
    %92 = vector.load %arg8[%c112, %c0_99] : memref<200x640xbf16, #tpu.memory_space<vmem>>, vector<8x640xbf16>
    tpu.vector_store %arg8[%c112, %c0_99], %91 {strides = array<i32>} : memref<200x640xbf16, #tpu.memory_space<vmem>>, vector<8x640xbf16>,
    %c0_100 = arith.constant 0 : index
    %c172 = arith.constant 172 : index
    %93 = vector.load %arg7[%c0_100, %c172] : memref<8x896xbf16, #tpu.memory_space<vmem>>, vector<8x640xbf16>
    %c120 = arith.constant 120 : index
    %c0_101 = arith.constant 0 : index
    %94 = vector.load %arg8[%c120, %c0_101] : memref<200x640xbf16, #tpu.memory_space<vmem>>, vector<8x640xbf16>
    tpu.vector_store %arg8[%c120, %c0_101], %93 {strides = array<i32>} : memref<200x640xbf16, #tpu.memory_space<vmem>>, vector<8x640xbf16>,
    %c0_102 = arith.constant 0 : index
    %c174 = arith.constant 174 : index
    %95 = vector.load %arg7[%c0_102, %c174] : memref<8x896xbf16, #tpu.memory_space<vmem>>, vector<8x640xbf16>
    %c128_103 = arith.constant 128 : index
    %c0_104 = arith.constant 0 : index
    %96 = vector.load %arg8[%c128_103, %c0_104] : memref<200x640xbf16, #tpu.memory_space<vmem>>, vector<8x640xbf16>
    tpu.vector_store %arg8[%c128_103, %c0_104], %95 {strides = array<i32>} : memref<200x640xbf16, #tpu.memory_space<vmem>>, vector<8x640xbf16>,
    %c0_105 = arith.constant 0 : index
    %c176 = arith.constant 176 : index
    %97 = vector.load %arg7[%c0_105, %c176] : memref<8x896xbf16, #tpu.memory_space<vmem>>, vector<8x640xbf16>
    %c136 = arith.constant 136 : index
    %c0_106 = arith.constant 0 : index
    %98 = vector.load %arg8[%c136, %c0_106] : memref<200x640xbf16, #tpu.memory_space<vmem>>, vector<8x640xbf16>
    tpu.vector_store %arg8[%c136, %c0_106], %97 {strides = array<i32>} : memref<200x640xbf16, #tpu.memory_space<vmem>>, vector<8x640xbf16>,
    %c0_107 = arith.constant 0 : index
    %c178 = arith.constant 178 : index
    %99 = vector.load %arg7[%c0_107, %c178] : memref<8x896xbf16, #tpu.memory_space<vmem>>, vector<8x640xbf16>
    %c144 = arith.constant 144 : index
    %c0_108 = arith.constant 0 : index
    %100 = vector.load %arg8[%c144, %c0_108] : memref<200x640xbf16, #tpu.memory_space<vmem>>, vector<8x640xbf16>
    tpu.vector_store %arg8[%c144, %c0_108], %99 {strides = array<i32>} : memref<200x640xbf16, #tpu.memory_space<vmem>>, vector<8x640xbf16>,
    %c0_109 = arith.constant 0 : index
    %c180 = arith.constant 180 : index
    %101 = vector.load %arg7[%c0_109, %c180] : memref<8x896xbf16, #tpu.memory_space<vmem>>, vector<8x640xbf16>
    %c152_110 = arith.constant 152 : index
    %c0_111 = arith.constant 0 : index
    %102 = vector.load %arg8[%c152_110, %c0_111] : memref<200x640xbf16, #tpu.memory_space<vmem>>, vector<8x640xbf16>
    tpu.vector_store %arg8[%c152_110, %c0_111], %101 {strides = array<i32>} : memref<200x640xbf16, #tpu.memory_space<vmem>>, vector<8x640xbf16>,
    %c0_112 = arith.constant 0 : index
    %c220 = arith.constant 220 : index
    %103 = vector.load %arg7[%c0_112, %c220] : memref<8x896xbf16, #tpu.memory_space<vmem>>, vector<8x640xbf16>
    %c160 = arith.constant 160 : index
    %c0_113 = arith.constant 0 : index
    %104 = vector.load %arg8[%c160, %c0_113] : memref<200x640xbf16, #tpu.memory_space<vmem>>, vector<8x640xbf16>
    tpu.vector_store %arg8[%c160, %c0_113], %103 {strides = array<i32>} : memref<200x640xbf16, #tpu.memory_space<vmem>>, vector<8x640xbf16>,
    %c0_114 = arith.constant 0 : index
    %c222 = arith.constant 222 : index
    %105 = vector.load %arg7[%c0_114, %c222] : memref<8x896xbf16, #tpu.memory_space<vmem>>, vector<8x640xbf16>
    %c168 = arith.constant 168 : index
    %c0_115 = arith.constant 0 : index
    %106 = vector.load %arg8[%c168, %c0_115] : memref<200x640xbf16, #tpu.memory_space<vmem>>, vector<8x640xbf16>
    tpu.vector_store %arg8[%c168, %c0_115], %105 {strides = array<i32>} : memref<200x640xbf16, #tpu.memory_space<vmem>>, vector<8x640xbf16>,
    %c0_116 = arith.constant 0 : index
    %c224 = arith.constant 224 : index
    %107 = vector.load %arg7[%c0_116, %c224] : memref<8x896xbf16, #tpu.memory_space<vmem>>, vector<8x640xbf16>
    %c176_117 = arith.constant 176 : index
    %c0_118 = arith.constant 0 : index
    %108 = vector.load %arg8[%c176_117, %c0_118] : memref<200x640xbf16, #tpu.memory_space<vmem>>, vector<8x640xbf16>
    tpu.vector_store %arg8[%c176_117, %c0_118], %107 {strides = array<i32>} : memref<200x640xbf16, #tpu.memory_space<vmem>>, vector<8x640xbf16>,
    %c0_119 = arith.constant 0 : index
    %c226 = arith.constant 226 : index
    %109 = vector.load %arg7[%c0_119, %c226] : memref<8x896xbf16, #tpu.memory_space<vmem>>, vector<8x640xbf16>
    %c184 = arith.constant 184 : index
    %c0_120 = arith.constant 0 : index
    %110 = vector.load %arg8[%c184, %c0_120] : memref<200x640xbf16, #tpu.memory_space<vmem>>, vector<8x640xbf16>
    tpu.vector_store %arg8[%c184, %c0_120], %109 {strides = array<i32>} : memref<200x640xbf16, #tpu.memory_space<vmem>>, vector<8x640xbf16>,
    %c0_121 = arith.constant 0 : index
    %c228 = arith.constant 228 : index
    %111 = vector.load %arg7[%c0_121, %c228] : memref<8x896xbf16, #tpu.memory_space<vmem>>, vector<8x640xbf16>
    %c192 = arith.constant 192 : index
    %c0_122 = arith.constant 0 : index
    %112 = vector.load %arg8[%c192, %c0_122] : memref<200x640xbf16, #tpu.memory_space<vmem>>, vector<8x640xbf16>
    tpu.vector_store %arg8[%c192, %c0_122], %111 {strides = array<i32>} : memref<200x640xbf16, #tpu.memory_space<vmem>>, vector<8x640xbf16>,
    %c0_123 = arith.constant 0 : index
    %c0_124 = arith.constant 0 : index
    %113 = vector.load %arg8[%c0_123, %c0_124] : memref<200x640xbf16, #tpu.memory_space<vmem>>, vector<200x640xbf16>
    %c0_125 = arith.constant 0 : index
    %c256 = arith.constant 256 : index
    %114 = vector.load %arg2[%c0_125, %c256] : memref<8x640xbf16, #tpu.memory_space<vmem>>, vector<8x200xbf16>
    %cst_126 = arith.constant dense<0.000000e+00> : vector<8x640xf32>
    %115 = tpu.matmul %114, %113, %cst_126 {dimension_numbers = #tpu.dot_dimension_numbers<[1], [0], [0], [1], [0, 0, 1, 1], [], []>} : vector<8x200xbf16>, vector<200x640xbf16>, vector<8x640xf32> -> vector<8x640xf32>
    %c2 = arith.constant 2 : index
    %c0_127 = arith.constant 0 : index
    %c0_128 = arith.constant 0 : index
    %116 = vector.load %arg3[%c2, %c0_127, %c0_128] : memref<4x8x1xf32, #tpu.memory_space<vmem>>, vector<1x8x1xf32>
    %117 = vector.shape_cast %116 : vector<1x8x1xf32> to vector<8x1xf32>
    %118 = vector.broadcast %117 : vector<8x1xf32> to vector<8x640xf32>
    %119 = arith.mulf %115, %118 : vector<8x640xf32>
    %c2_129 = arith.constant 2 : index
    %c0_130 = arith.constant 0 : index
    %c0_131 = arith.constant 0 : index
    %120 = vector.load %arg4[%c2_129, %c0_130, %c0_131] : memref<4x8x1xf32, #tpu.memory_space<vmem>>, vector<1x8x1xf32>
    %121 = vector.shape_cast %120 : vector<1x8x1xf32> to vector<8x1xf32>
    %122 = vector.broadcast %121 : vector<8x1xf32> to vector<8x640xf32>
    %123 = arith.addf %119, %122 : vector<8x640xf32>
    %cst_132 = arith.constant 0.000000e+00 : f32
    %124 = vector.broadcast %cst_132 : f32 to vector<8x640xf32>
    %125 = arith.maximumf %123, %124 : vector<8x640xf32>
    %126 = vector.broadcast %10 : vector<1x640xf32> to vector<8x640xf32>
    %127 = arith.mulf %125, %126 : vector<8x640xf32>
    %128 = arith.truncf %127 : vector<8x640xf32> to vector<8x640xbf16>
    %c0_133 = arith.constant 0 : index
    %c128_134 = arith.constant 128 : index
    %129 = vector.load %arg7[%c0_133, %c128_134] : memref<8x896xbf16, #tpu.memory_space<vmem>>, vector<8x640xbf16>
    tpu.vector_store %arg7[%c0_133, %c128_134], %128 {strides = array<i32>} : memref<8x896xbf16, #tpu.memory_space<vmem>>, vector<8x640xbf16>,
    %c0_135 = arith.constant 0 : index
    %c78_136 = arith.constant 78 : index
    %130 = vector.load %arg7[%c0_135, %c78_136] : memref<8x896xbf16, #tpu.memory_space<vmem>>, vector<8x640xbf16>
    %c0_137 = arith.constant 0 : index
    %c0_138 = arith.constant 0 : index
    %131 = vector.load %arg8[%c0_137, %c0_138] : memref<200x640xbf16, #tpu.memory_space<vmem>>, vector<8x640xbf16>
    tpu.vector_store %arg8[%c0_137, %c0_138], %130 {strides = array<i32>} : memref<200x640xbf16, #tpu.memory_space<vmem>>, vector<8x640xbf16>,
    %c0_139 = arith.constant 0 : index
    %c80_140 = arith.constant 80 : index
    %132 = vector.load %arg7[%c0_139, %c80_140] : memref<8x896xbf16, #tpu.memory_space<vmem>>, vector<8x640xbf16>
    %c8_141 = arith.constant 8 : index
    %c0_142 = arith.constant 0 : index
    %133 = vector.load %arg8[%c8_141, %c0_142] : memref<200x640xbf16, #tpu.memory_space<vmem>>, vector<8x640xbf16>
    tpu.vector_store %arg8[%c8_141, %c0_142], %132 {strides = array<i32>} : memref<200x640xbf16, #tpu.memory_space<vmem>>, vector<8x640xbf16>,
    %c0_143 = arith.constant 0 : index
    %c82_144 = arith.constant 82 : index
    %134 = vector.load %arg7[%c0_143, %c82_144] : memref<8x896xbf16, #tpu.memory_space<vmem>>, vector<8x640xbf16>
    %c16_145 = arith.constant 16 : index
    %c0_146 = arith.constant 0 : index
    %135 = vector.load %arg8[%c16_145, %c0_146] : memref<200x640xbf16, #tpu.memory_space<vmem>>, vector<8x640xbf16>
    tpu.vector_store %arg8[%c16_145, %c0_146], %134 {strides = array<i32>} : memref<200x640xbf16, #tpu.memory_space<vmem>>, vector<8x640xbf16>,
    %c0_147 = arith.constant 0 : index
    %c126_148 = arith.constant 126 : index
    %136 = vector.load %arg7[%c0_147, %c126_148] : memref<8x896xbf16, #tpu.memory_space<vmem>>, vector<8x640xbf16>
    %c24_149 = arith.constant 24 : index
    %c0_150 = arith.constant 0 : index
    %137 = vector.load %arg8[%c24_149, %c0_150] : memref<200x640xbf16, #tpu.memory_space<vmem>>, vector<8x640xbf16>
    tpu.vector_store %arg8[%c24_149, %c0_150], %136 {strides = array<i32>} : memref<200x640xbf16, #tpu.memory_space<vmem>>, vector<8x640xbf16>,
    %c0_151 = arith.constant 0 : index
    %c128_152 = arith.constant 128 : index
    %138 = vector.load %arg7[%c0_151, %c128_152] : memref<8x896xbf16, #tpu.memory_space<vmem>>, vector<8x640xbf16>
    %c32_153 = arith.constant 32 : index
    %c0_154 = arith.constant 0 : index
    %139 = vector.load %arg8[%c32_153, %c0_154] : memref<200x640xbf16, #tpu.memory_space<vmem>>, vector<8x640xbf16>
    tpu.vector_store %arg8[%c32_153, %c0_154], %138 {strides = array<i32>} : memref<200x640xbf16, #tpu.memory_space<vmem>>, vector<8x640xbf16>,
    %c0_155 = arith.constant 0 : index
    %c130_156 = arith.constant 130 : index
    %140 = vector.load %arg7[%c0_155, %c130_156] : memref<8x896xbf16, #tpu.memory_space<vmem>>, vector<8x640xbf16>
    %c40_157 = arith.constant 40 : index
    %c0_158 = arith.constant 0 : index
    %141 = vector.load %arg8[%c40_157, %c0_158] : memref<200x640xbf16, #tpu.memory_space<vmem>>, vector<8x640xbf16>
    tpu.vector_store %arg8[%c40_157, %c0_158], %140 {strides = array<i32>} : memref<200x640xbf16, #tpu.memory_space<vmem>>, vector<8x640xbf16>,
    %c0_159 = arith.constant 0 : index
    %c174_160 = arith.constant 174 : index
    %142 = vector.load %arg7[%c0_159, %c174_160] : memref<8x896xbf16, #tpu.memory_space<vmem>>, vector<8x640xbf16>
    %c48_161 = arith.constant 48 : index
    %c0_162 = arith.constant 0 : index
    %143 = vector.load %arg8[%c48_161, %c0_162] : memref<200x640xbf16, #tpu.memory_space<vmem>>, vector<8x640xbf16>
    tpu.vector_store %arg8[%c48_161, %c0_162], %142 {strides = array<i32>} : memref<200x640xbf16, #tpu.memory_space<vmem>>, vector<8x640xbf16>,
    %c0_163 = arith.constant 0 : index
    %c176_164 = arith.constant 176 : index
    %144 = vector.load %arg7[%c0_163, %c176_164] : memref<8x896xbf16, #tpu.memory_space<vmem>>, vector<8x640xbf16>
    %c56_165 = arith.constant 56 : index
    %c0_166 = arith.constant 0 : index
    %145 = vector.load %arg8[%c56_165, %c0_166] : memref<200x640xbf16, #tpu.memory_space<vmem>>, vector<8x640xbf16>
    tpu.vector_store %arg8[%c56_165, %c0_166], %144 {strides = array<i32>} : memref<200x640xbf16, #tpu.memory_space<vmem>>, vector<8x640xbf16>,
    %c0_167 = arith.constant 0 : index
    %c178_168 = arith.constant 178 : index
    %146 = vector.load %arg7[%c0_167, %c178_168] : memref<8x896xbf16, #tpu.memory_space<vmem>>, vector<8x640xbf16>
    %c64_169 = arith.constant 64 : index
    %c0_170 = arith.constant 0 : index
    %147 = vector.load %arg8[%c64_169, %c0_170] : memref<200x640xbf16, #tpu.memory_space<vmem>>, vector<8x640xbf16>
    tpu.vector_store %arg8[%c64_169, %c0_170], %146 {strides = array<i32>} : memref<200x640xbf16, #tpu.memory_space<vmem>>, vector<8x640xbf16>,
    %c0_171 = arith.constant 0 : index
    %c0_172 = arith.constant 0 : index
    %148 = vector.load %arg8[%c0_171, %c0_172] : memref<200x640xbf16, #tpu.memory_space<vmem>>, vector<72x640xbf16>
    %c0_173 = arith.constant 0 : index
    %c512 = arith.constant 512 : index
    %149 = vector.load %arg2[%c0_173, %c512] : memref<8x640xbf16, #tpu.memory_space<vmem>>, vector<8x72xbf16>
    %cst_174 = arith.constant dense<0.000000e+00> : vector<8x640xf32>
    %150 = tpu.matmul %149, %148, %cst_174 {dimension_numbers = #tpu.dot_dimension_numbers<[1], [0], [0], [1], [0, 0, 1, 1], [], []>} : vector<8x72xbf16>, vector<72x640xbf16>, vector<8x640xf32> -> vector<8x640xf32>
    %c3 = arith.constant 3 : index
    %c0_175 = arith.constant 0 : index
    %c0_176 = arith.constant 0 : index
    %151 = vector.load %arg3[%c3, %c0_175, %c0_176] : memref<4x8x1xf32, #tpu.memory_space<vmem>>, vector<1x8x1xf32>
    %152 = vector.shape_cast %151 : vector<1x8x1xf32> to vector<8x1xf32>
    %153 = vector.broadcast %152 : vector<8x1xf32> to vector<8x640xf32>
    %154 = arith.mulf %150, %153 : vector<8x640xf32>
    %c3_177 = arith.constant 3 : index
    %c0_178 = arith.constant 0 : index
    %c0_179 = arith.constant 0 : index
    %155 = vector.load %arg4[%c3_177, %c0_178, %c0_179] : memref<4x8x1xf32, #tpu.memory_space<vmem>>, vector<1x8x1xf32>
    %156 = vector.shape_cast %155 : vector<1x8x1xf32> to vector<8x1xf32>
    %157 = vector.broadcast %156 : vector<8x1xf32> to vector<8x640xf32>
    %158 = arith.addf %154, %157 : vector<8x640xf32>
    %c0_180 = arith.constant 0 : index
    %c0_181 = arith.constant 0 : index
    %c0_182 = arith.constant 0 : index
    %159 = vector.load %arg6[%c0_180, %c0_181, %c0_182] : memref<1x8x640xf32, #tpu.memory_space<vmem>>, vector<1x8x640xf32>
    %160 = vector.shape_cast %159 : vector<1x8x640xf32> to vector<8x640xf32>
    %161 = vector.shape_cast %158 : vector<8x640xf32> to vector<1x8x640xf32>
    tpu.vector_store %arg6[%c0_180, %c0_181, %c0_182], %161 {strides = array<i32>} : memref<1x8x640xf32, #tpu.memory_space<vmem>>, vector<1x8x640xf32>,
    return
  }
  func.func @transform_0(%arg0: i32) -> (i32, i32, i32) {
    %c0_i32 = arith.constant 0 : i32
    %c0_i32_0 = arith.constant 0 : i32
    %c0_i32_1 = arith.constant 0 : i32
    return %arg0, %c0_i32, %c0_i32_0 : i32, i32, i32
  }
  func.func @transform_1(%arg0: i32) -> (i32, i32) {
    %c0_i32 = arith.constant 0 : i32
    %c0_i32_0 = arith.constant 0 : i32
    %c0_i32_1 = arith.constant 0 : i32
    return %c0_i32, %c0_i32_0 : i32, i32
  }
  func.func @transform_2(%arg0: i32) -> (i32, i32, i32) {
    %c0_i32 = arith.constant 0 : i32
    %c0_i32_0 = arith.constant 0 : i32
    %c0_i32_1 = arith.constant 0 : i32
    %c0_i32_2 = arith.constant 0 : i32
    return %c0_i32, %c0_i32_0, %c0_i32_1 : i32, i32, i32
  }
  func.func @transform_3(%arg0: i32) -> (i32, i32, i32) {
    %c0_i32 = arith.constant 0 : i32
    %c0_i32_0 = arith.constant 0 : i32
    %c0_i32_1 = arith.constant 0 : i32
    %c0_i32_2 = arith.constant 0 : i32
    return %c0_i32, %c0_i32_0, %c0_i32_1 : i32, i32, i32
  }
  func.func @transform_4(%arg0: i32) -> (i32, i32) {
    %c0_i32 = arith.constant 0 : i32
    %c0_i32_0 = arith.constant 0 : i32
    %c0_i32_1 = arith.constant 0 : i32
    return %c0_i32, %c0_i32_0 : i32, i32
  }
  func.func @transform_5(%arg0: i32) -> (i32, i32, i32) {
    %c0_i32 = arith.constant 0 : i32
    %c0_i32_0 = arith.constant 0 : i32
    %c0_i32_1 = arith.constant 0 : i32
    return %arg0, %c0_i32, %c0_i32_0 : i32, i32, i32
  }
}

</mosaic_0001>

<bundles_post_ra>
// kernel: _lambda_.1
= control target key start
LH: loop header
LB: loop body
LE: loop exit
PB: predicated region body
PF: predicated region fallthrough
CT: control target
= control target key end

     0   :  { %s3314_s18 = smov 0   ;;  %s4145_s0 = inlined_call_operand.vmem [shape: f32[2,8,640], index: 0, kind: input, shape index: {}]   ;;  %s4146_s1 = inlined_call_operand.vmem [shape: bf16[8,640], index: 1, kind: input, shape index: {}]   ;;  %s4147_s2 = inlined_call_operand.vmem [shape: f32[4,8,1], index: 2, kind: input, shape index: {}]   ;;  %s4148_s3 = inlined_call_operand.vmem [shape: f32[4,8,1], index: 3, kind: input, shape index: {}]   ;;  %s4149_s4 = inlined_call_operand.vmem [shape: f32[1,640], index: 4, kind: input, shape index: {}]   ;;  %s4150_s5 = inlined_call_operand.vmem [shape: f32[2,8,640], index: 5, kind: output, shape index: {}]  }
   0x1 LB: > { %s2663_s19 = sadd.s32 4294967295, %s3249_s18   ;;  %p2667_p0 = scmp.ge.s32.totalorder %s3249_s18, 1  ;;  %s3249_s18 = sphi %s3314_s18, %s15_s18  }
   0x2   : > { %p187_p1 = scmp.lt.s32.totalorder %s3249_s18, 3 }
   0x4   : > { %p188_p2 = pnand %p2667_p0, %p187_p1 }
   0x5   : > { %p215_p3 = scmp.lt.s32.totalorder (!%p188_p2), %s2663_s19, 1  ;;  %s3252_s7 = smov (!%p188_p2), 103  }
   0x6   : > { %191 = sbr.rel (%p188_p2) target bundleno = 1291 (0x50b), region = 40  ;;  %s3253_s8 = smov (!%p188_p2), 105  }
   0x7   : > { %s3254_s9 = smov (!%p188_p2), 104   ;;  %s3255_s10 = smov (!%p188_p2), 127  }
   0x8   : > { %s3256_s11 = smov (!%p188_p2), 23   ;;  %s3257_s12 = smov (!%p188_p2), 1  }
   0x9   : > { %s3258_s13 = smov (!%p188_p2), 25   ;;  %s3259_s14 = smov (!%p188_p2), 24  }
   0xa   : > { %s3260_s24 = smov (!%p188_p2), 84   ;;  %s3262_s26 = smov (!%p188_p2), 124  }
   0xb   : > { %v3251_v0 = vmov 0   ;;  %v347_v1 = vld [vmem:[%s4147_s2] sm:$0xff]  ;;  %s4177_s19 = smov (!%p215_p3, %s2663_s19), 1  ;;  %vm266_vm0 = vcmask 1043456   ;;  %vm262_vm1 = vcmask 64512   ;;  %vm608_vm2 = vcmask 842752  }
   0xc   : > { %3240 = vset.pattern.permute.xlu0 %v3251_v0  ;;  %226 = vst [vmem:[#allocation2] sm:$0xf] %v3251_v0  ;;  %3241 = vset.pattern.permute.xlu2 %v3251_v0  ;;  %s4151_s22 = smul.u32 40, %s4177_s19  ;;  %v358_v2 = vld [vmem:[%s4148_s3] sm:$0xff]  ;;  %vm554_vm3 = vcmask 859136   ;;  %vm581_vm4 = vcmask 850944  }
   0xd   : > { %227 = vst [vmem:[#allocation2 + $0x18] sm:$0xf] %v3251_v0  ;;  %350 = vperm.xlu0 %3240, %v347_v1   ;;  %3242 = vset.pattern.permute.xlu1 %v3251_v0  ;;  %v248_v28 = vld [vmem:[%s4146_s1] sm:$0xf]  ;;  %vm527_vm5 = vcmask 1039360   ;;  %vm467_vm6 = vcmask 187392  }
   0xe   : > { %s219_s25 = scalar_lea.vmem %s4145_s0, %s4151_s22  ;;  %v244_v34 = vld [vmem:[%s4149_s4] sm:$0x1f]  ;;  %vm494_vm7 = vcmask 7168   ;;  %vm413_vm8 = vcmask 203776   ;;  %vm440_vm9 = vcmask 195584   ;;  %vm764_vm10 = vcmask 588800  }
   0xf   : > { %v228_v3 = vld [vmem:[%s219_s25] sm:$0xff]  ;;  %v229_v4 = vld [vmem:[%s219_s25 + $0x8] sm:$0xff]  ;;  %v230_v5 = vld [vmem:[%s219_s25 + $0x10] sm:$0xff]  ;;  %v3347_v41 = vperm.slane %v244_v34, 0  ;;  %v3349_v43 = vperm.slane %v244_v34, 1  ;;  %v3353_v56 = vperm.slane %v244_v34, 2 }
  0x10   : > { %v233_v6 = vmax.f32 %v228_v3, 0.0  ;;  %v234_v7 = vmax.f32 %v229_v4, 0.0  ;;  %v231_v8 = vld [vmem:[%s219_s25 + $0x18] sm:$0xff]  ;;  %v235_v9 = vmax.f32 %v230_v5, 0.0  ;;  %v232_v10 = vld [vmem:[%s219_s25 + $0x20] sm:$0xff]  ;;  %v3355_v58 = vperm.slane %v244_v34, 3 }
  0x11   : > { %v236_v11 = vmax.f32 %v231_v8, 0.0  ;;  %v237_v12 = vmax.f32 %v232_v10, 0.0  ;;  %v3362_v5 = vperm.slane %v244_v34, 4  ;;  %s3261_s25 = smov 126   ;;  %s3263_s27 = smov 28   ;;  %vm4156_vm11 = vcmask 1031168  }
  0x12   : > { %v238_v13 = vpack.c.bf16 %v234_v7, %v233_v6  ;;  %s3264_s28 = smov 2   ;;  %s3265_s29 = smov 4   ;;  %vm1531_vm12 = vcmask 228352   ;;  %vm1261_vm13 = vcmask 1014784   ;;  %vm1174_vm14 = vcmask 31744  }
  0x13   : > { %v239_v14 = vpack.c.bf16 %v236_v11, %v235_v9  ;;  %v240_v15 = vpack.c.bf16 %v237_v12, %v237_v12  ;;  %s3266_s30 = smov 44   ;;  %s3267_s6 = smov 50   ;;  %vm1066_vm15 = vcmask 408576  }
  0x14   : > { %v252_v16 = vunpack.c.l.b16 %v238_v13  ;;  %v253_v17 = vunpack.c.h.b16 %v238_v13  ;;  %s3276_s15 = smov 78   ;;  %s3277_s16 = smov 34  }
  0x15   : > { %361 = vperm.xlu0 %3240, %v358_v2   ;;  %v254_v18 = vunpack.c.l.b16 %v239_v14  ;;  %v255_v19 = vunpack.c.h.b16 %v239_v14  ;;  %243 = vst [vmem:[#allocation2 + $0x14] sm:$0xf] %v240_v15  ;;  %v2761_v15 = vld [vmem:[%s4148_s3 + $0x8] sm:$0xff]  ;;  %s3278_s17 = smov 94   ;;  %s4152_s20 = smov 98  }
  0x16   : > { %v257_v20 = vpack.c.b16 %v252_v16, %v252_v16  ;;  %v258_v21 = vpack.c.b16 %v253_v17, %v253_v17  ;;  %s3280_s21 = smov 76   ;;  %s3281_s23 = smov 80  }
  0x17   : > { %v259_v22 = vpack.c.b16 %v254_v18, %v254_v18  ;;  %v260_v23 = vpack.c.b16 %v255_v19, %v255_v19  ;;  %s3282_s22 = smov 100  }
  0x18   : > { %v268_v24 = vsel %vm266_vm0, %v257_v20, 0  ;;  %v271_v25 = vsel %vm266_vm0, %v258_v21, 0 }
  0x19   : > { %289 = vmatpush.bf16.msra.mxu0 %v268_v24  ;;  %302 = vmatpush.bf16.msra.mxu1 %v271_v25  ;;  %v274_v26 = vsel %vm266_vm0, %v259_v22, 0  ;;  %v277_v27 = vsel %vm266_vm0, %v260_v23, 0 }
  0x1a   : > { %315 = vmatpush.bf16.msra.mxu2 %v274_v26  ;;  %328 = vmatpush.bf16.msra.mxu3 %v277_v27 }
  0x1c   : > { %2670 = vmatmul.msk.bf16.vlgmr.msra.gmra.mxu0 %vm262_vm1, %v248_v28  ;;  %2671 = vmatmul.msk.bf16.vlgmr.msra.gmra.mxu1 %vm262_vm1, %v248_v28  ;;  %v247_v29 = vld [vmem:[#allocation2 + $0x14] sm:$0xf] }
  0x1d   : > { %2672 = vmatmul.msk.bf16.vlgmr.msra.gmra.mxu2 %vm262_vm1, %v248_v28  ;;  %2673 = vmatmul.msk.bf16.vlgmr.msra.gmra.mxu3 %vm262_vm1, %v248_v28  ;;  %v256_v30 = vunpack.c.l.b16 %v247_v29 }
  0x1f   : > { %v261_v31 = vpack.c.b16 %v256_v30, %v256_v30 }
  0x21   : > { %v280_v32 = vsel %vm266_vm0, %v261_v31, 0 }
  0x22   : > { %341 = vmatpush.bf16.msrb.mxu0 %v280_v32 }
  0x2c   : > { %2674 = vmatmul.msk.bf16.vlgmr.msrb.gmra.mxu0 %vm262_vm1, %v248_v28  ;;  %vm1288_vm1 = vcmask 687104  }
  0x7f   : > { %v351_v33 = vpop.permute.xlu0 %350 }
  0x87   : > { %v362_v39 = vpop.permute.xlu0 %361 }
  0x99   : > { %v291_v35 = vpop.f32.mrf.mxu0  ;;  %v304_v36 = vpop.f32.mrf.mxu1 }
  0x9a   : > { %v353_v37 = vmul.f32 %v351_v33, %v291_v35  ;;  %v354_v38 = vmul.f32 %v351_v33, %v304_v36 }
  0x9c   : > { %v364_v40 = vadd.f32 %v362_v39, %v353_v37  ;;  %v365_v42 = vadd.f32 %v362_v39, %v354_v38 }
  0x9e   : > { %v369_v44 = vmax.f32 %v364_v40, 0.0  ;;  %v370_v45 = vmax.f32 %v365_v42, 0.0 }
  0xa0   : > { %v385_v46 = vmul.f32 %v3347_v41, %v369_v44  ;;  %v386_v47 = vmul.f32 %v3349_v43, %v370_v45  ;;  %v317_v48 = vpop.f32.mrf.mxu2  ;;  %v330_v49 = vpop.f32.mrf.mxu3 }
  0xa1   : > { %v355_v50 = vmul.f32 %v351_v33, %v317_v48  ;;  %v356_v51 = vmul.f32 %v351_v33, %v330_v49  ;;  %v293_v52 = vpop.f32.mrf.mxu0  ;;  %v306_v53 = vpop.f32.mrf.mxu1 }
  0xa2   : > { %v390_v54 = vpack.c.bf16 %v386_v47, %v385_v46 }
  0xa3   : > { %v366_v55 = vadd.f32 %v362_v39, %v355_v50  ;;  %v367_v57 = vadd.f32 %v362_v39, %v356_v51 }
  0xa4   : > { %393 = vst [vmem:[#allocation2 + $0x4] sm:$0xff] %v390_v54  ;;  %598 = vrot.lane.b32.xlu1 %v390_v54, %s3252_s7  ;;  %544 = vrot.lane.b32.xlu2 %v390_v54, %s3253_s8 }
  0xa5   : > { %v371_v59 = vmax.f32 %v366_v55, 0.0  ;;  %v372_v60 = vmax.f32 %v367_v57, 0.0  ;;  %508 = vst [vmem:[#allocation3 + $0x50] sm:$0xff] %v390_v54 }
  0xa7   : > { %v387_v61 = vmul.f32 %v3353_v56, %v371_v59  ;;  %v388_v62 = vmul.f32 %v3355_v58, %v372_v60 }
  0xa8   : > { %v319_v63 = vpop.f32.mrf.mxu2  ;;  %v332_v0 = vpop.f32.mrf.mxu3 }
  0xa9   : > { %v391_v1 = vpack.c.bf16 %v388_v62, %v387_v61  ;;  %v343_v2 = vpop.f32.mrf.mxu0 }
  0xaa   : > { %v357_v3 = vmul.f32 %v351_v33, %v343_v2 }
  0xab   : > { %394 = vst [vmem:[#allocation2 + $0xc] sm:$0xff] %v391_v1  ;;  %546 = vrot.lane.b32.xlu0 %v391_v1, %s3253_s8  ;;  %v451_v11 = vld [vmem:[#allocation2] sm:$0xff] }
  0xac   : > { %v368_v4 = vadd.f32 %v362_v39, %v357_v3  ;;  %600 = vrot.lane.b32.xlu1 %v391_v1, %s3252_s7  ;;  %571 = vrot.lane.b32.xlu2 %v390_v54, %s3254_s9  ;;  %509 = vst [vmem:[#allocation3 + $0x58] sm:$0xff] %v391_v1 }
  0xae   : > { %v373_v6 = vmax.f32 %v368_v4, 0.0 }
  0xb0   : > { %v389_v7 = vmul.f32 %v3362_v5, %v373_v6 }
  0xb1   : > { %v345_v8 = vpop.f32.mrf.mxu0 }
  0xb2   : > { %v392_v9 = vpack.c.bf16 %v389_v7, %v389_v7  ;;  %v452_v13 = vld [vmem:[#allocation2 + $0x8] sm:$0xff] }
  0xb3   : > { %573 = vrot.lane.b32.xlu0 %v391_v1, %s3254_s9 }
  0xb4   : > { %395 = vst [vmem:[#allocation2 + $0x14] sm:$0xf] %v392_v9  ;;  %517 = vrot.lane.b32.xlu2 %v390_v54, %s3255_s10 }
  0xbb   : > { %v540_v10 = vld [vmem:[#allocation2 + $0x14] sm:$0xff]  ;;  %519 = vrot.lane.b32.xlu0 %v391_v1, %s3255_s10 }
  0xbc   : > { %v507_v12 = vld [vmem:[#allocation2 + $0x14] sm:$0xf]  ;;  %548 = vrot.lane.b32.xlu1 %v540_v10, %s3253_s8  ;;  %457 = vrot.lane.b32.xlu2 %v451_v11, %s3256_s11  ;;  %s3269_s8 = smov 32  }
  0xbd   : > { %510 = vst [vmem:[#allocation3 + $0x60] sm:$0xf] %v507_v12  ;;  %v453_v14 = vld [vmem:[#allocation2 + $0x10] sm:$0xff] }
  0xc3   : > { %459 = vrot.lane.b32.xlu0 %v452_v13, %s3256_s11 }
  0xc4   : > { %575 = vrot.lane.b32.xlu1 %v540_v10, %s3254_s9  ;;  %602 = vrot.lane.b32.xlu2 %v540_v10, %s3252_s7  ;;  %s3268_s7 = smov 46   ;;  %s3270_s9 = smov 92  }
  0xcb   : > { %486 = vrot.lane.b32.xlu0 %v452_v13, %s3257_s12 }
  0xcc   : > { %521 = vrot.lane.b32.xlu1 %v540_v10, %s3255_s10  ;;  %484 = vrot.lane.b32.xlu2 %v451_v11, %s3257_s12  ;;  %s3271_s10 = smov 48  }
  0xd3   : > { %404 = vrot.lane.b32.xlu0 %v452_v13, %s3258_s13 }
  0xd4   : > { %461 = vrot.lane.b32.xlu1 %v453_v14, %s3256_s11  ;;  %402 = vrot.lane.b32.xlu2 %v451_v11, %s3258_s13  ;;  %s3272_s11 = smov 52  }
  0xdb   : > { %432 = vrot.lane.b32.xlu0 %v452_v13, %s3259_s14 }
  0xdc   : > { %488 = vrot.lane.b32.xlu1 %v453_v14, %s3257_s12  ;;  %430 = vrot.lane.b32.xlu2 %v451_v11, %s3259_s14  ;;  %s3273_s12 = smov 96  }
  0xe3   : > { %864 = vperm.xlu0 %3240, %v2761_v15  }
  0xe4   : > { %406 = vrot.lane.b32.xlu1 %v453_v14, %s3258_s13  ;;  %s3274_s13 = smov 30  }
  0xec   : > { %434 = vrot.lane.b32.xlu1 %v453_v14, %s3259_s14  ;;  %s3275_s14 = smov 36  }
  0xfe   : > { %v545_v16 = vpop.permute.xlu2 %544 }
  0xff   : > { %v550_v22 = vrot.slane %v545_v16, 4 }
 0x106   : > { %v572_v17 = vpop.permute.xlu2 %571 }
 0x107   : > { %v577_v47 = vrot.slane %v572_v17, 4 }
 0x10e   : > { %v518_v18 = vpop.permute.xlu2 %517 }
 0x10f   : > { %v523_v57 = vrot.slane %v518_v18, 4 }
 0x116   : > { %v599_v19 = vpop.permute.xlu1 %598  ;;  %v3371_v20 = vpop.permute.xlu2 %457 }
 0x117   : > { %v604_v26 = vrot.slane %v599_v19, 4  ;;  %v463_v11 = vrot.slane %v3371_v20, 4 }
 0x11d   : > { %v547_v21 = vpop.permute.xlu0 %546 }
 0x11e   : > { %v551_v23 = vrot.slane %v547_v21, 4  ;;  %v601_v24 = vpop.permute.xlu1 %600  ;;  %v603_v25 = vpop.permute.xlu2 %602 }
 0x11f   : > { %v605_v27 = vrot.slane %v601_v24, 4  ;;  %v606_v28 = vrot.slane %v603_v25, 4 }
 0x120   : > { %v553_v29 = vsel %vm266_vm0, %v550_v22, %v551_v23  ;;  %v2717_v22 = vld [vmem:[#allocation3 + $0x50] sm:$0xf] }
 0x121   : > { %v607_v30 = vsel %vm266_vm0, %v604_v26, %v605_v27  ;;  %v610_v31 = vsel %vm266_vm0, %v605_v27, %v606_v28  ;;  %v612_v32 = vsel %vm608_vm2, %v603_v25, %v606_v28  ;;  %v555_v33 = vsel %vm554_vm3, %v545_v16, %v553_v29 }
 0x122   : > { %v609_v34 = vsel %vm608_vm2, %v599_v19, %v607_v30  ;;  %v611_v35 = vsel %vm608_vm2, %v601_v24, %v610_v31  ;;  %618 = vst [vmem:[#allocation3 + $0xb0] sm:$0xf] %v612_v32  ;;  %vm1120_vm2 = vcmask 375808  }
 0x123   : > { %562 = vst [vmem:[#allocation3 + $0x78] sm:$0xff] %v555_v33  ;;  %v714_v36 = vunpack.c.l.b16 %v609_v34  ;;  %v715_v37 = vunpack.c.h.b16 %v609_v34  ;;  %v716_v38 = vunpack.c.l.b16 %v611_v35  ;;  %v717_v39 = vunpack.c.h.b16 %v611_v35 }
 0x125   : > { %v574_v40 = vpop.permute.xlu0 %573  ;;  %v739_v42 = vpack.c.b16 %v714_v36, %v714_v36  ;;  %v740_v44 = vpack.c.b16 %v715_v37, %v715_v37  ;;  %v741_v45 = vpack.c.b16 %v716_v38, %v716_v38  ;;  %v742_v46 = vpack.c.b16 %v717_v39, %v717_v39 }
 0x126   : > { %v578_v48 = vrot.slane %v574_v40, 4  ;;  %v485_v14 = vpop.permute.xlu2 %484 }
 0x127   : > { %v769_v49 = vsel %vm266_vm0, %v739_v42, 0  ;;  %v772_v50 = vsel %vm266_vm0, %v740_v44, 0  ;;  %v775_v51 = vsel %vm266_vm0, %v741_v45, 0  ;;  %v778_v53 = vsel %vm266_vm0, %v742_v46, 0 }
 0x128   : > { %v580_v52 = vsel %vm266_vm0, %v577_v47, %v578_v48  ;;  %786 = vmatpush.bf16.msrb.mxu1 %v769_v49  ;;  %799 = vmatpush.bf16.msrb.mxu2 %v772_v50  ;;  %v490_v29 = vrot.slane %v485_v14, 4 }
 0x129   : > { %v582_v54 = vsel %vm581_vm4, %v572_v17, %v580_v52  ;;  %812 = vmatpush.bf16.msrb.mxu3 %v775_v51  ;;  %825 = vmatpush.bf16.msra.mxu0 %v778_v53  ;;  %v2725_v52 = vld [vmem:[#allocation3 + $0x58] sm:$0xf] }
 0x12a   : > { %589 = vst [vmem:[#allocation3 + $0x8c] sm:$0xff] %v582_v54  ;;  %v2737_v63 = vld [vmem:[#allocation3 + $0x78] sm:$0xf]  ;;  %v3113_v3 = vld [vmem:[#allocation3 + $0x7c] sm:$0xf] }
 0x12d   : > { %v520_v55 = vpop.permute.xlu0 %519 }
 0x12e   : > { %v549_v59 = vpop.permute.xlu1 %548  ;;  %v524_v60 = vrot.slane %v520_v55, 4  ;;  %v403_v33 = vpop.permute.xlu2 %402 }
 0x12f   : > { %v552_v61 = vrot.slane %v549_v59, 4  ;;  %v408_v47 = vrot.slane %v403_v33, 4 }
 0x130   : > { %v526_v62 = vsel %vm266_vm0, %v523_v57, %v524_v60 }
 0x131   : > { %v556_v0 = vsel %vm266_vm0, %v551_v23, %v552_v61  ;;  %v558_v1 = vsel %vm554_vm3, %v549_v59, %v552_v61  ;;  %v3115_v2 = vld [vmem:[#allocation3 + $0x88] sm:$0xf0]  ;;  %v2739_v4 = vld [vmem:[#allocation3 + $0x8c] sm:$0xf0]  ;;  %v528_v6 = vsel %vm527_vm5, %v518_v18, %v526_v62  ;;  %v3108_v23 = vld [vmem:[#allocation3 + $0x54] sm:$0xf] }
 0x132   : > { %v557_v7 = vsel %vm554_vm3, %v547_v21, %v556_v0  ;;  %564 = vst [vmem:[#allocation3 + $0x88] sm:$0xf] %v558_v1  ;;  %v2738_v8 = vor.u32 %v3115_v2, %v2737_v63  ;;  %v2742_v9 = vor.u32 %v3113_v3, %v2739_v4  ;;  %vm4155_vm3 = vcmask 15360  }
 0x133   : > { %563 = vst [vmem:[#allocation3 + $0x80] sm:$0xff] %v557_v7 }
 0x134   : > { %787 = vmatpush.bf16.msrb.mxu1 %v2738_v8  ;;  %800 = vmatpush.bf16.msrb.mxu2 %v2742_v9  ;;  %535 = vst [vmem:[#allocation3 + $0x64] sm:$0xff] %v528_v6 }
 0x135   : > { %v460_v10 = vpop.permute.xlu0 %459 }
 0x136   : > { %v576_v12 = vpop.permute.xlu1 %575  ;;  %v464_v13 = vrot.slane %v460_v10, 4  ;;  %v431_v0 = vpop.permute.xlu2 %430 }
 0x137   : > { %v579_v15 = vrot.slane %v576_v12, 4  ;;  %v436_v9 = vrot.slane %v431_v0, 4 }
 0x138   : > { %v466_v16 = vsel %vm266_vm0, %v463_v11, %v464_v13 }
 0x139   : > { %v583_v17 = vsel %vm266_vm0, %v578_v48, %v579_v15  ;;  %v585_v18 = vsel %vm581_vm4, %v576_v12, %v579_v15  ;;  %v468_v19 = vsel %vm467_vm6, %v3371_v20, %v466_v16 }
 0x13a   : > { %v584_v21 = vsel %vm581_vm4, %v574_v40, %v583_v17  ;;  %591 = vst [vmem:[#allocation3 + $0x9c] sm:$0xf] %v585_v18  ;;  %v2745_v36 = vld [vmem:[#allocation3 + $0x80] sm:$0xf]  ;;  %v3114_v37 = vld [vmem:[#allocation3 + $0x84] sm:$0xf] }
 0x13b   : > { %590 = vst [vmem:[#allocation3 + $0x94] sm:$0xff] %v584_v21  ;;  %v3110_v24 = vld [vmem:[#allocation3 + $0x60] sm:$0xf0]  ;;  %v2719_v25 = vld [vmem:[#allocation3 + $0x64] sm:$0xf0]  ;;  %vm1093_vm4 = vcmask 392192  }
 0x13c   : > { %v2718_v26 = vor.u32 %v3110_v24, %v2717_v22  ;;  %v2722_v27 = vor.u32 %v3108_v23, %v2719_v25  ;;  %475 = vst [vmem:[#allocation3 + $0x28] sm:$0xff] %v468_v19  ;;  %v645_v18 = vld [vmem:[#allocation3 + $0xb0] sm:$0xf] }
 0x13d   : > { %v3395_v28 = vpop.permute.xlu0 %486  ;;  %v2760_v19 = vld [vmem:[%s4147_s2 + $0x8] sm:$0xff]  ;;  %v718_v22 = vunpack.c.l.b16 %v645_v18 }
 0x13e   : > { %v522_v30 = vpop.permute.xlu1 %521  ;;  %788 = vmatpush.bf16.msrb.mxu1 %v2718_v26  ;;  %801 = vmatpush.bf16.msrb.mxu2 %v2722_v27  ;;  %v491_v31 = vrot.slane %v3395_v28, 4 }
 0x13f   : > { %v525_v20 = vrot.slane %v522_v30, 4  ;;  %852 = vperm.xlu2 %3241, %v2760_v19  }
 0x140   : > { %v493_v32 = vsel %vm266_vm0, %v490_v29, %v491_v31 }
 0x141   : > { %v529_v34 = vsel %vm266_vm0, %v524_v60, %v525_v20  ;;  %v531_v35 = vsel %vm527_vm5, %v522_v30, %v525_v20  ;;  %v495_v38 = vsel %vm494_vm7, %v485_v14, %v493_v32  ;;  %v743_v32 = vpack.c.b16 %v718_v22, %v718_v22 }
 0x142   : > { %v530_v39 = vsel %vm527_vm5, %v520_v55, %v529_v34  ;;  %537 = vst [vmem:[#allocation3 + $0x74] sm:$0xf] %v531_v35  ;;  %v3116_v40 = vld [vmem:[#allocation3 + $0x90] sm:$0xf0]  ;;  %v2747_v42 = vld [vmem:[#allocation3 + $0x94] sm:$0xf0] }
 0x143   : > { %536 = vst [vmem:[#allocation3 + $0x6c] sm:$0xff] %v530_v39  ;;  %v2746_v44 = vor.u32 %v3116_v40, %v2745_v36  ;;  %v2750_v45 = vor.u32 %v3114_v37, %v2747_v42  ;;  %v3109_v55 = vld [vmem:[#allocation3 + $0x5c] sm:$0xf]  ;;  %v2697_v57 = vld [vmem:[#allocation3 + $0x28] sm:$0xf]  ;;  %v781_v40 = vsel %vm266_vm0, %v743_v32, 0 }
 0x144   : > { %502 = vst [vmem:[#allocation3 + $0x3c] sm:$0xff] %v495_v38  ;;  %v3103_v59 = vld [vmem:[#allocation3 + $0x2c] sm:$0xf]  ;;  %v646_v42 = vld [vmem:[%s4146_s1 + $0x4] sm:$0xf]  ;;  %vm1477_vm5 = vcmask 261120  }
 0x145   : > { %813 = vmatpush.bf16.msrb.mxu3 %v2746_v44  ;;  %826 = vmatpush.bf16.msra.mxu0 %v2750_v45  ;;  %v405_v46 = vpop.permute.xlu0 %404  ;;  %v3117_v44 = vld [vmem:[#allocation3 + $0x98] sm:$0xf0] }
 0x146   : > { %v462_v48 = vpop.permute.xlu1 %461  ;;  %v409_v49 = vrot.slane %v405_v46, 4 }
 0x147   : > { %v465_v50 = vrot.slane %v462_v48, 4 }
 0x148   : > { %v412_v51 = vsel %vm266_vm0, %v408_v47, %v409_v49 }
 0x149   : > { %v469_v53 = vsel %vm266_vm0, %v464_v13, %v465_v50  ;;  %v471_v54 = vsel %vm467_vm6, %v462_v48, %v465_v50  ;;  %v414_v60 = vsel %vm413_vm8, %v403_v33, %v412_v51  ;;  %v3112_v51 = vld [vmem:[#allocation3 + $0x70] sm:$0xf0] }
 0x14a   : > { %v470_v61 = vsel %vm467_vm6, %v460_v10, %v469_v53  ;;  %477 = vst [vmem:[#allocation3 + $0x38] sm:$0xf] %v471_v54  ;;  %v3111_v62 = vld [vmem:[#allocation3 + $0x68] sm:$0xf0]  ;;  %v2727_v63 = vld [vmem:[#allocation3 + $0x6c] sm:$0xf0] }
 0x14b   : > { %476 = vst [vmem:[#allocation3 + $0x30] sm:$0xff] %v470_v61  ;;  %v2726_v1 = vor.u32 %v3111_v62, %v2725_v52  ;;  %v2730_v2 = vor.u32 %v3109_v55, %v2727_v63  ;;  %v3105_v3 = vld [vmem:[#allocation3 + $0x38] sm:$0xf0]  ;;  %v2699_v4 = vld [vmem:[#allocation3 + $0x3c] sm:$0xf0]  ;;  %vm1147_vm6 = vcmask 359424  }
 0x14c   : > { %v2698_v6 = vor.u32 %v3105_v3, %v2697_v57  ;;  %v2702_v7 = vor.u32 %v3103_v59, %v2699_v4  ;;  %421 = vst [vmem:[#allocation3] sm:$0xff] %v414_v60  ;;  %v2733_v52 = vld [vmem:[#allocation3 + $0x60] sm:$0xf] }
 0x14d   : > { %814 = vmatpush.bf16.msrb.mxu3 %v2726_v1  ;;  %827 = vmatpush.bf16.msra.mxu0 %v2730_v2  ;;  %v433_v8 = vpop.permute.xlu0 %432  ;;  %v2734_v53 = vor.u32 %v3112_v51, %v2733_v52 }
 0x14e   : > { %v489_v11 = vpop.permute.xlu1 %488  ;;  %789 = vmatpush.bf16.msrb.mxu1 %v2698_v6  ;;  %802 = vmatpush.bf16.msrb.mxu2 %v2702_v7  ;;  %v437_v10 = vrot.slane %v433_v8, 4 }
 0x14f   : > { %v492_v12 = vrot.slane %v489_v11, 4 }
 0x150   : > { %v439_v13 = vsel %vm266_vm0, %v436_v9, %v437_v10 }
 0x151   : > { %v496_v14 = vsel %vm266_vm0, %v491_v31, %v492_v12  ;;  %v498_v15 = vsel %vm494_vm7, %v489_v11, %v492_v12  ;;  %v441_v16 = vsel %vm440_vm9, %v431_v0, %v439_v13  ;;  %v2713_v55 = vld [vmem:[#allocation3 + $0x38] sm:$0xf] }
 0x152   : > { %v497_v17 = vsel %vm494_vm7, %v3395_v28, %v496_v14  ;;  %504 = vst [vmem:[#allocation3 + $0x4c] sm:$0xf] %v498_v15  ;;  %v2705_v24 = vld [vmem:[#allocation3 + $0x30] sm:$0xf]  ;;  %v3104_v27 = vld [vmem:[#allocation3 + $0x34] sm:$0xf] }
 0x153   : > { %503 = vst [vmem:[#allocation3 + $0x44] sm:$0xff] %v497_v17  ;;  %v2677_v29 = vld [vmem:[#allocation3] sm:$0xf]  ;;  %v3098_v28 = vld [vmem:[#allocation3 + $0x4] sm:$0xf]  ;;  %vm1504_vm7 = vcmask 244736  }
 0x154   : > { %448 = vst [vmem:[#allocation3 + $0x14] sm:$0xff] %v441_v16 }
 0x156   : > { %v407_v21 = vpop.permute.xlu1 %406 }
 0x157   : > { %v410_v23 = vrot.slane %v407_v21, 4 }
 0x159   : > { %v415_v25 = vsel %vm266_vm0, %v409_v49, %v410_v23  ;;  %v417_v26 = vsel %vm413_vm8, %v407_v21, %v410_v23  ;;  %v3107_v54 = vld [vmem:[#allocation3 + $0x48] sm:$0xf0] }
 0x15a   : > { %v416_v30 = vsel %vm413_vm8, %v405_v46, %v415_v25  ;;  %423 = vst [vmem:[#allocation3 + $0x10] sm:$0xf] %v417_v26  ;;  %v3106_v31 = vld [vmem:[#allocation3 + $0x40] sm:$0xf0]  ;;  %v2707_v20 = vld [vmem:[#allocation3 + $0x44] sm:$0xf0]  ;;  %v2714_v59 = vor.u32 %v3107_v54, %v2713_v55 }
 0x15b   : > { %422 = vst [vmem:[#allocation3 + $0x8] sm:$0xff] %v416_v30  ;;  %v2706_v33 = vor.u32 %v3106_v31, %v2705_v24  ;;  %v2710_v34 = vor.u32 %v3104_v27, %v2707_v20  ;;  %v3100_v35 = vld [vmem:[#allocation3 + $0x10] sm:$0xf0]  ;;  %v2679_v36 = vld [vmem:[#allocation3 + $0x14] sm:$0xf0]  ;;  %vm1039_vm8 = vcmask 424960  }
 0x15c   : > { %v2678_v37 = vor.u32 %v3100_v35, %v2677_v29  ;;  %v2682_v38 = vor.u32 %v3098_v28, %v2679_v36  ;;  %v2753_v46 = vld [vmem:[#allocation3 + $0x88] sm:$0xf] }
 0x15d   : > { %815 = vmatpush.bf16.msrb.mxu3 %v2706_v33  ;;  %828 = vmatpush.bf16.msra.mxu0 %v2710_v34  ;;  %v2754_v49 = vor.u32 %v3117_v44, %v2753_v46 }
 0x15e   : > { %v435_v39 = vpop.permute.xlu1 %434  ;;  %790 = vmatpush.bf16.msrb.mxu1 %v2678_v37  ;;  %803 = vmatpush.bf16.msrb.mxu2 %v2682_v38 }
 0x15f   : > { %v438_v45 = vrot.slane %v435_v39, 4 }
 0x161   : > { %v442_v47 = vsel %vm266_vm0, %v437_v10, %v438_v45  ;;  %v444_v48 = vsel %vm440_vm9, %v435_v39, %v438_v45  ;;  %2755 = vmatmul.msk.bf16.vlgmr.msrb.gmra.mxu1 %vm764_vm10, %v646_v42  ;;  %2756 = vmatmul.msk.bf16.vlgmr.msrb.gmra.mxu2 %vm764_vm10, %v646_v42  ;;  %v2693_v60 = vld [vmem:[#allocation3 + $0x10] sm:$0xf] }
 0x162   : > { %838 = vmatpush.bf16.msra.mxu1 %v781_v40  ;;  %v443_v50 = vsel %vm440_vm9, %v433_v8, %v442_v47  ;;  %450 = vst [vmem:[#allocation3 + $0x24] sm:$0xf] %v444_v48  ;;  %v2685_v57 = vld [vmem:[#allocation3 + $0x8] sm:$0xf]  ;;  %v3099_v63 = vld [vmem:[#allocation3 + $0xc] sm:$0xf]  ;;  %v865_v8 = vpop.permute.xlu0 %864 }
 0x163   : > { %449 = vst [vmem:[#allocation3 + $0x1c] sm:$0xff] %v443_v50  ;;  %vm4154_vm9 = vcmask 277504  }
 0x166   : > { %839 = vmatpush.bf16.msra.mxu1 %v2754_v49 }
 0x169   : > { %v3102_v61 = vld [vmem:[#allocation3 + $0x20] sm:$0xf0] }
 0x16a   : > { %840 = vmatpush.bf16.msra.mxu1 %v2734_v53  ;;  %v3101_v62 = vld [vmem:[#allocation3 + $0x18] sm:$0xf0]  ;;  %v2687_v0 = vld [vmem:[#allocation3 + $0x1c] sm:$0xf0]  ;;  %v2694_v3 = vor.u32 %v3102_v61, %v2693_v60 }
 0x16b   : > { %v2686_v1 = vor.u32 %v3101_v62, %v2685_v57  ;;  %v2690_v2 = vor.u32 %v3099_v63, %v2687_v0 }
 0x16d   : > { %816 = vmatpush.bf16.msrb.mxu3 %v2686_v1  ;;  %829 = vmatpush.bf16.msra.mxu0 %v2690_v2 }
 0x16e   : > { %841 = vmatpush.bf16.msra.mxu1 %v2714_v59 }
 0x170   : > { %2757 = vmatmul.msk.bf16.vlgmr.msrb.gmra.mxu3 %vm764_vm10, %v646_v42  ;;  %2758 = vmatmul.msk.bf16.vlgmr.msra.gmra.mxu0 %vm764_vm10, %v646_v42 }
 0x172   : > { %842 = vmatpush.bf16.msra.mxu1 %v2694_v3 }
 0x175   : > { %2759 = vmatmul.msk.bf16.vlgmr.msra.gmra.mxu1 %vm764_vm10, %v646_v42 }
 0x199   : > { %v853_v4 = vpop.permute.xlu2 %852 }
 0x1de   : > { %v792_v6 = vpop.f32.mrf.mxu1 }
 0x1df   : > { %v855_v7 = vmul.f32 %v853_v4, %v792_v6 }
 0x1e1   : > { %v867_v9 = vadd.f32 %v865_v8, %v855_v7 }
 0x1e3   : > { %v872_v14 = vmax.f32 %v867_v9, 0.0 }
 0x1e4   : > { %v805_v11 = vpop.f32.mrf.mxu2 }
 0x1e5   : > { %v856_v10 = vmul.f32 %v853_v4, %v805_v11  ;;  %v877_v16 = vmul.f32 %v872_v14, %v3347_v41 }
 0x1e6   : > { %v794_v12 = vpop.f32.mrf.mxu1 }
 0x1e7   : > { %v868_v13 = vadd.f32 %v865_v8, %v856_v10 }
 0x1e9   : > { %v873_v15 = vmax.f32 %v868_v13, 0.0 }
 0x1eb   : > { %v878_v17 = vmul.f32 %v873_v15, %v3349_v43 }
 0x1ec   : > { %v807_v18 = vpop.f32.mrf.mxu2 }
 0x1ed   : > { %v3434_v19 = vpack.c.bf16 %v878_v17, %v877_v16  ;;  %v831_v21 = vpop.f32.mrf.mxu0 }
 0x1ee   : > { %v858_v22 = vmul.f32 %v853_v4, %v831_v21 }
 0x1ef   : > { %885 = vst [vmem:[#allocation2 + $0x4] sm:$0xff] %v3434_v19  ;;  %1278 = vrot.lane.b32.xlu0 %v3434_v19, %s3260_s24  ;;  %1224 = vrot.lane.b32.xlu2 %v3434_v19, %s3261_s25 }
 0x1f0   : > { %1251 = vrot.lane.b32.xlu1 %v3434_v19, %s3262_s26  ;;  %1215 = vst [vmem:[#allocation3 + $0xf0] sm:$0xff] %v3434_v19  ;;  %v870_v25 = vadd.f32 %v865_v8, %v858_v22 }
 0x1f2   : > { %v844_v23 = vpop.f32.mrf.mxu1  ;;  %v875_v31 = vmax.f32 %v870_v25, 0.0 }
 0x1f3   : > { %v859_v24 = vmul.f32 %v853_v4, %v844_v23  ;;  %v818_v27 = vpop.f32.mrf.mxu3 }
 0x1f4   : > { %v857_v29 = vmul.f32 %v853_v4, %v818_v27  ;;  %v880_v37 = vmul.f32 %v875_v31, %v3355_v58 }
 0x1f5   : > { %v871_v26 = vadd.f32 %v865_v8, %v859_v24  ;;  %v833_v30 = vpop.f32.mrf.mxu0 }
 0x1f6   : > { %v869_v20 = vadd.f32 %v865_v8, %v857_v29  ;;  %v1185_v33 = vld [vmem:[#allocation2] sm:$0xff] }
 0x1f7   : > { %v876_v28 = vmax.f32 %v871_v26, 0.0  ;;  %1521 = vrot.lane.b32.xlu2 %v3434_v19, %s3263_s27  ;;  %1191 = vrot.lane.b32.xlu0 %v1185_v33, %s3264_s28 }
 0x1f8   : > { %v874_v35 = vmax.f32 %v869_v20, 0.0  ;;  %1164 = vrot.lane.b32.xlu1 %v1185_v33, %s3265_s29 }
 0x1f9   : > { %v881_v32 = vmul.f32 %v876_v28, %v3362_v5 }
 0x1fa   : > { %v846_v34 = vpop.f32.mrf.mxu1  ;;  %v879_v38 = vmul.f32 %v874_v35, %v3353_v56 }
 0x1fb   : > { %v884_v36 = vpack.c.bf16 %v881_v32, %v881_v32  ;;  %v820_v39 = vpop.f32.mrf.mxu3 }
 0x1fc   : > { %v3451_v40 = vpack.c.bf16 %v880_v37, %v879_v38 }
 0x1fd   : > { %887 = vst [vmem:[#allocation2 + $0x14] sm:$0xf] %v884_v36 }
 0x1fe   : > { %886 = vst [vmem:[#allocation2 + $0xc] sm:$0xff] %v3451_v40 }
 0x1ff   : > { %1137 = vrot.lane.b32.xlu0 %v1185_v33, %s3266_s30  ;;  %1056 = vrot.lane.b32.xlu2 %v1185_v33, %s3267_s6 }
 0x200   : > { %1110 = vrot.lane.b32.xlu1 %v1185_v33, %s3268_s7 }
 0x204   : > { %v1214_v42 = vld [vmem:[#allocation2 + $0x14] sm:$0xf] }
 0x205   : > { %1217 = vst [vmem:[#allocation3 + $0x100] sm:$0xf] %v1214_v42  ;;  %v1213_v44 = vld [vmem:[#allocation2 + $0xc] sm:$0xff]  ;;  %v3485_v46 = vld [vmem:[#allocation2 + $0x14] sm:$0xff] }
 0x206   : > { %1216 = vst [vmem:[#allocation3 + $0xf8] sm:$0xff] %v1213_v44  ;;  %v1051_v45 = vld [vmem:[#allocation2 + $0x8] sm:$0xff]  ;;  %v3524_v53 = vld [vmem:[#allocation2 + $0x10] sm:$0xff] }
 0x207   : > { %1467 = vrot.lane.b32.xlu2 %v3434_v19, %s3269_s8  ;;  %1002 = vrot.lane.b32.xlu0 %v1185_v33, %s3270_s9 }
 0x208   : > { %1083 = vrot.lane.b32.xlu1 %v1185_v33, %s3271_s10 }
 0x20f   : > { %1029 = vrot.lane.b32.xlu2 %v1185_v33, %s3272_s11  ;;  %948 = vrot.lane.b32.xlu0 %v1185_v33, %s3273_s12 }
 0x210   : > { %1494 = vrot.lane.b32.xlu1 %v3434_v19, %s3274_s13 }
 0x217   : > { %1413 = vrot.lane.b32.xlu2 %v3434_v19, %s3275_s14  ;;  %1359 = vrot.lane.b32.xlu0 %v3434_v19, %s3276_s15 }
 0x218   : > { %1440 = vrot.lane.b32.xlu1 %v3434_v19, %s3277_s16 }
 0x21f   : > { %975 = vrot.lane.b32.xlu2 %v1185_v33, %s3278_s17  ;;  %1226 = vrot.lane.b32.xlu0 %v3451_v40, %s3261_s25 }
 0x220   : > { %921 = vrot.lane.b32.xlu1 %v1185_v33, %s4152_s20  ;;  %s3283_s20 = smov 82  }
 0x227   : > { %1386 = vrot.lane.b32.xlu2 %v3434_v19, %s3280_s21  ;;  %1523 = vrot.lane.b32.xlu0 %v3451_v40, %s3263_s27 }
 0x228   : > { %1332 = vrot.lane.b32.xlu1 %v3434_v19, %s3281_s23 }
 0x22f   : > { %894 = vrot.lane.b32.xlu2 %v1185_v33, %s3282_s22  ;;  %1058 = vrot.lane.b32.xlu0 %v1051_v45, %s3267_s6 }
 0x230   : > { %1280 = vrot.lane.b32.xlu1 %v3451_v40, %s3260_s24 }
 0x237   : > { %1305 = vrot.lane.b32.xlu2 %v3434_v19, %s3283_s20  ;;  %1255 = vrot.lane.b32.xlu0 %v3485_v46, %s3262_s26 }
 0x238   : > { %1193 = vrot.lane.b32.xlu1 %v1051_v45, %s3264_s28 }
 0x23f   : > { %1253 = vrot.lane.b32.xlu2 %v3451_v40, %s3262_s26  ;;  %1469 = vrot.lane.b32.xlu0 %v3451_v40, %s3269_s8 }
 0x240   : > { %1139 = vrot.lane.b32.xlu1 %v1051_v45, %s3266_s30 }
 0x247   : > { %1166 = vrot.lane.b32.xlu2 %v1051_v45, %s3265_s29  ;;  %1031 = vrot.lane.b32.xlu0 %v1051_v45, %s3272_s11 }
 0x248   : > { %1282 = vrot.lane.b32.xlu1 %v3485_v46, %s3260_s24  ;;  %s4160_s24 = smov 98  }
 0x249   : > { %v1225_v47 = vpop.permute.xlu2 %1224 }
 0x24a   : > { %v1230_v11 = vrot.slane %v1225_v47, 4 }
 0x24f   : > { %1112 = vrot.lane.b32.xlu2 %v1051_v45, %s3268_s7  ;;  %1415 = vrot.lane.b32.xlu0 %v3451_v40, %s3275_s14 }
 0x250   : > { %1004 = vrot.lane.b32.xlu1 %v1051_v45, %s3270_s9 }
 0x251   : > { %v3505_v48 = vpop.permute.xlu2 %1521 }
 0x252   : > { %v1527_v15 = vrot.slane %v3505_v48, 4 }
 0x257   : > { %1085 = vrot.lane.b32.xlu2 %v1051_v45, %s3271_s10  ;;  %977 = vrot.lane.b32.xlu0 %v1051_v45, %s3278_s17 }
 0x258   : > { %1228 = vrot.lane.b32.xlu1 %v3485_v46, %s3261_s25 }
 0x259   : > { %v3511_v49 = vpop.permute.xlu2 %1056 }
 0x25a   : > { %v1062_v31 = vrot.slane %v3511_v49, 4 }
 0x25f   : > { %1496 = vrot.lane.b32.xlu2 %v3451_v40, %s3274_s13  ;;  %1388 = vrot.lane.b32.xlu0 %v3451_v40, %s3280_s21 }
 0x260   : > { %950 = vrot.lane.b32.xlu1 %v1051_v45, %s3273_s12 }
 0x261   : > { %v3518_v50 = vpop.permute.xlu0 %1278  ;;  %v3520_v51 = vpop.permute.xlu2 %1467 }
 0x262   : > { %v1252_v52 = vpop.permute.xlu1 %1251  ;;  %v1284_v39 = vrot.slane %v3518_v50, 4 }
 0x263   : > { %v1257_v16 = vrot.slane %v1252_v52, 4 }
 0x267   : > { %1442 = vrot.lane.b32.xlu2 %v3451_v40, %s3277_s16  ;;  %896 = vrot.lane.b32.xlu0 %v1051_v45, %s3282_s22 }
 0x268   : > { %1168 = vrot.lane.b32.xlu1 %v3524_v53, %s3265_s29 }
 0x269   : > { %v3529_v54 = vpop.permute.xlu0 %1191  ;;  %v3531_v55 = vpop.permute.xlu2 %1029 }
 0x26a   : > { %v3533_v57 = vpop.permute.xlu1 %1164 }
 0x26b   : > { %v1170_v20 = vrot.slane %v3533_v57, 4 }
 0x26f   : > { %1195 = vrot.lane.b32.xlu2 %v3524_v53, %s3264_s28  ;;  %1114 = vrot.lane.b32.xlu0 %v3524_v53, %s3268_s7 }
 0x270   : > { %1361 = vrot.lane.b32.xlu1 %v3451_v40, %s3276_s15 }
 0x271   : > { %v3541_v59 = vpop.permute.xlu0 %1137  ;;  %v3543_v60 = vpop.permute.xlu2 %1413 }
 0x272   : > { %v3545_v61 = vpop.permute.xlu1 %1110 }
 0x277   : > { %923 = vrot.lane.b32.xlu2 %v1051_v45, %s4160_s24  ;;  %1307 = vrot.lane.b32.xlu0 %v3451_v40, %s3283_s20 }
 0x278   : > { %1525 = vrot.lane.b32.xlu1 %v3485_v46, %s3263_s27 }
 0x279   : > { %v3552_v62 = vpop.permute.xlu0 %1002  ;;  %v3554_v63 = vpop.permute.xlu2 %975 }
 0x27a   : > { %v3556_v0 = vpop.permute.xlu1 %1083 }
 0x27f   : > { %1334 = vrot.lane.b32.xlu2 %v3451_v40, %s3281_s23  ;;  %1060 = vrot.lane.b32.xlu0 %v3524_v53, %s3267_s6 }
 0x280   : > { %1141 = vrot.lane.b32.xlu1 %v3524_v53, %s3266_s30 }
 0x281   : > { %v3564_v1 = vpop.permute.xlu2 %1386  ;;  %v3566_v2 = vpop.permute.xlu0 %948 }
 0x282   : > { %v3568_v3 = vpop.permute.xlu1 %1494 }
 0x287   : > { %1471 = vrot.lane.b32.xlu2 %v3485_v46, %s3269_s8  ;;  %1498 = vrot.lane.b32.xlu0 %v3485_v46, %s3274_s13 }
 0x288   : > { %1087 = vrot.lane.b32.xlu1 %v3524_v53, %s3271_s10 }
 0x289   : > { %v3576_v4 = vpop.permute.xlu0 %1359  ;;  %v3578_v6 = vpop.permute.xlu2 %894 }
 0x28a   : > { %v3580_v7 = vpop.permute.xlu1 %1440 }
 0x28f   : > { %1033 = vrot.lane.b32.xlu2 %v3524_v53, %s3272_s11  ;;  %1417 = vrot.lane.b32.xlu0 %v3485_v46, %s3275_s14 }
 0x290   : > { %1006 = vrot.lane.b32.xlu1 %v3524_v53, %s3270_s9 }
 0x291   : > { %v3588_v8 = vpop.permute.xlu2 %1305  ;;  %v3590_v9 = vpop.permute.xlu0 %1226 }
 0x292   : > { %v3592_v10 = vpop.permute.xlu1 %921  ;;  %v1231_v12 = vrot.slane %v3590_v9, 4 }
 0x294   : > { %v1233_v13 = vsel %vm266_vm0, %v1230_v11, %v1231_v12 }
 0x295   : > { %v1235_v14 = vsel %vm4156_vm11, %v1225_v47, %v1233_v13 }
 0x296   : > { %1242 = vst [vmem:[#allocation3 + $0x104] sm:$0xff] %v1235_v14 }
 0x297   : > { %952 = vrot.lane.b32.xlu2 %v3524_v53, %s3273_s12  ;;  %979 = vrot.lane.b32.xlu0 %v3524_v53, %s3278_s17 }
 0x298   : > { %1444 = vrot.lane.b32.xlu1 %v3485_v46, %s3277_s16 }
 0x299   : > { %v3606_v17 = vpop.permute.xlu2 %1253  ;;  %v3608_v18 = vpop.permute.xlu0 %1523 }
 0x29a   : > { %v3610_v19 = vpop.permute.xlu1 %1332  ;;  %v1258_v21 = vrot.slane %v3606_v17, 4  ;;  %v1528_v22 = vrot.slane %v3608_v18, 4 }
 0x29c   : > { %v1260_v23 = vsel %vm266_vm0, %v1257_v16, %v1258_v21  ;;  %v1530_v24 = vsel %vm266_vm0, %v1527_v15, %v1528_v22  ;;  %v1197_v15 = vrot.slane %v3529_v54, 4 }
 0x29d   : > { %v1532_v25 = vsel %vm1531_vm12, %v3505_v48, %v1530_v24  ;;  %v1262_v26 = vsel %vm1261_vm13, %v1252_v52, %v1260_v23  ;;  %v3008_v24 = vld [vmem:[%s4148_s3 + $0x10] sm:$0xff] }
 0x29e   : > { %v1819_v27 = vunpack.c.l.b16 %v1532_v25  ;;  %v1820_v29 = vunpack.c.h.b16 %v1532_v25  ;;  %1269 = vst [vmem:[#allocation3 + $0x118] sm:$0xff] %v1262_v26 }
 0x29f   : > { %1390 = vrot.lane.b32.xlu2 %v3485_v46, %s3280_s21  ;;  %898 = vrot.lane.b32.xlu0 %v3524_v53, %s3282_s22 }
 0x2a0   : > { %1363 = vrot.lane.b32.xlu1 %v3485_v46, %s3276_s15  ;;  %v1884_v28 = vpack.c.b16 %v1819_v27, %v1819_v27  ;;  %v1885_v30 = vpack.c.b16 %v1820_v29, %v1820_v29 }
 0x2a1   : > { %v3629_v32 = vpop.permute.xlu2 %1166  ;;  %v3631_v33 = vpop.permute.xlu0 %1058 }
 0x2a2   : > { %v3633_v34 = vpop.permute.xlu1 %1280  ;;  %v1171_v35 = vrot.slane %v3629_v32, 4  ;;  %v1063_v36 = vrot.slane %v3631_v33, 4  ;;  %v1953_v37 = vsel %vm266_vm0, %v1884_v28, 0  ;;  %v1956_v38 = vsel %vm266_vm0, %v1885_v30, 0 }
 0x2a3   : > { %v1285_v40 = vrot.slane %v3633_v34, 4  ;;  %1983 = vmatpush.bf16.msra.mxu3 %v1953_v37  ;;  %2009 = vmatpush.bf16.msrb.mxu1 %v1956_v38  ;;  %v3150_v38 = vld [vmem:[#allocation3 + $0x100] sm:$0xf0] }
 0x2a4   : > { %v1173_v42 = vsel %vm266_vm0, %v1170_v20, %v1171_v35  ;;  %v1065_v44 = vsel %vm266_vm0, %v1062_v31, %v1063_v36 }
 0x2a5   : > { %v1287_v45 = vsel %vm266_vm0, %v1284_v39, %v1285_v40  ;;  %v1175_v47 = vsel %vm1174_vm14, %v3533_v57, %v1173_v42  ;;  %v1067_v48 = vsel %vm1066_vm15, %v3511_v49, %v1065_v44  ;;  %v1116_v49 = vrot.slane %v3545_v61, 4  ;;  %v2904_v29 = vld [vmem:[#allocation3 + $0x118] sm:$0xf]  ;;  %v3153_v28 = vld [vmem:[#allocation3 + $0x11c] sm:$0xf] }
 0x2a6   : > { %v1289_v52 = vsel %vm1288_vm1, %v3518_v50, %v1287_v45  ;;  %1182 = vst [vmem:[#allocation3 + $0xc8] sm:$0xff] %v1175_v47  ;;  %v2886_v39 = vld [vmem:[#allocation3 + $0x104] sm:$0xf0]  ;;  %v1089_v42 = vrot.slane %v3556_v0, 4  ;;  %v2884_v45 = vld [vmem:[#allocation3 + $0xf0] sm:$0xf] }
 0x2a7   : > { %1296 = vst [vmem:[#allocation3 + $0x12c] sm:$0xff] %v1289_v52  ;;  %1309 = vrot.lane.b32.xlu2 %v3485_v46, %s3283_s20  ;;  %1336 = vrot.lane.b32.xlu0 %v3485_v46, %s3281_s23 }
 0x2a8   : > { %1074 = vst [vmem:[#allocation3 + $0x78] sm:$0xff] %v1067_v48  ;;  %925 = vrot.lane.b32.xlu1 %v3524_v53, %s4160_s24 }
 0x2a9   : > { %v3662_v11 = vpop.permute.xlu2 %1112  ;;  %v1256_v57 = vpop.permute.xlu0 %1255 }
 0x2aa   : > { %v3665_v13 = vpop.permute.xlu1 %1193  ;;  %v1117_v50 = vrot.slane %v3662_v11, 4  ;;  %v1259_v14 = vrot.slane %v1256_v57, 4 }
 0x2ab   : > { %v1198_v46 = vrot.slane %v3665_v13, 4 }
 0x2ac   : > { %v1119_v53 = vsel %vm266_vm0, %v1116_v49, %v1117_v50  ;;  %v1263_v16 = vsel %vm266_vm0, %v1258_v21, %v1259_v14  ;;  %v1265_v23 = vsel %vm1261_vm13, %v1256_v57, %v1259_v14  ;;  %v3148_v57 = vld [vmem:[#allocation3 + $0xf4] sm:$0xf]  ;;  %v2885_v14 = vor.u32 %v3150_v38, %v2884_v45 }
 0x2ad   : > { %v1200_v25 = vsel %vm266_vm0, %v1197_v15, %v1198_v46  ;;  %v1121_v26 = vsel %vm1120_vm2, %v3545_v61, %v1119_v53  ;;  %v1264_v27 = vsel %vm1261_vm13, %v3606_v17, %v1263_v16  ;;  %1271 = vst [vmem:[#allocation3 + $0x128] sm:$0xf] %v1265_v23  ;;  %v1473_v61 = vrot.slane %v3520_v51, 4 }
 0x2ae   : > { %v1202_v21 = vsel %vm4155_vm3, %v3529_v54, %v1200_v25  ;;  %1128 = vst [vmem:[#allocation3 + $0xa0] sm:$0xff] %v1121_v26  ;;  %v3155_v30 = vld [vmem:[#allocation3 + $0x128] sm:$0xf0]  ;;  %v2906_v31 = vld [vmem:[#allocation3 + $0x12c] sm:$0xf0]  ;;  %v1143_v17 = vrot.slane %v3541_v59, 4  ;;  %v2889_v15 = vor.u32 %v3148_v57, %v2886_v39 }
 0x2af   : > { %1209 = vst [vmem:[#allocation3 + $0xdc] sm:$0xff] %v1202_v21  ;;  %2113 = vperm.xlu2 %3241, %v3008_v24   ;;  %v2905_v20 = vor.u32 %v3155_v30, %v2904_v29  ;;  %v2909_v37 = vor.u32 %v3153_v28, %v2906_v31  ;;  %v2864_v26 = vld [vmem:[#allocation3 + $0xc8] sm:$0xf]  ;;  %vm4158_vm13 = vcmask 293888  }
 0x2b0   : > { %1270 = vst [vmem:[#allocation3 + $0x120] sm:$0xff] %v1264_v27  ;;  %v3143_v27 = vld [vmem:[#allocation3 + $0xcc] sm:$0xf] }
 0x2b1   : > { %1967 = vmatpush.bf16.msra.mxu2 %v2905_v20  ;;  %1993 = vmatpush.bf16.msrb.mxu0 %v2909_v37  ;;  %v3690_v44 = vpop.permute.xlu2 %1085  ;;  %v3692_v54 = vpop.permute.xlu0 %1469  ;;  %v1035_v20 = vrot.slane %v3531_v55, 4  ;;  %v1500_v37 = vrot.slane %v3568_v3, 4 }
 0x2b2   : > { %v3694_v47 = vpop.permute.xlu1 %1139  ;;  %v1090_v48 = vrot.slane %v3690_v44, 4  ;;  %v1474_v52 = vrot.slane %v3692_v54, 4 }
 0x2b3   : > { %v1144_v49 = vrot.slane %v3694_v47, 4 }
 0x2b4   : > { %v1092_v53 = vsel %vm266_vm0, %v1089_v42, %v1090_v48  ;;  %v1476_v16 = vsel %vm266_vm0, %v1473_v61, %v1474_v52 }
 0x2b5   : > { %v1146_v23 = vsel %vm266_vm0, %v1143_v17, %v1144_v49  ;;  %v1094_v24 = vsel %vm1093_vm4, %v3556_v0, %v1092_v53  ;;  %v1478_v25 = vsel %vm1477_vm5, %v3520_v51, %v1476_v16  ;;  %1968 = vmatpush.bf16.msra.mxu2 %v2885_v14  ;;  %1994 = vmatpush.bf16.msrb.mxu0 %v2889_v15  ;;  %v2844_v15 = vld [vmem:[#allocation3 + $0xa0] sm:$0xf]  ;;  %v3138_v53 = vld [vmem:[#allocation3 + $0xa4] sm:$0xf] }
 0x2b6   : > { %v1148_v29 = vsel %vm1147_vm6, %v3541_v59, %v1146_v23  ;;  %1101 = vst [vmem:[#allocation3 + $0x8c] sm:$0xff] %v1094_v24  ;;  %v3145_v28 = vld [vmem:[#allocation3 + $0xd8] sm:$0xf0]  ;;  %v2866_v21 = vld [vmem:[#allocation3 + $0xdc] sm:$0xf0] }
 0x2b7   : > { %1155 = vst [vmem:[#allocation3 + $0xb4] sm:$0xff] %v1148_v29  ;;  %v2865_v30 = vor.u32 %v3145_v28, %v2864_v26  ;;  %v2869_v31 = vor.u32 %v3143_v27, %v2866_v21  ;;  %v1446_v21 = vrot.slane %v3580_v7, 4 }
 0x2b8   : > { %1485 = vst [vmem:[#allocation3 + $0x1b8] sm:$0xff] %v1478_v25 }
 0x2b9   : > { %1969 = vmatpush.bf16.msra.mxu2 %v2865_v30  ;;  %1995 = vmatpush.bf16.msrb.mxu0 %v2869_v31  ;;  %v3715_v0 = vpop.permute.xlu2 %1496  ;;  %v3717_v51 = vpop.permute.xlu0 %1031 }
 0x2ba   : > { %v1283_v38 = vpop.permute.xlu1 %1282  ;;  %v1501_v59 = vrot.slane %v3715_v0, 4  ;;  %v1036_v39 = vrot.slane %v3717_v51, 4 }
 0x2bb   : > { %v1286_v61 = vrot.slane %v1283_v38, 4 }
 0x2bc   : > { %v1503_v17 = vsel %vm266_vm0, %v1500_v37, %v1501_v59  ;;  %v1038_v42 = vsel %vm266_vm0, %v1035_v20, %v1036_v39  ;;  %v2824_v37 = vld [vmem:[#allocation3 + $0x78] sm:$0xf] }
 0x2bd   : > { %v1290_v45 = vsel %vm266_vm0, %v1285_v40, %v1286_v61  ;;  %v1292_v57 = vsel %vm1288_vm1, %v1283_v38, %v1286_v61  ;;  %v1505_v14 = vsel %vm1504_vm7, %v3568_v3, %v1503_v17  ;;  %v1040_v23 = vsel %vm1039_vm8, %v3531_v55, %v1038_v42  ;;  %v3135_v29 = vld [vmem:[#allocation3 + $0x88] sm:$0xf0]  ;;  %v2826_v28 = vld [vmem:[#allocation3 + $0x8c] sm:$0xf0]  ;;  %v3133_v38 = vld [vmem:[#allocation3 + $0x7c] sm:$0xf] }
 0x2be   : > { %v1291_v16 = vsel %vm1288_vm1, %v3633_v34, %v1290_v45  ;;  %1298 = vst [vmem:[#allocation3 + $0x13c] sm:$0xf] %v1292_v57  ;;  %v3140_v24 = vld [vmem:[#allocation3 + $0xb0] sm:$0xf0]  ;;  %v2846_v25 = vld [vmem:[#allocation3 + $0xb4] sm:$0xf0]  ;;  %v2825_v17 = vor.u32 %v3135_v29, %v2824_v37  ;;  %v2829_v42 = vor.u32 %v3133_v38, %v2826_v28 }
 0x2bf   : > { %1297 = vst [vmem:[#allocation3 + $0x134] sm:$0xff] %v1291_v16  ;;  %v2845_v26 = vor.u32 %v3140_v24, %v2844_v15  ;;  %v2849_v27 = vor.u32 %v3138_v53, %v2846_v25  ;;  %v1419_v40 = vrot.slane %v3543_v60, 4  ;;  %v1008_v3 = vrot.slane %v3552_v62, 4  ;;  %v3173_v24 = vld [vmem:[#allocation3 + $0x1bc] sm:$0xf] }
 0x2c0   : > { %1512 = vst [vmem:[#allocation3 + $0x1cc] sm:$0xff] %v1505_v14  ;;  %vm1012_vm1 = vcmask 752640   ;;  %v981_v29 = vrot.slane %v3554_v63, 4 }
 0x2c1   : > { %1047 = vst [vmem:[#allocation3 + $0x64] sm:$0xff] %v1040_v23  ;;  %1970 = vmatpush.bf16.msra.mxu2 %v2845_v26  ;;  %1996 = vmatpush.bf16.msrb.mxu0 %v2849_v27  ;;  %v3741_v34 = vpop.permute.xlu2 %1442  ;;  %v3743_v55 = vpop.permute.xlu0 %1415  ;;  %v2984_v23 = vld [vmem:[#allocation3 + $0x1b8] sm:$0xf] }
 0x2c2   : > { %v1447_v30 = vrot.slane %v3741_v34, 4  ;;  %v1420_v31 = vrot.slane %v3743_v55, 4  ;;  %v3747_v20 = vpop.permute.xlu1 %1004 }
 0x2c3   : > { %v1009_v61 = vrot.slane %v3747_v20, 4 }
 0x2c4   : > { %v1449_v45 = vsel %vm266_vm0, %v1446_v21, %v1447_v30  ;;  %v1422_v57 = vsel %vm266_vm0, %v1419_v40, %v1420_v31 }
 0x2c5   : > { %v1451_v14 = vsel %vm4154_vm9, %v3580_v7, %v1449_v45  ;;  %v1424_v15 = vsel %vm4158_vm13, %v3543_v60, %v1422_v57  ;;  %v1011_v53 = vsel %vm266_vm0, %v1008_v3, %v1009_v61  ;;  %1971 = vmatpush.bf16.msra.mxu2 %v2825_v17  ;;  %1997 = vmatpush.bf16.msrb.mxu0 %v2829_v42  ;;  %vm4157_vm9 = vcmask 769024  }
 0x2c6   : > { %1458 = vst [vmem:[#allocation3 + $0x1a4] sm:$0xff] %v1451_v14  ;;  %v1013_v16 = vsel %vm1012_vm1, %v3552_v62, %v1011_v53  ;;  %vm1342_vm13 = vcmask 654336  }
 0x2c7   : > { %1431 = vst [vmem:[#allocation3 + $0x190] sm:$0xff] %v1424_v15  ;;  %v3175_v25 = vld [vmem:[#allocation3 + $0x1c8] sm:$0xf0]  ;;  %v2986_v26 = vld [vmem:[#allocation3 + $0x1cc] sm:$0xf0] }
 0x2c8   : > { %1020 = vst [vmem:[#allocation3 + $0x50] sm:$0xff] %v1013_v16  ;;  %v2985_v7 = vor.u32 %v3175_v25, %v2984_v23  ;;  %v2989_v27 = vor.u32 %v3173_v24, %v2986_v26  ;;  %v3130_v14 = vld [vmem:[#allocation3 + $0x60] sm:$0xf0]  ;;  %v2806_v53 = vld [vmem:[#allocation3 + $0x64] sm:$0xf0] }
 0x2c9   : > { %v1196_v40 = vpop.permute.xlu2 %1195  ;;  %v3765_v60 = vpop.permute.xlu0 %977 }
 0x2ca   : > { %1984 = vmatpush.bf16.msra.mxu3 %v2985_v7  ;;  %2010 = vmatpush.bf16.msrb.mxu1 %v2989_v27  ;;  %v1199_v28 = vrot.slane %v1196_v40, 4  ;;  %v1229_v3 = vpop.permute.xlu1 %1228  ;;  %v982_v21 = vrot.slane %v3765_v60, 4 }
 0x2cb   : > { %v1232_v62 = vrot.slane %v1229_v3, 4 }
 0x2cc   : > { %v1203_v37 = vsel %vm266_vm0, %v1198_v46, %v1199_v28  ;;  %v1205_v38 = vsel %vm4155_vm3, %v1196_v40, %v1199_v28  ;;  %v984_v17 = vsel %vm266_vm0, %v981_v29, %v982_v21  ;;  %v1392_v29 = vrot.slane %v3564_v1, 4 }
 0x2cd   : > { %v1204_v42 = vsel %vm4155_vm3, %v3665_v13, %v1203_v37  ;;  %1211 = vst [vmem:[#allocation3 + $0xec] sm:$0xf] %v1205_v38  ;;  %v1236_v45 = vsel %vm266_vm0, %v1231_v12, %v1232_v62  ;;  %v1238_v57 = vsel %vm4156_vm11, %v1229_v3, %v1232_v62  ;;  %v3170_v15 = vld [vmem:[#allocation3 + $0x1a0] sm:$0xf0]  ;;  %v2966_v46 = vld [vmem:[#allocation3 + $0x1a4] sm:$0xf0]  ;;  %v986_v23 = vsel %vm4157_vm9, %v3554_v63, %v984_v17 }
 0x2ce   : > { %1210 = vst [vmem:[#allocation3 + $0xe4] sm:$0xff] %v1204_v42  ;;  %v1237_v16 = vsel %vm4156_vm11, %v3590_v9, %v1236_v45  ;;  %v2964_v24 = vld [vmem:[#allocation3 + $0x190] sm:$0xf]  ;;  %v3168_v13 = vld [vmem:[#allocation3 + $0x194] sm:$0xf]  ;;  %v927_v28 = vrot.slane %v3592_v10, 4 }
 0x2cf   : > { %1243 = vst [vmem:[#allocation3 + $0x10c] sm:$0xff] %v1237_v16  ;;  %v2804_v25 = vld [vmem:[#allocation3 + $0x50] sm:$0xf]  ;;  %v2965_v26 = vor.u32 %v3170_v15, %v2964_v24  ;;  %v3128_v7 = vld [vmem:[#allocation3 + $0x54] sm:$0xf]  ;;  %v2969_v12 = vor.u32 %v3168_v13, %v2966_v46  ;;  %vm1396_vm3 = vcmask 621568  }
 0x2d0   : > { %1244 = vst [vmem:[#allocation3 + $0x114] sm:$0xf] %v1238_v57  ;;  %v2805_v27 = vor.u32 %v3130_v14, %v2804_v25  ;;  %v2809_v40 = vor.u32 %v3128_v7, %v2806_v53  ;;  %vm4159_vm11 = vcmask 801792   ;;  %v954_v38 = vrot.slane %v3566_v2, 4 }
 0x2d1   : > { %993 = vst [vmem:[#allocation3 + $0x3c] sm:$0xff] %v986_v23  ;;  %1985 = vmatpush.bf16.msra.mxu3 %v2965_v26  ;;  %2011 = vmatpush.bf16.msrb.mxu1 %v2969_v12  ;;  %v3788_v9 = vpop.permute.xlu0 %1388  ;;  %v3790_v63 = vpop.permute.xlu2 %923  ;;  %vm958_vm9 = vcmask 785408   ;;  %v900_v46 = vrot.slane %v3578_v6, 4 }
 0x2d2   : > { %1972 = vmatpush.bf16.msra.mxu2 %v2805_v27  ;;  %1998 = vmatpush.bf16.msrb.mxu0 %v2809_v40  ;;  %v1393_v3 = vrot.slane %v3788_v9, 4  ;;  %v3793_v62 = vpop.permute.xlu1 %950  ;;  %v928_v37 = vrot.slane %v3790_v63, 4 }
 0x2d3   : > { %v955_v17 = vrot.slane %v3793_v62, 4 }
 0x2d4   : > { %v1395_v42 = vsel %vm266_vm0, %v1392_v29, %v1393_v3  ;;  %v930_v45 = vsel %vm266_vm0, %v927_v28, %v928_v37 }
 0x2d5   : > { %v1397_v57 = vsel %vm1396_vm3, %v3564_v1, %v1395_v42  ;;  %v957_v14 = vsel %vm266_vm0, %v954_v38, %v955_v17  ;;  %v932_v15 = vsel %vm4159_vm11, %v3592_v10, %v930_v45  ;;  %v1338_v1 = vrot.slane %v3610_v19, 4 }
 0x2d6   : > { %1404 = vst [vmem:[#allocation3 + $0x17c] sm:$0xff] %v1397_v57  ;;  %v959_v53 = vsel %vm958_vm9, %v3566_v2, %v957_v14  ;;  %vm904_vm11 = vcmask 818176  }
 0x2d7   : > { %966 = vst [vmem:[#allocation3 + $0x28] sm:$0xff] %v959_v53 }
 0x2d8   : > { %939 = vst [vmem:[#allocation3 + $0x14] sm:$0xff] %v932_v15  ;;  %v3125_v40 = vld [vmem:[#allocation3 + $0x38] sm:$0xf0]  ;;  %v2786_v29 = vld [vmem:[#allocation3 + $0x3c] sm:$0xf0] }
 0x2d9   : > { %v3814_v16 = vpop.permute.xlu2 %1334  ;;  %v3816_v23 = vpop.permute.xlu0 %896 }
 0x2da   : > { %v1169_v24 = vpop.permute.xlu1 %1168  ;;  %v1339_v13 = vrot.slane %v3814_v16, 4  ;;  %v901_v10 = vrot.slane %v3816_v23, 4 }
 0x2db   : > { %v1172_v25 = vrot.slane %v1169_v24, 4 }
 0x2dc   : > { %v1341_v2 = vsel %vm266_vm0, %v1338_v1, %v1339_v13  ;;  %v903_v26 = vsel %vm266_vm0, %v900_v46, %v901_v10  ;;  %v3844_v1 = vld [vmem:[%s4146_s1 + $0x8] sm:$0xff] }
 0x2dd   : > { %v1176_v7 = vsel %vm266_vm0, %v1171_v35, %v1172_v25  ;;  %v1178_v12 = vsel %vm1174_vm14, %v1169_v24, %v1172_v25  ;;  %v1343_v27 = vsel %vm1342_vm13, %v3610_v19, %v1341_v2  ;;  %v905_v38 = vsel %vm904_vm11, %v3578_v6, %v903_v26 }
 0x2de   : > { %v1177_v28 = vsel %vm1174_vm14, %v3629_v32, %v1176_v7  ;;  %1184 = vst [vmem:[#allocation3 + $0xd8] sm:$0xf] %v1178_v12  ;;  %v2784_v42 = vld [vmem:[#allocation3 + $0x28] sm:$0xf]  ;;  %v3123_v45 = vld [vmem:[#allocation3 + $0x2c] sm:$0xf] }
 0x2df   : > { %1183 = vst [vmem:[#allocation3 + $0xd0] sm:$0xff] %v1177_v28  ;;  %v2785_v57 = vor.u32 %v3125_v40, %v2784_v42  ;;  %v2789_v14 = vor.u32 %v3123_v45, %v2786_v29  ;;  %v1365_v32 = vrot.slane %v3576_v4, 4  ;;  %vm1369_vm14 = vcmask 637952   ;;  %v2766_v29 = vld [vmem:[#allocation3 + $0x14] sm:$0xf0] }
 0x2e0   : > { %1350 = vst [vmem:[#allocation3 + $0x154] sm:$0xff] %v1343_v27  ;;  %v1619_v40 = vunpack.c.l.b16 %v3844_v1 }
 0x2e1   : > { %912 = vst [vmem:[#allocation3] sm:$0xff] %v905_v38  ;;  %1973 = vmatpush.bf16.msra.mxu2 %v2785_v57  ;;  %1999 = vmatpush.bf16.msrb.mxu0 %v2789_v14  ;;  %v1472_v35 = vpop.permute.xlu2 %1471  ;;  %v1115_v19 = vpop.permute.xlu0 %1114 }
 0x2e2   : > { %v3837_v15 = vpop.permute.xlu1 %1361  ;;  %v1475_v53 = vrot.slane %v1472_v35, 4  ;;  %v1118_v46 = vrot.slane %v1115_v19, 4 }
 0x2e3   : > { %v1366_v6 = vrot.slane %v3837_v15, 4 }
 0x2e4   : > { %v1479_v24 = vsel %vm266_vm0, %v1474_v52, %v1475_v53  ;;  %v1481_v25 = vsel %vm1477_vm5, %v1472_v35, %v1475_v53  ;;  %v1122_v2 = vsel %vm266_vm0, %v1117_v50, %v1118_v46  ;;  %v1124_v27 = vsel %vm1120_vm2, %v1115_v19, %v1118_v46  ;;  %v3120_v50 = vld [vmem:[#allocation3 + $0x10] sm:$0xf0] }
 0x2e5   : > { %v1368_v26 = vsel %vm266_vm0, %v1365_v32, %v1366_v6  ;;  %v1480_v7 = vsel %vm1477_vm5, %v3692_v54, %v1479_v24  ;;  %1487 = vst [vmem:[#allocation3 + $0x1c8] sm:$0xf] %v1481_v25  ;;  %v1123_v12 = vsel %vm1120_vm2, %v3662_v11, %v1122_v2  ;;  %v1311_v11 = vrot.slane %v3588_v8, 4  ;;  %v3007_v53 = vld [vmem:[%s4147_s2 + $0x10] sm:$0xff] }
 0x2e6   : > { %v1370_v52 = vsel %vm1369_vm14, %v3576_v4, %v1368_v26  ;;  %1486 = vst [vmem:[#allocation3 + $0x1c0] sm:$0xff] %v1480_v7  ;;  %v3868_v19 = vpack.c.b16 %v1619_v40, %v1619_v40  ;;  %vm1315_vm5 = vcmask 670720   ;;  %2101 = vperm.xlu1 %3242, %v3007_v53  }
 0x2e7   : > { %1377 = vst [vmem:[#allocation3 + $0x168] sm:$0xff] %v1370_v52  ;;  %v2946_v52 = vld [vmem:[#allocation3 + $0x17c] sm:$0xf0] }
 0x2e8   : > { %1129 = vst [vmem:[#allocation3 + $0xa8] sm:$0xff] %v1123_v12  ;;  %v2764_v28 = vld [vmem:[#allocation3] sm:$0xf]  ;;  %v3118_v38 = vld [vmem:[#allocation3 + $0x4] sm:$0xf] }
 0x2e9   : > { %1130 = vst [vmem:[#allocation3 + $0xb0] sm:$0xf] %v1124_v27  ;;  %v2765_v54 = vor.u32 %v3120_v50, %v2764_v28  ;;  %v2769_v42 = vor.u32 %v3118_v38, %v2766_v29  ;;  %v1034_v45 = vpop.permute.xlu2 %1033  ;;  %v3864_v57 = vpop.permute.xlu0 %1307  ;;  %v3165_v12 = vld [vmem:[#allocation3 + $0x178] sm:$0xf0] }
 0x2ea   : > { %v1526_v4 = vpop.permute.xlu1 %1525  ;;  %v1037_v14 = vrot.slane %v1034_v45, 4  ;;  %v1312_v35 = vrot.slane %v3864_v57, 4 }
 0x2eb   : > { %1974 = vmatpush.bf16.msra.mxu2 %v2765_v54  ;;  %2000 = vmatpush.bf16.msrb.mxu0 %v2769_v42  ;;  %v1529_v46 = vrot.slane %v1526_v4, 4 }
 0x2ec   : > { %v1041_v32 = vsel %vm266_vm0, %v1036_v39, %v1037_v14  ;;  %v1043_v24 = vsel %vm1039_vm8, %v1034_v45, %v1037_v14  ;;  %v1314_v25 = vsel %vm266_vm0, %v1311_v11, %v1312_v35 }
 0x2ed   : > { %v1533_v2 = vsel %vm266_vm0, %v1528_v22, %v1529_v46  ;;  %v1535_v26 = vsel %vm1531_vm12, %v1526_v4, %v1529_v46  ;;  %v1042_v7 = vsel %vm1039_vm8, %v3717_v51, %v1041_v32  ;;  %1049 = vst [vmem:[#allocation3 + $0x74] sm:$0xf] %v1043_v24  ;;  %v1316_v27 = vsel %vm1315_vm5, %v3588_v8, %v1314_v25 }
 0x2ee   : > { %v1534_v39 = vsel %vm1531_vm12, %v3608_v18, %v1533_v2  ;;  %1541 = vst [vmem:[#allocation3 + $0x1f0] sm:$0xf] %v1535_v26  ;;  %v2944_v40 = vld [vmem:[#allocation3 + $0x168] sm:$0xf]  ;;  %v3163_v50 = vld [vmem:[#allocation3 + $0x16c] sm:$0xf]  ;;  %1975 = vmatmul.bf16.vlgmr.msra.gmra.mxu2 %v3868_v19  ;;  %2001 = vmatmul.bf16.vlgmr.msrb.gmra.mxu0 %v3868_v19 }
 0x2ef   : > { %v2945_v22 = vor.u32 %v3165_v12, %v2944_v40  ;;  %v2949_v29 = vor.u32 %v3163_v50, %v2946_v52  ;;  %v1821_v28 = vunpack.c.l.b16 %v1534_v39  ;;  %v1822_v51 = vunpack.c.h.b16 %v1534_v39  ;;  %1048 = vst [vmem:[#allocation3 + $0x6c] sm:$0xff] %v1042_v7  ;;  %v2912_v12 = vld [vmem:[#allocation3 + $0x120] sm:$0xf]  ;;  %v2914_v52 = vld [vmem:[#allocation3 + $0x134] sm:$0xf0] }
 0x2f0   : > { %1323 = vst [vmem:[#allocation3 + $0x140] sm:$0xff] %v1316_v27  ;;  %v1620_v39 = vunpack.c.h.b16 %v3844_v1  ;;  %v3160_v27 = vld [vmem:[#allocation3 + $0x150] sm:$0xf0]  ;;  %v2926_v40 = vld [vmem:[#allocation3 + $0x154] sm:$0xf0]  ;;  %vm4161_vm12 = vcmask 293888  }
 0x2f1   : > { %1986 = vmatpush.bf16.msra.mxu3 %v2945_v22  ;;  %2012 = vmatpush.bf16.msrb.mxu1 %v2949_v29  ;;  %v953_v38 = vpop.permute.xlu2 %952  ;;  %v1061_v18 = vpop.permute.xlu0 %1060  ;;  %v1886_v54 = vpack.c.b16 %v1821_v28, %v1821_v28  ;;  %v1887_v42 = vpack.c.b16 %v1822_v51, %v1822_v51 }
 0x2f2   : > { %v1142_v45 = vpop.permute.xlu1 %1141  ;;  %v956_v8 = vrot.slane %v953_v38, 4  ;;  %v1064_v11 = vrot.slane %v1061_v18, 4 }
 0x2f3   : > { %v1145_v4 = vrot.slane %v1142_v45, 4  ;;  %v1959_v14 = vsel %vm266_vm0, %v1886_v54, 0  ;;  %v1962_v53 = vsel %vm266_vm0, %v1887_v42, 0 }
 0x2f4   : > { %v960_v46 = vsel %vm266_vm0, %v955_v17, %v956_v8  ;;  %v962_v32 = vsel %vm958_vm9, %v953_v38, %v956_v8  ;;  %v1068_v24 = vsel %vm266_vm0, %v1063_v36, %v1064_v11  ;;  %2035 = vmatpush.bf16.msrb.mxu2 %v1959_v14  ;;  %v3156_v36 = vld [vmem:[#allocation3 + $0x130] sm:$0xf0]  ;;  %2061 = vmatpush.bf16.msra.mxu0 %v1962_v53 }
 0x2f5   : > { %v1149_v25 = vsel %vm266_vm0, %v1144_v49, %v1145_v4  ;;  %v1151_v2 = vsel %vm1147_vm6, %v1142_v45, %v1145_v4  ;;  %v961_v26 = vsel %vm958_vm9, %v3793_v62, %v960_v46  ;;  %968 = vst [vmem:[#allocation3 + $0x38] sm:$0xf] %v962_v32  ;;  %v1069_v7 = vsel %vm1066_vm15, %v3631_v33, %v1068_v24  ;;  %v3154_v33 = vld [vmem:[#allocation3 + $0x124] sm:$0xf]  ;;  %v2892_v46 = vld [vmem:[#allocation3 + $0xf8] sm:$0xf] }
 0x2f6   : > { %v1150_v17 = vsel %vm1147_vm6, %v3694_v47, %v1149_v25  ;;  %1157 = vst [vmem:[#allocation3 + $0xc4] sm:$0xf] %v1151_v2  ;;  %v1070_v49 = vsel %vm1066_vm15, %v1061_v18, %v1064_v11  ;;  %v2913_v28 = vor.u32 %v3156_v36, %v2912_v12  ;;  %v2917_v1 = vor.u32 %v3154_v33, %v2914_v52  ;;  %v3151_v18 = vld [vmem:[#allocation3 + $0x108] sm:$0xf0]  ;;  %v2894_v11 = vld [vmem:[#allocation3 + $0x10c] sm:$0xf0] }
 0x2f7   : > { %1156 = vst [vmem:[#allocation3 + $0xbc] sm:$0xff] %v1150_v17  ;;  %v2924_v62 = vld [vmem:[#allocation3 + $0x140] sm:$0xf]  ;;  %v3158_v50 = vld [vmem:[#allocation3 + $0x144] sm:$0xf]  ;;  %v3913_v45 = vpack.c.b16 %v1620_v39, %v1620_v39  ;;  %vm4163_vm6 = vcmask 769024  }
 0x2f8   : > { %967 = vst [vmem:[#allocation3 + $0x30] sm:$0xff] %v961_v26  ;;  %v2925_v47 = vor.u32 %v3160_v27, %v2924_v62  ;;  %v2929_v22 = vor.u32 %v3158_v50, %v2926_v40  ;;  %v3149_v2 = vld [vmem:[#allocation3 + $0xfc] sm:$0xf]  ;;  %v2872_v17 = vld [vmem:[#allocation3 + $0xd0] sm:$0xf]  ;;  %vm4165_vm8 = vmmov %vm4163_vm6 }
 0x2f9   : > { %1075 = vst [vmem:[#allocation3 + $0x80] sm:$0xff] %v1069_v7  ;;  %v1391_v29 = vpop.permute.xlu2 %1390  ;;  %v1499_v51 = vpop.permute.xlu0 %1498  ;;  %v3144_v7 = vld [vmem:[#allocation3 + $0xd4] sm:$0xf]  ;;  %v3146_v12 = vld [vmem:[#allocation3 + $0xe0] sm:$0xf0] }
 0x2fa   : > { %1076 = vst [vmem:[#allocation3 + $0x88] sm:$0xf] %v1070_v49  ;;  %v1088_v38 = vpop.permute.xlu1 %1087  ;;  %v1394_v54 = vrot.slane %v1391_v29, 4  ;;  %v1502_v42 = vrot.slane %v1499_v51, 4  ;;  %1987 = vmatpush.bf16.msra.mxu3 %v2925_v47  ;;  %2013 = vmatpush.bf16.msrb.mxu1 %v2929_v22  ;;  %v2874_v36 = vld [vmem:[#allocation3 + $0xe4] sm:$0xf0]  ;;  %v2873_v49 = vor.u32 %v3146_v12, %v2872_v17 }
 0x2fb   : > { %v1091_v8 = vrot.slane %v1088_v38, 4  ;;  %v2877_v27 = vor.u32 %v3144_v7, %v2874_v36  ;;  %v3131_v12 = vld [vmem:[#allocation3 + $0x68] sm:$0xf0]  ;;  %v2814_v36 = vld [vmem:[#allocation3 + $0x6c] sm:$0xf0] }
 0x2fc   : > { %v1398_v4 = vsel %vm266_vm0, %v1393_v3, %v1394_v54  ;;  %v1400_v14 = vsel %vm1396_vm3, %v1391_v29, %v1394_v54  ;;  %v1506_v53 = vsel %vm266_vm0, %v1501_v59, %v1502_v42  ;;  %v2893_v3 = vor.u32 %v3151_v18, %v2892_v46  ;;  %v2852_v54 = vld [vmem:[#allocation3 + $0xa8] sm:$0xf] }
 0x2fd   : > { %v1095_v32 = vsel %vm266_vm0, %v1090_v48, %v1091_v8  ;;  %v1097_v24 = vsel %vm1093_vm4, %v1088_v38, %v1091_v8  ;;  %v1399_v25 = vsel %vm1396_vm3, %v3788_v9, %v1398_v4  ;;  %1406 = vst [vmem:[#allocation3 + $0x18c] sm:$0xf] %v1400_v14  ;;  %v1507_v59 = vsel %vm1504_vm7, %v3715_v0, %v1506_v53  ;;  %v2992_v8 = vld [vmem:[#allocation3 + $0x1c0] sm:$0xf]  ;;  %vm4162_vm3 = vmmov %vm4161_vm12 }
 0x2fe   : > { %2019 = vmatpush.bf16.msrb.mxu3 %v2913_v28  ;;  %2045 = vmatpush.bf16.msra.mxu1 %v2917_v1  ;;  %v1096_v26 = vsel %vm1093_vm4, %v3690_v44, %v1095_v32  ;;  %1103 = vst [vmem:[#allocation3 + $0x9c] sm:$0xf] %v1097_v24  ;;  %v2897_v48 = vor.u32 %v3149_v2, %v2894_v11  ;;  %v3141_v50 = vld [vmem:[#allocation3 + $0xb8] sm:$0xf0]  ;;  %v2854_v47 = vld [vmem:[#allocation3 + $0xbc] sm:$0xf0] }
 0x2ff   : > { %3002 = vmatmul.msk.bf16.vlgmr.msra.gmra.mxu3 %vm764_vm10, %v3913_v45  ;;  %3003 = vmatmul.msk.bf16.vlgmr.msrb.gmra.mxu1 %vm764_vm10, %v3913_v45  ;;  %1102 = vst [vmem:[#allocation3 + $0x94] sm:$0xff] %v1096_v26  ;;  %v1508_v9 = vsel %vm1504_vm7, %v1499_v51, %v1502_v42  ;;  %v3174_v11 = vld [vmem:[#allocation3 + $0x1c4] sm:$0xf]  ;;  %vm4164_vm7 = vcmask 277504  }
 0x300   : > { %1405 = vst [vmem:[#allocation3 + $0x184] sm:$0xff] %v1399_v25  ;;  %v3134_v53 = vld [vmem:[#allocation3 + $0x84] sm:$0xf]  ;;  %vm4166_vm9 = vmmov %vm4164_vm7 }
 0x301   : > { %1513 = vst [vmem:[#allocation3 + $0x1d4] sm:$0xff] %v1507_v59  ;;  %v1310_v44 = vpop.permute.xlu2 %1309  ;;  %v1418_v0 = vpop.permute.xlu0 %1417 }
 0x302   : > { %2020 = vmatpush.bf16.msrb.mxu3 %v2893_v3  ;;  %2046 = vmatpush.bf16.msra.mxu1 %v2897_v48  ;;  %1514 = vst [vmem:[#allocation3 + $0x1dc] sm:$0xf] %v1508_v9  ;;  %v1007_v52 = vpop.permute.xlu1 %1006  ;;  %v1313_v39 = vrot.slane %v1310_v44, 4  ;;  %v1421_v40 = vrot.slane %v1418_v0, 4 }
 0x303   : > { %v1010_v62 = vrot.slane %v1007_v52, 4 }
 0x304   : > { %v1317_v22 = vsel %vm266_vm0, %v1312_v35, %v1313_v39  ;;  %v1319_v29 = vsel %vm1315_vm5, %v1310_v44, %v1313_v39  ;;  %v1425_v28 = vsel %vm266_vm0, %v1420_v31, %v1421_v40  ;;  %v3139_v35 = vld [vmem:[#allocation3 + $0xac] sm:$0xf]  ;;  %v2853_v31 = vor.u32 %v3141_v50, %v2852_v54 }
 0x305   : > { %v1014_v33 = vsel %vm266_vm0, %v1009_v61, %v1010_v62  ;;  %v1016_v51 = vsel %vm1012_vm1, %v1007_v52, %v1010_v62  ;;  %v1318_v38 = vsel %vm1315_vm5, %v3864_v57, %v1317_v22  ;;  %1325 = vst [vmem:[#allocation3 + $0x150] sm:$0xf] %v1319_v29  ;;  %v1426_v42 = vsel %vm4161_vm12, %v3743_v55, %v1425_v28  ;;  %v2832_v57 = vld [vmem:[#allocation3 + $0x80] sm:$0xf]  ;;  %v2792_v29 = vld [vmem:[#allocation3 + $0x30] sm:$0xf] }
 0x306   : > { %2021 = vmatpush.bf16.msrb.mxu3 %v2873_v49  ;;  %2047 = vmatpush.bf16.msra.mxu1 %v2877_v27  ;;  %v1015_v1 = vsel %vm1012_vm1, %v3747_v20, %v1014_v33  ;;  %1022 = vst [vmem:[#allocation3 + $0x60] sm:$0xf] %v1016_v51  ;;  %v2857_v18 = vor.u32 %v3139_v35, %v2854_v47  ;;  %v3136_v61 = vld [vmem:[#allocation3 + $0x90] sm:$0xf0]  ;;  %v2834_v4 = vld [vmem:[#allocation3 + $0x94] sm:$0xf0] }
 0x307   : > { %1021 = vst [vmem:[#allocation3 + $0x58] sm:$0xff] %v1015_v1  ;;  %v1427_v14 = vsel %vm4162_vm3, %v1418_v0, %v1421_v40  ;;  %v2833_v32 = vor.u32 %v3136_v61, %v2832_v57  ;;  %v2837_v24 = vor.u32 %v3134_v53, %v2834_v4  ;;  %v3124_v33 = vld [vmem:[#allocation3 + $0x34] sm:$0xf]  ;;  %vm4169_vm12 = vcmask 1031168  }
 0x308   : > { %1324 = vst [vmem:[#allocation3 + $0x148] sm:$0xff] %v1318_v38  ;;  %v3176_v46 = vld [vmem:[#allocation3 + $0x1d0] sm:$0xf0]  ;;  %v2994_v20 = vld [vmem:[#allocation3 + $0x1d4] sm:$0xf0]  ;;  %vm4170_vm3 = vcmask 15360  }
 0x309   : > { %1432 = vst [vmem:[#allocation3 + $0x198] sm:$0xff] %v1426_v42  ;;  %v2993_v55 = vor.u32 %v3176_v46, %v2992_v8  ;;  %v2997_v25 = vor.u32 %v3174_v11, %v2994_v20  ;;  %v980_v3 = vpop.permute.xlu0 %979  ;;  %v3166_v46 = vld [vmem:[#allocation3 + $0x180] sm:$0xf0]  ;;  %v2954_v20 = vld [vmem:[#allocation3 + $0x184] sm:$0xf0] }
 0x30a   : > { %2022 = vmatpush.bf16.msrb.mxu3 %v2853_v31  ;;  %2048 = vmatpush.bf16.msra.mxu1 %v2857_v18  ;;  %1433 = vst [vmem:[#allocation3 + $0x1a0] sm:$0xf] %v1427_v14  ;;  %v1445_v2 = vpop.permute.xlu1 %1444  ;;  %v983_v26 = vrot.slane %v980_v3, 4 }
 0x30b   : > { %2036 = vmatpush.bf16.msrb.mxu2 %v2993_v55  ;;  %2062 = vmatpush.bf16.msra.mxu0 %v2997_v25  ;;  %v1448_v59 = vrot.slane %v1445_v2, 4 }
 0x30c   : > { %v987_v48 = vsel %vm266_vm0, %v982_v21, %v983_v26  ;;  %v989_v9 = vsel %vm4163_vm6, %v980_v3, %v983_v26  ;;  %v1616_v3 = vld [vmem:[#allocation3 + $0x1f0] sm:$0xf] }
 0x30d   : > { %v1452_v17 = vsel %vm266_vm0, %v1447_v30, %v1448_v59  ;;  %v1454_v7 = vsel %vm4164_vm7, %v1445_v2, %v1448_v59  ;;  %v988_v44 = vsel %vm4165_vm8, %v3765_v60, %v987_v48  ;;  %995 = vst [vmem:[#allocation3 + $0x4c] sm:$0xf] %v989_v9 }
 0x30e   : > { %2023 = vmatpush.bf16.msrb.mxu3 %v2833_v32  ;;  %2049 = vmatpush.bf16.msra.mxu1 %v2837_v24  ;;  %v1453_v0 = vsel %vm4166_vm9, %v3741_v34, %v1452_v17  ;;  %1460 = vst [vmem:[#allocation3 + $0x1b4] sm:$0xf] %v1454_v7  ;;  %v2812_v52 = vld [vmem:[#allocation3 + $0x58] sm:$0xf]  ;;  %v3129_v21 = vld [vmem:[#allocation3 + $0x5c] sm:$0xf] }
 0x30f   : > { %1459 = vst [vmem:[#allocation3 + $0x1ac] sm:$0xff] %v1453_v0  ;;  %v2813_v39 = vor.u32 %v3131_v12, %v2812_v52  ;;  %v2817_v49 = vor.u32 %v3129_v21, %v2814_v36  ;;  %v2932_v26 = vld [vmem:[#allocation3 + $0x148] sm:$0xf]  ;;  %v3159_v12 = vld [vmem:[#allocation3 + $0x14c] sm:$0xf] }
 0x310   : > { %994 = vst [vmem:[#allocation3 + $0x44] sm:$0xff] %v988_v44  ;;  %v2972_v28 = vld [vmem:[#allocation3 + $0x198] sm:$0xf]  ;;  %v3169_v51 = vld [vmem:[#allocation3 + $0x19c] sm:$0xf] }
 0x311   : > { %v899_v30 = vpop.permute.xlu0 %898  ;;  %v2920_v21 = vld [vmem:[#allocation3 + $0x128] sm:$0xf] }
 0x312   : > { %2024 = vmatpush.bf16.msrb.mxu3 %v2813_v39  ;;  %2050 = vmatpush.bf16.msra.mxu1 %v2817_v49  ;;  %v1364_v27 = vpop.permute.xlu1 %1363  ;;  %v902_v40 = vrot.slane %v899_v30, 4 }
 0x313   : > { %v1367_v62 = vrot.slane %v1364_v27, 4 }
 0x314   : > { %v906_v60 = vsel %vm266_vm0, %v901_v10, %v902_v40  ;;  %v908_v50 = vsel %vm904_vm11, %v899_v30, %v902_v40  ;;  %v3152_v30 = vld [vmem:[#allocation3 + $0x110] sm:$0xf0]  ;;  %v2900_v40 = vld [vmem:[#allocation3 + $0x100] sm:$0xf] }
 0x315   : > { %v1371_v34 = vsel %vm266_vm0, %v1366_v6, %v1367_v62  ;;  %v1373_v47 = vsel %vm1369_vm14, %v1364_v27, %v1367_v62  ;;  %v907_v22 = vsel %vm904_vm11, %v3816_v23, %v906_v60  ;;  %914 = vst [vmem:[#allocation3 + $0x10] sm:$0xf] %v908_v50  ;;  %vm4167_vm11 = vcmask 801792   ;;  %v3177_v27 = vld [vmem:[#allocation3 + $0x1d8] sm:$0xf0] }
 0x316   : > { %v1372_v38 = vsel %vm1369_vm14, %v3837_v15, %v1371_v34  ;;  %1379 = vst [vmem:[#allocation3 + $0x178] sm:$0xf] %v1373_v47  ;;  %v3171_v10 = vld [vmem:[#allocation3 + $0x1a8] sm:$0xf0]  ;;  %v2974_v54 = vld [vmem:[#allocation3 + $0x1ac] sm:$0xf0]  ;;  %vm4168_vm1 = vmmov %vm4167_vm11  ;;  %v2901_v60 = vor.u32 %v3152_v30, %v2900_v40 }
 0x317   : > { %1378 = vst [vmem:[#allocation3 + $0x170] sm:$0xff] %v1372_v38  ;;  %v3126_v35 = vld [vmem:[#allocation3 + $0x40] sm:$0xf0]  ;;  %v2973_v1 = vor.u32 %v3171_v10, %v2972_v28  ;;  %v2794_v6 = vld [vmem:[#allocation3 + $0x44] sm:$0xf0]  ;;  %v2977_v42 = vor.u32 %v3169_v51, %v2974_v54 }
 0x318   : > { %913 = vst [vmem:[#allocation3 + $0x8] sm:$0xff] %v907_v22  ;;  %v2793_v31 = vor.u32 %v3126_v35, %v2792_v29  ;;  %v2797_v18 = vor.u32 %v3124_v33, %v2794_v6  ;;  %v3000_v62 = vld [vmem:[#allocation3 + $0x1c8] sm:$0xf]  ;;  %v2880_v34 = vld [vmem:[#allocation3 + $0xd8] sm:$0xf] }
 0x319   : > { %2037 = vmatpush.bf16.msrb.mxu2 %v2973_v1  ;;  %2063 = vmatpush.bf16.msra.mxu0 %v2977_v42  ;;  %v1337_v23 = vpop.permute.xlu0 %1336  ;;  %v3001_v50 = vor.u32 %v3177_v27, %v3000_v62  ;;  %v3172_v47 = vld [vmem:[#allocation3 + $0x1b0] sm:$0xf0]  ;;  %v3147_v22 = vld [vmem:[#allocation3 + $0xe8] sm:$0xf0]  ;;  %v2980_v29 = vld [vmem:[#allocation3 + $0x1a0] sm:$0xf] }
 0x31a   : > { %2025 = vmatpush.bf16.msrb.mxu3 %v2793_v31  ;;  %2051 = vmatpush.bf16.msra.mxu1 %v2797_v18  ;;  %v926_v8 = vpop.permute.xlu1 %925  ;;  %v1340_v11 = vrot.slane %v1337_v23, 4  ;;  %v2881_v28 = vor.u32 %v3147_v22, %v2880_v34  ;;  %v2981_v33 = vor.u32 %v3172_v47, %v2980_v29  ;;  %v3142_v51 = vld [vmem:[#allocation3 + $0xc0] sm:$0xf0]  ;;  %v2860_v10 = vld [vmem:[#allocation3 + $0xb0] sm:$0xf] }
 0x31b   : > { %v929_v61 = vrot.slane %v926_v8, 4  ;;  %v3167_v54 = vld [vmem:[#allocation3 + $0x188] sm:$0xf0]  ;;  %v2861_v35 = vor.u32 %v3142_v51, %v2860_v10  ;;  %v3137_v6 = vld [vmem:[#allocation3 + $0x98] sm:$0xf0] }
 0x31c   : > { %v1344_v15 = vsel %vm266_vm0, %v1339_v13, %v1340_v11  ;;  %v1346_v4 = vsel %vm1342_vm13, %v1337_v23, %v1340_v11  ;;  %v2840_v31 = vld [vmem:[#allocation3 + $0x88] sm:$0xf]  ;;  %v2940_v18 = vld [vmem:[#allocation3 + $0x150] sm:$0xf]  ;;  %v2820_v11 = vld [vmem:[#allocation3 + $0x60] sm:$0xf] }
 0x31d   : > { %v933_v14 = vsel %vm266_vm0, %v928_v37, %v929_v61  ;;  %v935_v57 = vsel %vm4167_vm11, %v926_v8, %v929_v61  ;;  %v1345_v53 = vsel %vm1342_vm13, %v3814_v16, %v1344_v15  ;;  %1352 = vst [vmem:[#allocation3 + $0x164] sm:$0xf] %v1346_v4  ;;  %v1823_v37 = vunpack.c.l.b16 %v1616_v3  ;;  %v3157_v16 = vld [vmem:[#allocation3 + $0x138] sm:$0xf0]  ;;  %v2960_v38 = vld [vmem:[#allocation3 + $0x178] sm:$0xf] }
 0x31e   : > { %v934_v32 = vsel %vm4168_vm1, %v3790_v63, %v933_v14  ;;  %941 = vst [vmem:[#allocation3 + $0x24] sm:$0xf] %v935_v57  ;;  %v2952_v24 = vld [vmem:[#allocation3 + $0x170] sm:$0xf]  ;;  %v3164_v13 = vld [vmem:[#allocation3 + $0x174] sm:$0xf]  ;;  %v2921_v39 = vor.u32 %v3157_v16, %v2920_v21  ;;  %v2961_v1 = vor.u32 %v3167_v54, %v2960_v38  ;;  %v2841_v23 = vor.u32 %v3137_v6, %v2840_v31 }
 0x31f   : > { %940 = vst [vmem:[#allocation3 + $0x1c] sm:$0xff] %v934_v32  ;;  %v2953_v55 = vor.u32 %v3166_v46, %v2952_v24  ;;  %v2957_v25 = vor.u32 %v3164_v13, %v2954_v20  ;;  %v2772_v2 = vld [vmem:[#allocation3 + $0x8] sm:$0xf]  ;;  %v3119_v48 = vld [vmem:[#allocation3 + $0xc] sm:$0xf]  ;;  %v1888_v17 = vpack.c.b16 %v1823_v37, %v1823_v37 }
 0x320   : > { %1351 = vst [vmem:[#allocation3 + $0x15c] sm:$0xff] %v1345_v53  ;;  %v3132_v61 = vld [vmem:[#allocation3 + $0x70] sm:$0xf0]  ;;  %v3127_v4 = vld [vmem:[#allocation3 + $0x48] sm:$0xf0] }
 0x321   : > { %2038 = vmatpush.bf16.msrb.mxu2 %v2953_v55  ;;  %2064 = vmatpush.bf16.msra.mxu0 %v2957_v25  ;;  %v1965_v49 = vsel %vm266_vm0, %v1888_v17, 0  ;;  %v2821_v15 = vor.u32 %v3132_v61, %v2820_v11  ;;  %v2800_v14 = vld [vmem:[#allocation3 + $0x38] sm:$0xf]  ;;  %v2780_v46 = vld [vmem:[#allocation3 + $0x10] sm:$0xf]  ;;  %v3095_v61 = vld [vmem:[%s4148_s3 + $0x18] sm:$0xff] }
 0x322   : > { %v2801_v57 = vor.u32 %v3127_v4, %v2800_v14 }
 0x324   : > { %v3162_v42 = vld [vmem:[#allocation3 + $0x160] sm:$0xf0] }
 0x325   : > { %v2941_v8 = vor.u32 %v3162_v42, %v2940_v18  ;;  %v3122_v53 = vld [vmem:[#allocation3 + $0x20] sm:$0xf0] }
 0x326   : > { %v3121_v59 = vld [vmem:[#allocation3 + $0x18] sm:$0xf0]  ;;  %v2774_v9 = vld [vmem:[#allocation3 + $0x1c] sm:$0xf0]  ;;  %v2781_v20 = vor.u32 %v3122_v53, %v2780_v46 }
 0x327   : > { %v2773_v7 = vor.u32 %v3121_v59, %v2772_v2  ;;  %v3161_v63 = vld [vmem:[#allocation3 + $0x158] sm:$0xf0]  ;;  %v2777_v44 = vor.u32 %v3119_v48, %v2774_v9  ;;  %v2934_v36 = vld [vmem:[#allocation3 + $0x15c] sm:$0xf0] }
 0x328   : > { %v2933_v0 = vor.u32 %v3161_v63, %v2932_v26  ;;  %v2937_v52 = vor.u32 %v3159_v12, %v2934_v36 }
 0x329   : > { %2026 = vmatpush.bf16.msrb.mxu3 %v2773_v7  ;;  %2052 = vmatpush.bf16.msra.mxu1 %v2777_v44 }
 0x32a   : > { %2039 = vmatpush.bf16.msrb.mxu2 %v2933_v0  ;;  %2065 = vmatpush.bf16.msra.mxu0 %v2937_v52 }
 0x32c   : > { %2027 = vmatmul.bf16.vlgmr.msrb.gmra.mxu3 %v3868_v19  ;;  %2053 = vmatmul.bf16.vlgmr.msra.gmra.mxu1 %v3868_v19 }
 0x32d   : > { %2087 = vmatpush.bf16.msra.mxu3 %v1965_v49  ;;  %3004 = vmatmul.msk.bf16.vlgmr.msrb.gmra.mxu2 %vm764_vm10, %v3913_v45 }
 0x32e   : > { %2071 = vmatpush.bf16.msra.mxu2 %v2921_v39  ;;  %3005 = vmatmul.msk.bf16.vlgmr.msra.gmra.mxu0 %vm764_vm10, %v3913_v45 }
 0x331   : > { %2088 = vmatpush.bf16.msra.mxu3 %v3001_v50 }
 0x332   : > { %2072 = vmatpush.bf16.msra.mxu2 %v2901_v60 }
 0x335   : > { %2089 = vmatpush.bf16.msra.mxu3 %v2981_v33 }
 0x336   : > { %2073 = vmatpush.bf16.msra.mxu2 %v2881_v28 }
 0x339   : > { %2090 = vmatpush.bf16.msra.mxu3 %v2961_v1 }
 0x33a   : > { %2074 = vmatpush.bf16.msra.mxu2 %v2861_v35 }
 0x33d   : > { %2091 = vmatpush.bf16.msra.mxu3 %v2941_v8 }
 0x33e   : > { %2075 = vmatpush.bf16.msra.mxu2 %v2841_v23 }
 0x340   : > { %3006 = vmatmul.msk.bf16.vlgmr.msra.gmra.mxu3 %vm764_vm10, %v3913_v45  ;;  %v2114_v45 = vpop.permute.xlu2 %2113 }
 0x342   : > { %2076 = vmatpush.bf16.msra.mxu2 %v2821_v15 }
 0x346   : > { %2077 = vmatpush.bf16.msra.mxu2 %v2801_v57 }
 0x34a   : > { %2078 = vmatpush.bf16.msra.mxu2 %v2781_v20 }
 0x34d   : > { %2079 = vmatmul.bf16.vlgmr.msra.gmra.mxu2 %v3868_v19 }
 0x358   : > { %v2102_v3 = vpop.permute.xlu1 %2101 }
 0x36b   : > { %v2002_v32 = vpop.f32.mrf.mxu0 }
 0x371   : > { %v1976_v24 = vpop.f32.mrf.mxu2 }
 0x373   : > { %v2004_v13 = vpop.f32.mrf.mxu0 }
 0x379   : > { %v1978_v55 = vpop.f32.mrf.mxu2 }
 0x37c   : > { %v2015_v25 = vpop.f32.mrf.mxu1 }
 0x37d   : > { %v2016_v37 = vadd.f32 %v2015_v25, %v2002_v32 }
 0x37f   : > { %v2105_v2 = vmul.f32 %v2102_v3, %v2016_v37 }
 0x381   : > { %v2117_v16 = vadd.f32 %v2114_v45, %v2105_v2 }
 0x382   : > { %v1989_v26 = vpop.f32.mrf.mxu3 }
 0x383   : > { %v1990_v59 = vadd.f32 %v1989_v26, %v1976_v24  ;;  %v2122_v17 = vmax.f32 %v2117_v16, 0.0 }
 0x384   : > { %v2017_v48 = vpop.f32.mrf.mxu1 }
 0x385   : > { %v2104_v9 = vmul.f32 %v2102_v3, %v1990_v59  ;;  %v2127_v12 = vmul.f32 %v2122_v17, %v3349_v43 }
 0x387   : > { %v2116_v7 = vadd.f32 %v2114_v45, %v2104_v9 }
 0x389   : > { %v2121_v63 = vmax.f32 %v2116_v7, 0.0 }
 0x38a   : > { %v1991_v44 = vpop.f32.mrf.mxu3 }
 0x38b   : > { %v2126_v19 = vmul.f32 %v2121_v63, %v3347_v41 }
 0x38d   : > { %v2131_v36 = vpack.c.bf16 %v2127_v12, %v2126_v19 }
 0x38f   : > { %2134 = vst [vmem:[#allocation2 + $0x4] sm:$0xff] %v2131_v36  ;;  %2331 = vrot.lane.b32.xlu0 %v2131_v36, %s3276_s15  ;;  %2305 = vrot.lane.b32.xlu1 %v2131_v36, %s3281_s23 }
 0x390   : > { %2279 = vrot.lane.b32.xlu2 %v2131_v36, %s3283_s20  ;;  %2244 = vst [vmem:[#allocation3 + $0x50] sm:$0xff] %v2131_v36 }
 0x396   : > { %v2215_v0 = vld [vmem:[#allocation2] sm:$0xff] }
 0x397   : > { %2253 = vrot.lane.b32.xlu1 %v2131_v36, %s3261_s25  ;;  %2195 = vrot.lane.b32.xlu0 %v2215_v0, %s3268_s7 }
 0x398   : > { %2221 = vrot.lane.b32.xlu2 %v2215_v0, %s3264_s28 }
 0x39f   : > { %2143 = vrot.lane.b32.xlu0 %v2215_v0, %s3267_s6 }
 0x3a0   : > { %2169 = vrot.lane.b32.xlu2 %v2215_v0, %s3271_s10 }
 0x3a9   : > { %v2054_v41 = vpop.f32.mrf.mxu1 }
 0x3ab   : > { %v2067_v43 = vpop.f32.mrf.mxu0 }
 0x3ac   : > { %v2068_v52 = vadd.f32 %v2067_v43, %v2054_v41 }
 0x3ae   : > { %v2107_v21 = vmul.f32 %v2102_v3, %v2068_v52 }
 0x3af   : > { %v2028_v39 = vpop.f32.mrf.mxu3 }
 0x3b0   : > { %v2041_v49 = vpop.f32.mrf.mxu2  ;;  %v2119_v30 = vadd.f32 %v2114_v45, %v2107_v21 }
 0x3b1   : > { %v2042_v27 = vadd.f32 %v2041_v49, %v2028_v39  ;;  %v2056_v40 = vpop.f32.mrf.mxu1 }
 0x3b2   : > { %v2124_v50 = vmax.f32 %v2119_v30, 0.0 }
 0x3b3   : > { %v2069_v62 = vpop.f32.mrf.mxu0  ;;  %v2106_v60 = vmul.f32 %v2102_v3, %v2042_v27 }
 0x3b4   : > { %v2129_v28 = vmul.f32 %v2124_v50, %v3355_v58 }
 0x3b5   : > { %v2118_v34 = vadd.f32 %v2114_v45, %v2106_v60 }
 0x3b7   : > { %v2123_v47 = vmax.f32 %v2118_v34, 0.0  ;;  %v2030_v22 = vpop.f32.mrf.mxu3 }
 0x3b8   : > { %v2043_v29 = vpop.f32.mrf.mxu2 }
 0x3b9   : > { %v2128_v33 = vmul.f32 %v2123_v47, %v3353_v56 }
 0x3bb   : > { %v2132_v51 = vpack.c.bf16 %v2129_v28, %v2128_v33 }
 0x3bd   : > { %2135 = vst [vmem:[#allocation2 + $0xc] sm:$0xff] %v2132_v51  ;;  %2333 = vrot.lane.b32.xlu1 %v2132_v51, %s3276_s15  ;;  %2307 = vrot.lane.b32.xlu2 %v2132_v51, %s3281_s23 }
 0x3be   : > { %2281 = vrot.lane.b32.xlu0 %v2132_v51, %s3283_s20  ;;  %2245 = vst [vmem:[#allocation3 + $0x58] sm:$0xff] %v2132_v51 }
 0x3c3   : > { %v2093_v38 = vpop.f32.mrf.mxu3 }
 0x3c4   : > { %v2216_v10 = vld [vmem:[#allocation2 + $0x8] sm:$0xff] }
 0x3c5   : > { %2255 = vrot.lane.b32.xlu2 %v2132_v51, %s3261_s25  ;;  %2197 = vrot.lane.b32.xlu1 %v2216_v10, %s3268_s7 }
 0x3c6   : > { %2223 = vrot.lane.b32.xlu0 %v2216_v10, %s3264_s28 }
 0x3cb   : > { %v2095_v58 = vpop.f32.mrf.mxu3 }
 0x3cd   : > { %2145 = vrot.lane.b32.xlu1 %v2216_v10, %s3267_s6 }
 0x3d0   : > { %v2080_v54 = vpop.f32.mrf.mxu2 }
 0x3d1   : > { %v2094_v56 = vadd.f32 %v2093_v38, %v2080_v54 }
 0x3d3   : > { %v2108_v35 = vmul.f32 %v2102_v3, %v2094_v56 }
 0x3d5   : > { %v2120_v1 = vadd.f32 %v2114_v45, %v2108_v35 }
 0x3d7   : > { %v2125_v6 = vmax.f32 %v2120_v1, 0.0 }
 0x3d8   : > { %v2082_v42 = vpop.f32.mrf.mxu2 }
 0x3d9   : > { %v2130_v31 = vmul.f32 %v2125_v6, %v3362_v5  ;;  %v3094_v5 = vld [vmem:[%s4147_s2 + $0x18] sm:$0xff] }
 0x3db   : > { %v2133_v18 = vpack.c.bf16 %v2130_v31, %v2130_v31  ;;  %v3051_v31 = vld [vmem:[#allocation3 + $0x50] sm:$0xf] }
 0x3dd   : > { %2136 = vst [vmem:[#allocation2 + $0x14] sm:$0xf] %v2133_v18 }
 0x3e4   : > { %v2301_v23 = vld [vmem:[#allocation2 + $0x14] sm:$0xff] }
 0x3e5   : > { %v2243_v8 = vld [vmem:[#allocation2 + $0x14] sm:$0xf]  ;;  %2309 = vrot.lane.b32.xlu2 %v2301_v23, %s3281_s23  ;;  %2335 = vrot.lane.b32.xlu0 %v2301_v23, %s3276_s15 }
 0x3e6   : > { %2246 = vst [vmem:[#allocation3 + $0x60] sm:$0xf] %v2243_v8  ;;  %2283 = vrot.lane.b32.xlu1 %v2301_v23, %s3283_s20  ;;  %v2191_v11 = vld [vmem:[#allocation2 + $0x10] sm:$0xff] }
 0x3ea   : > { %v2280_v15 = vpop.permute.xlu2 %2279 }
 0x3eb   : > { %v2285_v7 = vrot.slane %v2280_v15, 4 }
 0x3ed   : > { %2199 = vrot.lane.b32.xlu2 %v2191_v11, %s3268_s7  ;;  %2171 = vrot.lane.b32.xlu0 %v2216_v10, %s3271_s10 }
 0x3ee   : > { %2257 = vrot.lane.b32.xlu1 %v2301_v23, %s3261_s25 }
 0x3f2   : > { %v2222_v4 = vpop.permute.xlu2 %2221 }
 0x3f3   : > { %v2227_v62 = vrot.slane %v2222_v4, 4 }
 0x3f5   : > { %2173 = vrot.lane.b32.xlu2 %v2191_v11, %s3271_s10  ;;  %2225 = vrot.lane.b32.xlu0 %v2191_v11, %s3264_s28 }
 0x3f6   : > { %2147 = vrot.lane.b32.xlu1 %v2191_v11, %s3267_s6  ;;  %v3188_v11 = vld [vmem:[#allocation3 + $0x54] sm:$0xf]  ;;  %s4175_s6 = smul.u32 40, %s4177_s19 }
 0x3f8   : > { %s224_s14 = scalar_lea.vmem %s4150_s5, %s4175_s6 }
 0x3fa   : > { %v4036_v14 = vpop.permute.xlu2 %2169 }
 0x3fd   : > { %2583 = vperm.xlu0 %3240, %v3094_v5  }
 0x3fe   : > { %2595 = vperm.xlu1 %3242, %v3095_v61  }
 0x401   : > { %v2306_v57 = vpop.permute.xlu1 %2305  ;;  %v2332_v53 = vpop.permute.xlu0 %2331 }
 0x402   : > { %v2311_v20 = vrot.slane %v2306_v57, 4  ;;  %v2337_v48 = vrot.slane %v2332_v53, 4 }
 0x409   : > { %v2254_v55 = vpop.permute.xlu1 %2253  ;;  %v2196_v25 = vpop.permute.xlu0 %2195 }
 0x40a   : > { %v2259_v37 = vrot.slane %v2254_v55, 4  ;;  %v2201_v39 = vrot.slane %v2196_v25, 4 }
 0x411   : > { %v2144_v16 = vpop.permute.xlu0 %2143 }
 0x412   : > { %v2149_v18 = vrot.slane %v2144_v16, 4 }
 0x417   : > { %v4038_v46 = vpop.permute.xlu2 %2307 }
 0x418   : > { %v2312_v32 = vrot.slane %v4038_v46, 4 }
 0x41a   : > { %v2314_v24 = vsel %vm266_vm0, %v2311_v20, %v2312_v32 }
 0x41b   : > { %v2315_v13 = vsel %vm1342_vm13, %v2306_v57, %v2314_v24 }
 0x41c   : > { %2322 = vst [vmem:[#allocation3 + $0x8c] sm:$0xff] %v2315_v13 }
 0x41f   : > { %v4043_v3 = vpop.permute.xlu2 %2255 }
 0x420   : > { %v2260_v2 = vrot.slane %v4043_v3, 4 }
 0x422   : > { %v2262_v45 = vsel %vm266_vm0, %v2259_v37, %v2260_v2 }
 0x423   : > { %v2263_v26 = vsel %vm4169_vm12, %v2254_v55, %v2262_v45  ;;  %v3195_v22 = vld [vmem:[#allocation3 + $0x88] sm:$0xf0]  ;;  %v3073_v29 = vld [vmem:[#allocation3 + $0x8c] sm:$0xf0] }
 0x424   : > { %2270 = vst [vmem:[#allocation3 + $0x64] sm:$0xff] %v2263_v26 }
 0x42b   : > { %v3190_v56 = vld [vmem:[#allocation3 + $0x60] sm:$0xf0]  ;;  %v3053_v35 = vld [vmem:[#allocation3 + $0x64] sm:$0xf0] }
 0x42c   : > { %v3052_v5 = vor.u32 %v3190_v56, %v3051_v31  ;;  %v3056_v61 = vor.u32 %v3188_v11, %v3053_v35 }
 0x42f   : > { %v4050_v59 = vpop.permute.xlu1 %2333 }
 0x430   : > { %v2338_v9 = vrot.slane %v4050_v59, 4  ;;  %v4053_v17 = vpop.permute.xlu0 %2281 }
 0x431   : > { %v2286_v63 = vrot.slane %v4053_v17, 4 }
 0x432   : > { %v2340_v44 = vsel %vm266_vm0, %v2337_v48, %v2338_v9 }
 0x433   : > { %v2341_v19 = vsel %vm1369_vm14, %v2332_v53, %v2340_v44  ;;  %v2288_v12 = vsel %vm266_vm0, %v2285_v7, %v2286_v63 }
 0x434   : > { %2348 = vst [vmem:[#allocation3 + $0xa0] sm:$0xff] %v2341_v19  ;;  %v2289_v36 = vsel %vm1315_vm5, %v2280_v15, %v2288_v12  ;;  %v2446_v0 = vunpack.c.l.b16 %v2341_v19  ;;  %v2447_v41 = vunpack.c.h.b16 %v2341_v19 }
 0x435   : > { %2296 = vst [vmem:[#allocation3 + $0x78] sm:$0xff] %v2289_v36 }
 0x436   : > { %v2471_v43 = vpack.c.b16 %v2446_v0, %v2446_v0  ;;  %v2472_v52 = vpack.c.b16 %v2447_v41, %v2447_v41 }
 0x437   : > { %v2198_v21 = vpop.permute.xlu1 %2197 }
 0x438   : > { %v4064_v49 = vpop.permute.xlu0 %2223  ;;  %v2202_v30 = vrot.slane %v2198_v21, 4  ;;  %v2500_v27 = vsel %vm266_vm0, %v2471_v43, 0  ;;  %v2503_v40 = vsel %vm266_vm0, %v2472_v52, 0 }
 0x439   : > { %v2228_v60 = vrot.slane %v4064_v49, 4  ;;  %2517 = vmatpush.bf16.msrb.mxu0 %v2500_v27  ;;  %2530 = vmatpush.bf16.msrb.mxu1 %v2503_v40 }
 0x43a   : > { %v2204_v50 = vsel %vm266_vm0, %v2201_v39, %v2202_v30 }
 0x43b   : > { %v2230_v34 = vsel %vm266_vm0, %v2227_v62, %v2228_v60  ;;  %v2205_v47 = vsel %vm1120_vm2, %v2196_v25, %v2204_v50 }
 0x43c   : > { %v2231_v33 = vsel %vm4170_vm3, %v2222_v4, %v2230_v34  ;;  %2212 = vst [vmem:[#allocation3 + $0x28] sm:$0xff] %v2205_v47  ;;  %v3071_v51 = vld [vmem:[#allocation3 + $0x78] sm:$0xf]  ;;  %v3193_v38 = vld [vmem:[#allocation3 + $0x7c] sm:$0xf] }
 0x43d   : > { %2238 = vst [vmem:[#allocation3 + $0x3c] sm:$0xff] %v2231_v33  ;;  %v3072_v58 = vor.u32 %v3195_v22, %v3071_v51  ;;  %v3076_v54 = vor.u32 %v3193_v38, %v3073_v29 }
 0x43f   : > { %v2310_v28 = vpop.permute.xlu2 %2309  ;;  %v4077_v42 = vpop.permute.xlu1 %2145  ;;  %2518 = vmatpush.bf16.msrb.mxu0 %v3072_v58  ;;  %2531 = vmatpush.bf16.msrb.mxu1 %v3076_v54 }
 0x440   : > { %v2313_v10 = vrot.slane %v2310_v28, 4  ;;  %v2150_v8 = vrot.slane %v4077_v42, 4 }
 0x442   : > { %v2316_v1 = vsel %vm266_vm0, %v2312_v32, %v2313_v10  ;;  %v2318_v6 = vsel %vm1342_vm13, %v2310_v28, %v2313_v10  ;;  %v2152_v15 = vsel %vm266_vm0, %v2149_v18, %v2150_v8 }
 0x443   : > { %v2317_v23 = vsel %vm1342_vm13, %v4038_v46, %v2316_v1  ;;  %2324 = vst [vmem:[#allocation3 + $0x9c] sm:$0xf] %v2318_v6  ;;  %v2153_v4 = vsel %vm1066_vm15, %v2144_v16, %v2152_v15  ;;  %2519 = vmatpush.bf16.msrb.mxu0 %v3052_v5  ;;  %2532 = vmatpush.bf16.msrb.mxu1 %v3056_v61  ;;  %v3031_v57 = vld [vmem:[#allocation3 + $0x28] sm:$0xf]  ;;  %v3183_v53 = vld [vmem:[#allocation3 + $0x2c] sm:$0xf] }
 0x444   : > { %2323 = vst [vmem:[#allocation3 + $0x94] sm:$0xff] %v2317_v23  ;;  %v3185_v46 = vld [vmem:[#allocation3 + $0x38] sm:$0xf0]  ;;  %v3033_v32 = vld [vmem:[#allocation3 + $0x3c] sm:$0xf0] }
 0x445   : > { %2160 = vst [vmem:[#allocation3] sm:$0xff] %v2153_v4  ;;  %v3032_v13 = vor.u32 %v3185_v46, %v3031_v57  ;;  %v3036_v55 = vor.u32 %v3183_v53, %v3033_v32  ;;  %v3059_v32 = vld [vmem:[#allocation3 + $0x58] sm:$0xf] }
 0x447   : > { %v2200_v20 = vpop.permute.xlu2 %2199  ;;  %2520 = vmatpush.bf16.msrb.mxu0 %v3032_v13  ;;  %2533 = vmatpush.bf16.msrb.mxu1 %v3036_v55  ;;  %v3189_v55 = vld [vmem:[#allocation3 + $0x5c] sm:$0xf] }
 0x448   : > { %v2203_v24 = vrot.slane %v2200_v20, 4 }
 0x44a   : > { %v2206_v25 = vsel %vm266_vm0, %v2202_v30, %v2203_v24  ;;  %v2208_v37 = vsel %vm1120_vm2, %v2200_v20, %v2203_v24 }
 0x44b   : > { %v2207_v45 = vsel %vm1120_vm2, %v2198_v21, %v2206_v25  ;;  %2214 = vst [vmem:[#allocation3 + $0x38] sm:$0xf] %v2208_v37  ;;  %v3196_v51 = vld [vmem:[#allocation3 + $0x90] sm:$0xf0]  ;;  %v3081_v38 = vld [vmem:[#allocation3 + $0x94] sm:$0xf0]  ;;  %vm4171_vm2 = vmmov %vm4169_vm12 }
 0x44c   : > { %2213 = vst [vmem:[#allocation3 + $0x30] sm:$0xff] %v2207_v45  ;;  %vm4172_vm13 = vmmov %vm4171_vm2  ;;  %v3011_v5 = vld [vmem:[#allocation3] sm:$0xf]  ;;  %v3178_v61 = vld [vmem:[#allocation3 + $0x4] sm:$0xf] }
 0x44f   : > { %v2174_v26 = vpop.permute.xlu2 %2173 }
 0x450   : > { %v2177_v16 = vrot.slane %v2174_v26, 4 }
 0x452   : > { %v2182_v48 = vsel %vm1093_vm4, %v2174_v26, %v2177_v16 }
 0x453   : > { %2188 = vst [vmem:[#allocation3 + $0x24] sm:$0xf] %v2182_v48 }
 0x457   : > { %v2336_v7 = vpop.permute.xlu0 %2335 }
 0x458   : > { %v2339_v44 = vrot.slane %v2336_v7, 4  ;;  %v2284_v19 = vpop.permute.xlu1 %2283 }
 0x459   : > { %v2287_v12 = vrot.slane %v2284_v19, 4 }
 0x45a   : > { %v2342_v36 = vsel %vm266_vm0, %v2338_v9, %v2339_v44  ;;  %v2344_v0 = vsel %vm1369_vm14, %v2336_v7, %v2339_v44  ;;  %v3039_v7 = vld [vmem:[#allocation3 + $0x30] sm:$0xf] }
 0x45b   : > { %v2343_v41 = vsel %vm1369_vm14, %v4050_v59, %v2342_v36  ;;  %2350 = vst [vmem:[#allocation3 + $0xb0] sm:$0xf] %v2344_v0  ;;  %v2290_v43 = vsel %vm266_vm0, %v2286_v63, %v2287_v12  ;;  %v2292_v52 = vsel %vm1315_vm5, %v2284_v19, %v2287_v12  ;;  %v2175_v59 = vrot.slane %v4036_v14, 4  ;;  %vm4174_vm14 = vmmov %vm4170_vm3  ;;  %v3184_v12 = vld [vmem:[#allocation3 + $0x34] sm:$0xf] }
 0x45c   : > { %2349 = vst [vmem:[#allocation3 + $0xa8] sm:$0xff] %v2343_v41  ;;  %v2291_v21 = vsel %vm1315_vm5, %v4053_v17, %v2290_v43  ;;  %v2448_v39 = vunpack.c.l.b16 %v2343_v41  ;;  %v2449_v30 = vunpack.c.h.b16 %v2343_v41  ;;  %v3067_v43 = vld [vmem:[#allocation3 + $0x60] sm:$0xf] }
 0x45d   : > { %2297 = vst [vmem:[#allocation3 + $0x80] sm:$0xff] %v2291_v21 }
 0x45e   : > { %2298 = vst [vmem:[#allocation3 + $0x88] sm:$0xf] %v2292_v52  ;;  %v2473_v9 = vpack.c.b16 %v2448_v39, %v2448_v39  ;;  %v2474_v27 = vpack.c.b16 %v2449_v30, %v2449_v30 }
 0x45f   : > { %v2172_v40 = vpop.permute.xlu0 %2171 }
 0x460   : > { %v2176_v62 = vrot.slane %v2172_v40, 4  ;;  %v2258_v50 = vpop.permute.xlu1 %2257  ;;  %v2506_v34 = vsel %vm266_vm0, %v2473_v9, 0  ;;  %v2509_v63 = vsel %vm266_vm0, %v2474_v27, 0 }
 0x461   : > { %v2261_v47 = vrot.slane %v2258_v50, 4  ;;  %2543 = vmatpush.bf16.msrb.mxu3 %v2506_v34  ;;  %2556 = vmatpush.bf16.msrb.mxu2 %v2509_v63  ;;  %v3182_v63 = vld [vmem:[#allocation3 + $0x20] sm:$0xf0] }
 0x462   : > { %v2178_v17 = vsel %vm266_vm0, %v2175_v59, %v2176_v62  ;;  %v2180_v22 = vsel %vm266_vm0, %v2176_v62, %v2177_v16  ;;  %v2377_v10 = vld [vmem:[#allocation3 + $0xb0] sm:$0xf]  ;;  %v3047_v62 = vld [vmem:[#allocation3 + $0x38] sm:$0xf] }
 0x463   : > { %v2179_v29 = vsel %vm1093_vm4, %v4036_v14, %v2178_v17  ;;  %v2181_v28 = vsel %vm1093_vm4, %v2172_v40, %v2180_v22  ;;  %v2264_v33 = vsel %vm266_vm0, %v2260_v2, %v2261_v47  ;;  %v2266_v54 = vsel %vm4172_vm13, %v2258_v50, %v2261_v47  ;;  %vm4173_vm4 = vmmov %vm4170_vm3 }
 0x464   : > { %2186 = vst [vmem:[#allocation3 + $0x14] sm:$0xff] %v2179_v29  ;;  %v2265_v58 = vsel %vm4171_vm2, %v4043_v3, %v2264_v33  ;;  %v3079_v56 = vld [vmem:[#allocation3 + $0x80] sm:$0xf]  ;;  %v3194_v35 = vld [vmem:[#allocation3 + $0x84] sm:$0xf]  ;;  %v2450_v6 = vunpack.c.l.b16 %v2377_v10 }
 0x465   : > { %2187 = vst [vmem:[#allocation3 + $0x1c] sm:$0xff] %v2181_v28  ;;  %v3080_v1 = vor.u32 %v3196_v51, %v3079_v56  ;;  %v3084_v14 = vor.u32 %v3194_v35, %v3081_v38  ;;  %v3087_v16 = vld [vmem:[#allocation3 + $0x88] sm:$0xf] }
 0x466   : > { %2271 = vst [vmem:[#allocation3 + $0x6c] sm:$0xff] %v2265_v58  ;;  %v2475_v15 = vpack.c.b16 %v2450_v6, %v2450_v6 }
 0x467   : > { %2272 = vst [vmem:[#allocation3 + $0x74] sm:$0xf] %v2266_v54  ;;  %v2226_v31 = vpop.permute.xlu0 %2225  ;;  %2544 = vmatpush.bf16.msrb.mxu3 %v3080_v1  ;;  %2557 = vmatpush.bf16.msrb.mxu2 %v3084_v14 }
 0x468   : > { %v2229_v2 = vrot.slane %v2226_v31, 4  ;;  %v2148_v18 = vpop.permute.xlu1 %2147 }
 0x469   : > { %v2151_v23 = vrot.slane %v2148_v18, 4 }
 0x46a   : > { %v2232_v3 = vsel %vm266_vm0, %v2228_v60, %v2229_v2  ;;  %v2234_v11 = vsel %vm4173_vm4, %v2226_v31, %v2229_v2 }
 0x46b   : > { %v2233_v4 = vsel %vm4174_vm14, %v4064_v49, %v2232_v3  ;;  %2240 = vst [vmem:[#allocation3 + $0x4c] sm:$0xf] %v2234_v11  ;;  %v2154_v57 = vsel %vm266_vm0, %v2150_v8, %v2151_v23  ;;  %v2156_v53 = vsel %vm1066_vm15, %v2148_v18, %v2151_v23  ;;  %v3180_v20 = vld [vmem:[#allocation3 + $0x10] sm:$0xf0]  ;;  %v3013_v46 = vld [vmem:[#allocation3 + $0x14] sm:$0xf0] }
 0x46c   : > { %2239 = vst [vmem:[#allocation3 + $0x44] sm:$0xff] %v2233_v4  ;;  %v2155_v60 = vsel %vm1066_vm15, %v4077_v42, %v2154_v57  ;;  %v3012_v24 = vor.u32 %v3180_v20, %v3011_v5  ;;  %v3016_v13 = vor.u32 %v3178_v61, %v3013_v46  ;;  %v2378_v49 = vld [vmem:[%s4146_s1 + $0x10] sm:$0xf]  ;;  %v2512_v8 = vsel %vm266_vm0, %v2475_v15, 0  ;;  %v3197_v42 = vld [vmem:[#allocation3 + $0x98] sm:$0xf0] }
 0x46d   : > { %2161 = vst [vmem:[#allocation3 + $0x8] sm:$0xff] %v2155_v60  ;;  %v3191_v25 = vld [vmem:[#allocation3 + $0x68] sm:$0xf0]  ;;  %v3061_v37 = vld [vmem:[#allocation3 + $0x6c] sm:$0xf0]  ;;  %v3088_v48 = vor.u32 %v3197_v42, %v3087_v16 }
 0x46e   : > { %2162 = vst [vmem:[#allocation3 + $0x10] sm:$0xf] %v2156_v53  ;;  %2521 = vmatpush.bf16.msrb.mxu0 %v3012_v24  ;;  %2534 = vmatpush.bf16.msrb.mxu1 %v3016_v13  ;;  %v3060_v45 = vor.u32 %v3191_v25, %v3059_v32  ;;  %v3064_v26 = vor.u32 %v3189_v55, %v3061_v37  ;;  %v3192_v44 = vld [vmem:[#allocation3 + $0x70] sm:$0xf0]  ;;  %v3181_v9 = vld [vmem:[#allocation3 + $0x18] sm:$0xf0] }
 0x46f   : > { %v3068_v52 = vor.u32 %v3192_v44, %v3067_v43  ;;  %v3021_v27 = vld [vmem:[#allocation3 + $0x1c] sm:$0xf0]  ;;  %v2584_v17 = vpop.permute.xlu0 %2583 }
 0x470   : > { %2545 = vmatpush.bf16.msrb.mxu3 %v3060_v45  ;;  %2558 = vmatpush.bf16.msrb.mxu2 %v3064_v26  ;;  %v2596_v51 = vpop.permute.xlu1 %2595 }
 0x471   : > { %3089 = vmatmul.msk.bf16.vlgmr.msrb.gmra.mxu0 %vm764_vm10, %v2378_v49  ;;  %3090 = vmatmul.msk.bf16.vlgmr.msrb.gmra.mxu1 %vm764_vm10, %v2378_v49 }
 0x472   : > { %2569 = vmatpush.bf16.msra.mxu0 %v2512_v8  ;;  %v3187_v30 = vld [vmem:[#allocation3 + $0x48] sm:$0xf0] }
 0x473   : > { %v3186_v19 = vld [vmem:[#allocation3 + $0x40] sm:$0xf0]  ;;  %v3041_v36 = vld [vmem:[#allocation3 + $0x44] sm:$0xf0]  ;;  %v3048_v50 = vor.u32 %v3187_v30, %v3047_v62 }
 0x474   : > { %v3040_v0 = vor.u32 %v3186_v19, %v3039_v7  ;;  %v3044_v41 = vor.u32 %v3184_v12, %v3041_v36  ;;  %v3019_v21 = vld [vmem:[#allocation3 + $0x8] sm:$0xf]  ;;  %v3179_v39 = vld [vmem:[#allocation3 + $0xc] sm:$0xf] }
 0x475   : > { %v3020_v40 = vor.u32 %v3181_v9, %v3019_v21  ;;  %v3024_v59 = vor.u32 %v3179_v39, %v3021_v27  ;;  %v3027_v34 = vld [vmem:[#allocation3 + $0x10] sm:$0xf] }
 0x476   : > { %2570 = vmatpush.bf16.msra.mxu0 %v3088_v48  ;;  %2546 = vmatpush.bf16.msrb.mxu3 %v3040_v0  ;;  %v3028_v47 = vor.u32 %v3182_v63, %v3027_v34 }
 0x477   : > { %2559 = vmatpush.bf16.msrb.mxu2 %v3044_v41 }
 0x47a   : > { %2571 = vmatpush.bf16.msra.mxu0 %v3068_v52  ;;  %2547 = vmatpush.bf16.msrb.mxu3 %v3020_v40 }
 0x47b   : > { %2560 = vmatpush.bf16.msrb.mxu2 %v3024_v59 }
 0x47d   : > { %3091 = vmatmul.msk.bf16.vlgmr.msrb.gmra.mxu3 %vm764_vm10, %v2378_v49 }
 0x47e   : > { %2572 = vmatpush.bf16.msra.mxu0 %v3048_v50  ;;  %3092 = vmatmul.msk.bf16.vlgmr.msrb.gmra.mxu2 %vm764_vm10, %v2378_v49 }
 0x482   : > { %2573 = vmatpush.bf16.msra.mxu0 %v3028_v47 }
 0x485   : > { %3093 = vmatmul.msk.bf16.vlgmr.msra.gmra.mxu0 %vm764_vm10, %v2378_v49 }
 0x4ee   : > { %v2523_v22 = vpop.f32.mrf.mxu0  ;;  %v2536_v29 = vpop.f32.mrf.mxu1 }
 0x4ef   : > { %v2586_v28 = vmul.f32 %v2584_v17, %v2523_v22  ;;  %v2587_v33 = vmul.f32 %v2584_v17, %v2536_v29 }
 0x4f1   : > { %v2598_v38 = vadd.f32 %v2596_v51, %v2586_v28  ;;  %v2599_v10 = vadd.f32 %v2596_v51, %v2587_v33 }
 0x4f3   : > { %2603 = vst [vmem:[%s224_s14] sm:$0xff] %v2598_v38 }
 0x4f4   : > { %2604 = vst [vmem:[%s224_s14 + $0x8] sm:$0xff] %v2599_v10 }
 0x4f6   : > { %v2525_v58 = vpop.f32.mrf.mxu0  ;;  %v2538_v54 = vpop.f32.mrf.mxu1 }
 0x500   : > { %v2549_v1 = vpop.f32.mrf.mxu3 }
 0x501   : > { %v2562_v14 = vpop.f32.mrf.mxu2  ;;  %v2588_v6 = vmul.f32 %v2584_v17, %v2549_v1 }
 0x502   : > { %v2575_v56 = vpop.f32.mrf.mxu0  ;;  %v2589_v31 = vmul.f32 %v2584_v17, %v2562_v14 }
 0x503   : > { %v2590_v35 = vmul.f32 %v2584_v17, %v2575_v56  ;;  %v2600_v18 = vadd.f32 %v2596_v51, %v2588_v6 }
 0x504   : > { %v2601_v23 = vadd.f32 %v2596_v51, %v2589_v31 }
 0x505   : > { %v2602_v2 = vadd.f32 %v2596_v51, %v2590_v35  ;;  %2605 = vst [vmem:[%s224_s14 + $0x10] sm:$0xff] %v2600_v18 }
 0x506   : > { %2606 = vst [vmem:[%s224_s14 + $0x18] sm:$0xff] %v2601_v23 }
 0x507   : > { %2607 = vst [vmem:[%s224_s14 + $0x20] sm:$0xff] %v2602_v2 }
 0x508   : > { %v2551_v11 = vpop.f32.mrf.mxu3 }
 0x509   : > { %v2564_v5 = vpop.f32.mrf.mxu2 }
 0x50a   : > { %v2577_v3 = vpop.f32.mrf.mxu0 }
 0x50b PF: > { %s15_s18 = sadd.s32 1, %s3249_s18  }
 0x50c   : > { %p12_p4 = scmp.ge.s32.totalorder %s15_s18, 4  }
 0x50e   :  { %14 = sbr.rel (!%p12_p4) target bundleno = 1 (0x1), region = 76 }

</bundles_post_ra>
